<compile_context>
chip_gen: v6e
topology: v6e:2x2x1
jax: 0.10.0
libtpu: 0.0.40
codegen_flags: <defaults>
</compile_context>

<pallas_src>
import numpy as np
import jax
import jax.numpy as jnp
from jax.experimental import pallas as pl
from jax.experimental.pallas import tpu as pltpu

BN_EPS = 1e-5


def _encoder_kernel(x_ref, w1_ref, b1_ref, w2_ref, b2_ref, w3_ref, b3_ref,
                    out_ref):
    # x_ref  : (TG, N, in_dim)  points of TG groups, channels-last
    # w1/b1  : (in_dim, 128) f32 / (1, 128) f32   conv1 (BN1 folded)
    # w2/b2  : (128, 256) bf16   / (1, 256) f32   conv2 (BN2 folded)
    # w3/b3  : (256, C)   bf16   / (1, C)   f32   conv3
    # out_ref: (TG, C)   per-group global max feature
    tg, n, in_dim = x_ref.shape
    r = tg * n

    # (TG, N, in_dim) -> (TG*N, in_dim): collapses leading (sublane) dims only,
    # N is a multiple of 8, so this is layout-free.
    x = x_ref[...].reshape(r, in_dim).astype(jnp.float32)

    # ---- layer 1: Conv1d(in_dim->128,1) + BN + ReLU (BN pre-folded) --------
    # K = in_dim (3) is tiny -> broadcast FMAs on the VPU instead of burning a
    # padded MXU contraction pass.
    w1 = w1_ref[...]                                           # (in_dim, 128)
    if in_dim <= 8:
        h = x[:, 0:1] * w1[0:1, :]
        for k in range(1, in_dim):
            h = h + x[:, k:k + 1] * w1[k:k + 1, :]
        h = h + b1_ref[...]
    else:
        h = jnp.dot(x, w1, preferred_element_type=jnp.float32) + b1_ref[...]
    h = jnp.maximum(h, 0.0)                                    # (R, 128) f32

    # ---- layer 2: Conv1d(128->256,1) + BN + ReLU  -> MXU, bf16 in / f32 acc
    h = jnp.dot(h.astype(jnp.bfloat16), w2_ref[...],
                preferred_element_type=jnp.float32) + b2_ref[...]
    h = jnp.maximum(h, 0.0)                                    # (R, 256) f32

    # ---- layer 3: Conv1d(256->C,1)                -> MXU, bf16 in / f32 acc
    h = jnp.dot(h.astype(jnp.bfloat16), w3_ref[...],
                preferred_element_type=jnp.float32) + b3_ref[...]   # (R, C)

    # Global max-pool over this group's N points, done in-register.
    out_ref[...] = jnp.max(h.reshape(tg, n, -1), axis=1).astype(out_ref.dtype)


def _round_up(a, m):
    return (a + m - 1) // m * m


def encoder_forward(point_groups, params, *, rows_per_step=4096):
    """point_groups: (B, G, N, in_dim) f32 -> (B, G, C) f32."""
    B, G, N, in_dim = point_groups.shape
    BG = B * G
    C = params["w3"].shape[1]

    x = point_groups.reshape(BG, N, in_dim)

    # Pad N to a sublane multiple by replicating the last point (max-invariant).
    n_p = _round_up(N, 8)
    if n_p != N:
        x = jnp.concatenate(
            [x, jnp.repeat(x[:, -1:, :], n_p - N, axis=1)], axis=1)

    # Groups per grid step: multiple of 8 (sublane-dense (TG, C) output block),
    # ~rows_per_step rows per step, and keep >= 2 grid steps when the batch
    # allows it (v7x has 2 TensorCores; grid axis 0 is "parallel").
    tg = max(8, (rows_per_step // n_p) // 8 * 8)
    tg = min(tg, _round_up(BG, 8))
    while tg > 8 and _round_up(BG, tg) // tg < 2:
        tg = max(8, (tg // 2) // 8 * 8)

    bg_p = _round_up(BG, tg)
    if bg_p != BG:
        x = jnp.concatenate(
            [x, jnp.zeros((bg_p - BG, n_p, in_dim), x.dtype)], axis=0)

    w1, b1 = params["w1"], params["b1"]
    w2, b2 = params["w2"], params["b2"]
    w3, b3 = params["w3"], params["b3"]

    grid = (bg_p // tg,)

    # Weights/biases have constant index maps -> fetched once, kept resident.
    # (pipeline_mode=pl.Buffered(1) would shave ~0.4 MiB of duplicate VMEM;
    #  skipped as the footprint already fits comfortably on all generations.)
    def wspec(a):
        return pl.BlockSpec(a.shape, lambda g: (0, 0))

    flops = 2 * bg_p * n_p * (in_dim * 128 + 128 * 256 + 256 * C)
    bytes_accessed = (x.size * 4 + bg_p * C * 4
                      + w1.size * 4 + w2.size * 2 + w3.size * 2
                      + (b1.size + b2.size + b3.size) * 4)

    out = pl.pallas_call(
        _encoder_kernel,
        out_shape=jax.ShapeDtypeStruct((bg_p, C), point_groups.dtype),
        grid_spec=pltpu.PrefetchScalarGridSpec(
            num_scalar_prefetch=0,
            grid=grid,
            in_specs=[
                pl.BlockSpec((tg, n_p, in_dim), lambda g: (g, 0, 0)),
                wspec(w1), wspec(b1),
                wspec(w2), wspec(b2),
                wspec(w3), wspec(b3),
            ],
            out_specs=pl.BlockSpec((tg, C), lambda g: (g, 0)),
        ),
        compiler_params=pltpu.CompilerParams(
            dimension_semantics=("parallel",)),
        cost_estimate=pl.CostEstimate(
            flops=flops, transcendentals=0, bytes_accessed=bytes_accessed),
    )(x, w1, b1, w2, b2, w3, b3)

    return out[:BG].reshape(B, G, C)


def make_raw_params(encoder_channel=256, in_dim=3, seed=0):
    """PyTorch-layout parameters: conv weights (out,in), conv biases, BN stats."""
    key = jax.random.PRNGKey(seed)
    ks = jax.random.split(key, 6)
    W1 = 0.10 * jax.random.normal(ks[0], (128, in_dim), jnp.float32)
    c1 = 0.05 * jax.random.normal(ks[1], (128,), jnp.float32)
    W2 = 0.05 * jax.random.normal(ks[2], (256, 128), jnp.float32)
    c2 = 0.05 * jax.random.normal(ks[3], (256,), jnp.float32)
    W3 = 0.05 * jax.random.normal(ks[4], (encoder_channel, 256), jnp.float32)
    c3 = 0.05 * jax.random.normal(ks[5], (encoder_channel,), jnp.float32)

    a1 = jnp.arange(128, dtype=jnp.float32)
    a2 = jnp.arange(256, dtype=jnp.float32)
    raw = {
        "W1": W1, "c1": c1, "W2": W2, "c2": c2, "W3": W3, "c3": c3,
        # deterministic, non-trivial eval-mode BatchNorm parameters/statistics
        "g1": 1.0 + 0.05 * jnp.cos(a1), "be1": 0.01 * a1,
        "m1": 0.02 * jnp.sin(a1), "v1": 1.0 + 0.1 * (a1 / 128.0),
        "g2": 1.0 - 0.002 * a2, "be2": 0.005 * a2,
        "m2": 0.001 * a2, "v2": 1.0 + 0.01 * (a2 / 256.0),
    }
    return raw


def fold_params(raw, eps=BN_EPS):
    """Fold eval-mode BN into conv weights/biases; (in, out) layout.

    Layer-1 weights stay f32 (VPU path); layer-2/3 weights are stored bf16 for
    the MXU, biases stay f32 (added after f32 accumulation).
    """
    s1 = raw["g1"] / jnp.sqrt(raw["v1"] + eps)
    w1 = (raw["W1"] * s1[:, None]).T.astype(jnp.float32)      # (in_dim, 128)
    b1 = (raw["c1"] - raw["m1"]) * s1 + raw["be1"]            # (128,)
    s2 = raw["g2"] / jnp.sqrt(raw["v2"] + eps)
    w2 = (raw["W2"] * s2[:, None]).T.astype(jnp.bfloat16)     # (128, 256)
    b2 = (raw["c2"] - raw["m2"]) * s2 + raw["be2"]            # (256,)
    w3 = raw["W3"].T.astype(jnp.bfloat16)                     # (256, C)
    b3 = raw["c3"]                                            # (C,)
    return {"w1": w1, "b1": b1[None, :].astype(jnp.float32),
            "w2": w2, "b2": b2[None, :].astype(jnp.float32),
            "w3": w3, "b3": b3[None, :].astype(jnp.float32)}


def ref_forward(point_groups, raw, eps=BN_EPS):
    """Pure-JAX f32 reference mirroring the PyTorch module (eval-mode BN)."""
    B, G, N, in_dim = point_groups.shape
    x = point_groups.reshape(B * G, N, in_dim)
    h = jnp.einsum("bnc,oc->bno", x, raw["W1"]) + raw["c1"]
    h = (h - raw["m1"]) / jnp.sqrt(raw["v1"] + eps) * raw["g1"] + raw["be1"]
    h = jnp.maximum(h, 0.0)
    h = jnp.einsum("bnc,oc->bno", h, raw["W2"]) + raw["c2"]
    h = (h - raw["m2"]) / jnp.sqrt(raw["v2"] + eps) * raw["g2"] + raw["be2"]
    h = jnp.maximum(h, 0.0)
    h = jnp.einsum("bnc,oc->bno", h, raw["W3"]) + raw["c3"]
    feat = jnp.max(h, axis=1)                                 # (BG, C)
    return feat.reshape(B, G, -1)


if __name__ == "__main__":
    in_dim, C = 3, 256
    raw = make_raw_params(encoder_channel=C, in_dim=in_dim, seed=0)
    params = fold_params(raw)

    # bf16 matmuls (f32 accumulation) -> relaxed tolerance vs. the f32 reference.
    RTOL = ATOL = 5e-2

    # Case 1: aligned shapes (B, G, N) = (2, 4, 64).
    key = jax.random.PRNGKey(0)
    pg1 = jax.random.normal(key, (2, 4, 64, in_dim), dtype=jnp.float32)
    out1 = jax.block_until_ready(encoder_forward(pg1, params))
    ref1 = jax.block_until_ready(ref_forward(pg1, raw))
    np.testing.assert_allclose(np.asarray(out1), np.asarray(ref1),
                               rtol=RTOL, atol=ATOL)

    # Case 2: ragged shapes (N not a multiple of 8, BG not a multiple of TG)
    # to exercise the edge-replication / group-padding paths.
    pg2 = jax.random.normal(jax.random.PRNGKey(1), (2, 3, 60, in_dim),
                            dtype=jnp.float32)
    out2 = jax.block_until_ready(encoder_forward(pg2, params))
    ref2 = jax.block_until_ready(ref_forward(pg2, raw))
    np.testing.assert_allclose(np.asarray(out2), np.asarray(ref2),
                               rtol=RTOL, atol=ATOL)

    print("KERNEL_OK")
</pallas_src>

<mosaic_0001>
module attributes {stable_mosaic.version = 11 : i64} {
  func.func @_encoder_kernel(%arg0: i32, %arg1: memref<8x64x3xf32, #tpu.memory_space<vmem>>, %arg2: memref<3x128xf32, #tpu.memory_space<vmem>>, %arg3: memref<1x128xf32, #tpu.memory_space<vmem>>, %arg4: memref<128x256xbf16, #tpu.memory_space<vmem>>, %arg5: memref<1x256xf32, #tpu.memory_space<vmem>>, %arg6: memref<256x256xbf16, #tpu.memory_space<vmem>>, %arg7: memref<1x256xf32, #tpu.memory_space<vmem>>, %arg8: memref<8x256xf32, #tpu.memory_space<vmem>>) attributes {dimension_semantics = [#tpu.dimension_semantics<parallel>], iteration_bounds = array<i64: 1>, scalar_prefetch = 0 : i64, scratch_operands = 0 : i64, tpu.core_type = #tpu.core_type<tc>, window_params = [{transform_indices = @transform_0, window_bounds = array<i64: 8, 64, 3>}, {pipeline_mode = #tpu.pipeline_mode<synchronous>, transform_indices = @transform_1, window_bounds = array<i64: 3, 128>}, {pipeline_mode = #tpu.pipeline_mode<synchronous>, transform_indices = @transform_2, window_bounds = array<i64: 1, 128>}, {pipeline_mode = #tpu.pipeline_mode<synchronous>, transform_indices = @transform_3, window_bounds = array<i64: 128, 256>}, {pipeline_mode = #tpu.pipeline_mode<synchronous>, transform_indices = @transform_4, window_bounds = array<i64: 1, 256>}, {pipeline_mode = #tpu.pipeline_mode<synchronous>, transform_indices = @transform_5, window_bounds = array<i64: 256, 256>}, {pipeline_mode = #tpu.pipeline_mode<synchronous>, transform_indices = @transform_6, window_bounds = array<i64: 1, 256>}, {transform_indices = @transform_7, window_bounds = array<i64: 8, 256>}]} {
    %c0 = arith.constant 0 : index
    %c0_0 = arith.constant 0 : index
    %c0_1 = arith.constant 0 : index
    %0 = vector.load %arg1[%c0, %c0_0, %c0_1] : memref<8x64x3xf32, #tpu.memory_space<vmem>>, vector<8x64x3xf32>
    %1 = vector.shape_cast %0 : vector<8x64x3xf32> to vector<512x3xf32>
    %c0_2 = arith.constant 0 : index
    %c0_3 = arith.constant 0 : index
    %2 = vector.load %arg2[%c0_2, %c0_3] : memref<3x128xf32, #tpu.memory_space<vmem>>, vector<3x128xf32>
    %3 = vector.extract_strided_slice %1 {offsets = [0, 0], sizes = [512, 1], strides = [1, 1]} : vector<512x3xf32> to vector<512x1xf32>
    %4 = vector.extract_strided_slice %2 {offsets = [0, 0], sizes = [1, 128], strides = [1, 1]} : vector<3x128xf32> to vector<1x128xf32>
    %5 = vector.broadcast %3 : vector<512x1xf32> to vector<512x128xf32>
    %6 = vector.broadcast %4 : vector<1x128xf32> to vector<512x128xf32>
    %7 = arith.mulf %5, %6 : vector<512x128xf32>
    %8 = vector.extract_strided_slice %1 {offsets = [0, 1], sizes = [512, 1], strides = [1, 1]} : vector<512x3xf32> to vector<512x1xf32>
    %9 = vector.extract_strided_slice %2 {offsets = [1, 0], sizes = [1, 128], strides = [1, 1]} : vector<3x128xf32> to vector<1x128xf32>
    %10 = vector.broadcast %8 : vector<512x1xf32> to vector<512x128xf32>
    %11 = vector.broadcast %9 : vector<1x128xf32> to vector<512x128xf32>
    %12 = arith.mulf %10, %11 : vector<512x128xf32>
    %13 = arith.addf %7, %12 : vector<512x128xf32>
    %14 = vector.extract_strided_slice %1 {offsets = [0, 2], sizes = [512, 1], strides = [1, 1]} : vector<512x3xf32> to vector<512x1xf32>
    %15 = vector.extract_strided_slice %2 {offsets = [2, 0], sizes = [1, 128], strides = [1, 1]} : vector<3x128xf32> to vector<1x128xf32>
    %16 = vector.broadcast %14 : vector<512x1xf32> to vector<512x128xf32>
    %17 = vector.broadcast %15 : vector<1x128xf32> to vector<512x128xf32>
    %18 = arith.mulf %16, %17 : vector<512x128xf32>
    %19 = arith.addf %13, %18 : vector<512x128xf32>
    %c0_4 = arith.constant 0 : index
    %c0_5 = arith.constant 0 : index
    %20 = vector.load %arg3[%c0_4, %c0_5] : memref<1x128xf32, #tpu.memory_space<vmem>>, vector<1x128xf32>
    %21 = vector.broadcast %20 : vector<1x128xf32> to vector<512x128xf32>
    %22 = arith.addf %19, %21 : vector<512x128xf32>
    %cst = arith.constant 0.000000e+00 : f32
    %23 = vector.broadcast %cst : f32 to vector<512x128xf32>
    %24 = arith.maximumf %22, %23 : vector<512x128xf32>
    %25 = arith.truncf %24 : vector<512x128xf32> to vector<512x128xbf16>
    %c0_6 = arith.constant 0 : index
    %c0_7 = arith.constant 0 : index
    %26 = vector.load %arg4[%c0_6, %c0_7] : memref<128x256xbf16, #tpu.memory_space<vmem>>, vector<128x256xbf16>
    %cst_8 = arith.constant dense<0.000000e+00> : vector<512x256xf32>
    %27 = tpu.matmul %25, %26, %cst_8 {dimension_numbers = #tpu.dot_dimension_numbers<[1], [0], [0], [1], [0, 0, 1, 1], [], []>} : vector<512x128xbf16>, vector<128x256xbf16>, vector<512x256xf32> -> vector<512x256xf32>
    %c0_9 = arith.constant 0 : index
    %c0_10 = arith.constant 0 : index
    %28 = vector.load %arg5[%c0_9, %c0_10] : memref<1x256xf32, #tpu.memory_space<vmem>>, vector<1x256xf32>
    %29 = vector.broadcast %28 : vector<1x256xf32> to vector<512x256xf32>
    %30 = arith.addf %27, %29 : vector<512x256xf32>
    %cst_11 = arith.constant 0.000000e+00 : f32
    %31 = vector.broadcast %cst_11 : f32 to vector<512x256xf32>
    %32 = arith.maximumf %30, %31 : vector<512x256xf32>
    %33 = arith.truncf %32 : vector<512x256xf32> to vector<512x256xbf16>
    %c0_12 = arith.constant 0 : index
    %c0_13 = arith.constant 0 : index
    %34 = vector.load %arg6[%c0_12, %c0_13] : memref<256x256xbf16, #tpu.memory_space<vmem>>, vector<256x256xbf16>
    %cst_14 = arith.constant dense<0.000000e+00> : vector<512x256xf32>
    %35 = tpu.matmul %33, %34, %cst_14 {dimension_numbers = #tpu.dot_dimension_numbers<[1], [0], [0], [1], [0, 0, 1, 1], [], []>} : vector<512x256xbf16>, vector<256x256xbf16>, vector<512x256xf32> -> vector<512x256xf32>
    %c0_15 = arith.constant 0 : index
    %c0_16 = arith.constant 0 : index
    %36 = vector.load %arg7[%c0_15, %c0_16] : memref<1x256xf32, #tpu.memory_space<vmem>>, vector<1x256xf32>
    %37 = vector.broadcast %36 : vector<1x256xf32> to vector<512x256xf32>
    %38 = arith.addf %35, %37 : vector<512x256xf32>
    %39 = vector.shape_cast %38 : vector<512x256xf32> to vector<8x64x256xf32>
    %cst_17 = arith.constant dense<0xFF800000> : vector<8x256xf32>
    %40 = vector.multi_reduction <maximumf>, %39, %cst_17 [1] : vector<8x64x256xf32> to vector<8x256xf32>
    %c0_18 = arith.constant 0 : index
    %c0_19 = arith.constant 0 : index
    %41 = vector.load %arg8[%c0_18, %c0_19] : memref<8x256xf32, #tpu.memory_space<vmem>>, vector<8x256xf32>
    tpu.vector_store %arg8[%c0_18, %c0_19], %40 {strides = array<i32>} : memref<8x256xf32, #tpu.memory_space<vmem>>, vector<8x256xf32>,
    return
  }
  func.func @transform_0(%arg0: i32) -> (i32, i32, i32) {
    %c0_i32 = arith.constant 0 : i32
    %c0_i32_0 = arith.constant 0 : i32
    %c0_i32_1 = arith.constant 0 : i32
    return %arg0, %c0_i32, %c0_i32_0 : i32, i32, i32
  }
  func.func @transform_1(%arg0: i32) -> (i32, i32) {
    %c0_i32 = arith.constant 0 : i32
    %c0_i32_0 = arith.constant 0 : i32
    %c0_i32_1 = arith.constant 0 : i32
    return %c0_i32, %c0_i32_0 : i32, i32
  }
  func.func @transform_2(%arg0: i32) -> (i32, i32) {
    %c0_i32 = arith.constant 0 : i32
    %c0_i32_0 = arith.constant 0 : i32
    %c0_i32_1 = arith.constant 0 : i32
    return %c0_i32, %c0_i32_0 : i32, i32
  }
  func.func @transform_3(%arg0: i32) -> (i32, i32) {
    %c0_i32 = arith.constant 0 : i32
    %c0_i32_0 = arith.constant 0 : i32
    %c0_i32_1 = arith.constant 0 : i32
    return %c0_i32, %c0_i32_0 : i32, i32
  }
  func.func @transform_4(%arg0: i32) -> (i32, i32) {
    %c0_i32 = arith.constant 0 : i32
    %c0_i32_0 = arith.constant 0 : i32
    %c0_i32_1 = arith.constant 0 : i32
    return %c0_i32, %c0_i32_0 : i32, i32
  }
  func.func @transform_5(%arg0: i32) -> (i32, i32) {
    %c0_i32 = arith.constant 0 : i32
    %c0_i32_0 = arith.constant 0 : i32
    %c0_i32_1 = arith.constant 0 : i32
    return %c0_i32, %c0_i32_0 : i32, i32
  }
  func.func @transform_6(%arg0: i32) -> (i32, i32) {
    %c0_i32 = arith.constant 0 : i32
    %c0_i32_0 = arith.constant 0 : i32
    %c0_i32_1 = arith.constant 0 : i32
    return %c0_i32, %c0_i32_0 : i32, i32
  }
  func.func @transform_7(%arg0: i32) -> (i32, i32) {
    %c0_i32 = arith.constant 0 : i32
    %c0_i32_0 = arith.constant 0 : i32
    return %arg0, %c0_i32 : i32, i32
  }
}

</mosaic_0001>

<bundles_post_ra>
// kernel: tpu_custom_call.1
= control target key start
LH: loop header
LB: loop body
LE: loop exit
PB: predicated region body
PF: predicated region fallthrough
CT: control target
= control target key end

     0   :  { %v3184_v2 = vmov 0   ;;  %v3185_v13 = vmov 1   ;;  %v3186_v17 = vmov 2   ;;  %s4708_s0 = inlined_call_operand.vmem [shape: f32[8,64,3], index: 0, kind: input, shape index: {}]   ;;  %s4709_s1 = inlined_call_operand.vmem [shape: f32[3,128], index: 1, kind: input, shape index: {}]   ;;  %s4710_s2 = inlined_call_operand.vmem [shape: f32[1,128], index: 2, kind: input, shape index: {}]   ;;  %s4711_s3 = inlined_call_operand.vmem [shape: bf16[128,256], index: 3, kind: input, shape index: {}]   ;;  %s4712_s4 = inlined_call_operand.vmem [shape: f32[1,256], index: 4, kind: input, shape index: {}]   ;;  %s4713_s5 = inlined_call_operand.vmem [shape: bf16[256,256], index: 5, kind: input, shape index: {}]   ;;  %s4714_s6 = inlined_call_operand.vmem [shape: f32[1,256], index: 6, kind: input, shape index: {}]   ;;  %s4715_s7 = inlined_call_operand.hbm [shape: f32[8,256], index: 7, kind: output, shape index: {}]  }
   0x1   :  { %v30_v0 = vld [vmem:[%s4708_s0 + $0x10] sm:$0xff]  ;;  %v28_v1 = vld [vmem:[%s4708_s0] sm:$0xff]  ;;  %2983 = vset.pattern.permute.xlu1 %v3184_v2  ;;  %2982 = vset.pattern.permute.xlu0 %v3184_v2  ;;  %v31_v3 = vld [vmem:[%s4708_s0 + $0x18] sm:$0xff] }
   0x2   :  { %105 = vperm.xlu1 %2983, %v30_v0   ;;  %95 = vperm.xlu0 %2982, %v28_v1   ;;  %v29_v4 = vld [vmem:[%s4708_s0 + $0x8] sm:$0xff]  ;;  %v3087_v5 = vld [vmem:[%s4711_s3 + $0x74] ss:$8 sps:$4 sm:$0xff]   ;;  %v3252_v7 = vld [vmem:[%s4708_s0 + $0x20] sm:$0xff] }
   0x3   :  { %1564 = vmatprep.mubr.bf16.mxu0 %v3184_v2  ;;  %v33_v6 = vld [vmem:[%s4708_s0 + $0x28] sm:$0xff]  ;;  %v3089_v8 = vld [vmem:[%s4711_s3 + $0x70] ss:$8 sps:$4 sm:$0xff]   ;;  %1532 = vmatprep.subr.bf16.mxu0 %v3087_v5  ;;  %v3093_v11 = vld [vmem:[%s4711_s3 + $0x54] ss:$8 sps:$4 sm:$0xff]  }
   0x4   :  { %v3090_v9 = vld [vmem:[%s4711_s3 + $0x64] ss:$8 sps:$4 sm:$0xff]   ;;  %1533 = vmatpush1.bf16.msra.mxu0 %v3089_v8  ;;  %v3092_v10 = vld [vmem:[%s4711_s3 + $0x60] ss:$8 sps:$4 sm:$0xff]   ;;  %v3095_v12 = vld [vmem:[%s4711_s3 + $0x50] ss:$8 sps:$4 sm:$0xff]  }
   0x5   :  { %1534 = vmatprep.subr.bf16.mxu0 %v3090_v9  ;;  %v3096_v14 = vld [vmem:[%s4711_s3 + $0x44] ss:$8 sps:$4 sm:$0xff]   ;;  %v3098_v15 = vld [vmem:[%s4711_s3 + $0x40] ss:$8 sps:$4 sm:$0xff]   ;;  %v3099_v16 = vld [vmem:[%s4711_s3 + $0x34] ss:$8 sps:$4 sm:$0xff]  }
   0x6   :  { %110 = vperm.xlu1 %2983, %v31_v3   ;;  %100 = vperm.xlu0 %2982, %v29_v4   ;;  %v3101_v18 = vld [vmem:[%s4711_s3 + $0x30] ss:$8 sps:$4 sm:$0xff]   ;;  %v3102_v19 = vld [vmem:[%s4711_s3 + $0x24] ss:$8 sps:$4 sm:$0xff]   ;;  %v3104_v20 = vld [vmem:[%s4711_s3 + $0x20] ss:$8 sps:$4 sm:$0xff]  }
   0x7   :  { %v3105_v21 = vld [vmem:[%s4711_s3 + $0x14] ss:$8 sps:$4 sm:$0xff]   ;;  %v3107_v23 = vld [vmem:[%s4711_s3 + $0x10] ss:$8 sps:$4 sm:$0xff]  }
   0x8   :  { %1535 = vmatpush1.bf16.msra.mxu0 %v3092_v10  ;;  %v35_v22 = vld [vmem:[%s4708_s0 + $0x38] sm:$0xff] }
   0x9   :  { %1536 = vmatprep.subr.bf16.mxu0 %v3093_v11 }
   0xa   :  { %120 = vperm.xlu1 %2983, %v33_v6   ;;  %115 = vperm.xlu0 %2982, %v3252_v7  }
   0xc   :  { %1537 = vmatpush1.bf16.msra.mxu0 %v3095_v12 }
   0xd   :  { %1538 = vmatprep.subr.bf16.mxu0 %v3096_v14 }
   0xe   :  { %2985 = vset.pattern.permute.xlu1 %v3185_v13  ;;  %2984 = vset.pattern.permute.xlu0 %v3185_v13 }
   0xf   :  { %486 = vperm.xlu1 %2985, %v29_v4   ;;  %482 = vperm.xlu0 %2984, %v28_v1  }
  0x10   :  { %1539 = vmatpush1.bf16.msra.mxu0 %v3098_v15 }
  0x11   :  { %1540 = vmatprep.subr.bf16.mxu0 %v3099_v16 }
  0x13   :  { %2986 = vset.pattern.permute.xlu1 %v3186_v17  ;;  %2987 = vset.pattern.permute.xlu0 %v3186_v17 }
  0x14   :  { %870 = vperm.xlu1 %2986, %v28_v1   ;;  %874 = vperm.xlu0 %2987, %v29_v4  }
  0x15   :  { %1541 = vmatpush1.bf16.msra.mxu0 %v3101_v18 }
  0x16   :  { %1542 = vmatprep.subr.bf16.mxu0 %v3102_v19 }
  0x18   :  { %2988 = vset.pattern.permute.xlu1 %v3185_v13  ;;  %878 = vperm.xlu0 %2987, %v30_v0  }
  0x19   :  { %490 = vperm.xlu1 %2988, %v30_v0   ;;  %1543 = vmatpush1.bf16.msra.mxu0 %v3104_v20 }
  0x1c   :  { %890 = vperm.xlu0 %2987, %v33_v6  }
  0x1d   :  { %494 = vperm.xlu1 %2988, %v31_v3  }
  0x1e   :  { %12 = vsyncpa [#allocation3], 0  ;;  %1544 = vmatprep.subr.bf16.mxu0 %v3105_v21  ;;  %v3108_v24 = vld [vmem:[%s4711_s3 + $0x4] ss:$8 sps:$4 sm:$0xff]   ;;  %v3110_v26 = vld [vmem:[%s4711_s3] ss:$8 sps:$4 sm:$0xff]   ;;  %v413_v48 = vlaneseq }
  0x1f   :  { %v37_v25 = vld [vmem:[%s4708_s0 + $0x48] sm:$0xff]  ;;  %1545 = vmatpush1.bf16.msra.mxu0 %v3107_v23  ;;  %v39_v27 = vld [vmem:[%s4708_s0 + $0x58] sm:$0xff]  ;;  %v34_v29 = vld [vmem:[%s4708_s0 + $0x30] sm:$0xff]  ;;  %vm2858_vm0 = vcmask 1041409   ;;  %vm2860_vm1 = vcmask 1042434   ;;  %vm2862_vm2 = vcmask 1043459  }
  0x20   :  { %898 = vperm.xlu0 %2987, %v35_v22   ;;  %1546 = vmatprep.subr.bf16.mxu0 %v3108_v24  ;;  %v3319_v28 = vld [vmem:[%s4708_s0 + $0x68] sm:$0xff]  ;;  %v36_v30 = vld [vmem:[%s4708_s0 + $0x40] sm:$0xff]  ;;  %v38_v31 = vld [vmem:[%s4708_s0 + $0x50] sm:$0xff]  ;;  %v414_v52 = vshrl.u32 %v413_v48, 7  ;;  %vm2864_vm3 = vcmask 1044484   ;;  %vm2866_vm4 = vcmask 1045509  }
  0x21   :  { %2989 = vset.pattern.permute.xlu1 %v3186_v17  ;;  %v40_v32 = vld [vmem:[%s4708_s0 + $0x60] sm:$0xff]  ;;  %v3344_v33 = vld [vmem:[%s4708_s0 + $0x70] sm:$0xff]  ;;  %v43_v40 = vld [vmem:[%s4708_s0 + $0x78] sm:$0xff]  ;;  %vm2868_vm5 = vcmask 1046534   ;;  %vm2870_vm6 = vcmask 1047559  }
  0x22   :  { %882 = vperm.xlu1 %2989, %v31_v3   ;;  %v3351_v34 = vld [vmem:[%s4708_s0 + $0x80] sm:$0xff]  ;;  %v3357_v35 = vld [vmem:[%s4708_s0 + $0x90] sm:$0xff]  ;;  %v3396_v41 = vld [vmem:[%s4708_s0 + $0x88] sm:$0xff]  ;;  %v3455_v56 = vsub.s32 0, %v414_v52  ;;  %v3457_v57 = vsub.s32 1, %v414_v52  ;;  %v1127_v0 = vsub.s32 2, %v414_v52 }
  0x23   :  { %1547 = vmatpush1.bf16.msra.mxu0 %v3110_v26  ;;  %v3364_v36 = vld [vmem:[%s4708_s0 + $0xa0] sm:$0xff]  ;;  %v3371_v37 = vld [vmem:[%s4708_s0 + $0xb0] sm:$0xff]  ;;  %v3403_v42 = vld [vmem:[%s4708_s0 + $0x98] sm:$0xff] }
  0x24   :  { %906 = vperm.xlu0 %2987, %v37_v25   ;;  %v3378_v38 = vld [vmem:[%s4708_s0 + $0xc0] sm:$0xff]  ;;  %v3384_v39 = vld [vmem:[%s4708_s0 + $0xd0] sm:$0xff]  ;;  %v3409_v43 = vld [vmem:[%s4708_s0 + $0xa8] sm:$0xff] }
  0x25   :  { %v3416_v44 = vld [vmem:[%s4708_s0 + $0xb8] sm:$0xff]  ;;  %v3424_v45 = vld [vmem:[%s4708_s0 + $0xc8] sm:$0xff]  ;;  %v92_v58 = vld [vmem:[%s4709_s1] sm:$0x7] }
  0x26   :  { %2990 = vset.pattern.permute.xlu1 %v3185_v13  ;;  %v3431_v46 = vld [vmem:[%s4708_s0 + $0xd8] sm:$0xff]  ;;  %v3437_v47 = vld [vmem:[%s4708_s0 + $0xe8] sm:$0xff]  ;;  %v3474_v62 = vrot.slane %v92_v58, %v3455_v56  ;;  %v3477_v63 = vrot.slane %v92_v58, %v3457_v57  ;;  %v3491_v9 = vrot.slane %v92_v58, %v1127_v0  ;;  %v3501_v18 = vld [vmem:[%s4708_s0 + $0xe0] sm:$0xff] }
  0x27   :  { %502 = vperm.xlu1 %2990, %v33_v6   ;;  %v3445_v51 = vld [vmem:[%s4708_s0 + $0xf8] sm:$0xff]  ;;  %v3453_v55 = vld [vmem:[%s4708_s0 + $0x108] sm:$0xff]  ;;  %v3506_v19 = vld [vmem:[%s4710_s2] ss:$0 sm:$0xff] }
  0x28   :  { %914 = vperm.xlu0 %2987, %v39_v27   ;;  %v3471_v61 = vld [vmem:[%s4708_s0 + $0x118] sm:$0xff]  ;;  %v3487_v6 = vld [vmem:[%s4708_s0 + $0x128] sm:$0xff]  ;;  %v3516_v26 = vld [vmem:[%s4708_s0 + $0xf0] sm:$0xff] }
  0x2b   :  { %2991 = vset.pattern.permute.xlu1 %v3186_v17 }
  0x2c   :  { %886 = vperm.xlu1 %2991, %v3252_v7   ;;  %922 = vperm.xlu0 %2987, %v3319_v28  }
  0x30   :  { %2992 = vset.pattern.permute.xlu1 %v3184_v2  ;;  %3004 = vset.pattern.permute.xlu0 %v3185_v13 }
  0x31   :  { %125 = vperm.xlu1 %2992, %v34_v29   ;;  %498 = vperm.xlu0 %3004, %v3252_v7  }
  0x35   :  { %130 = vperm.xlu1 %2992, %v35_v22   ;;  %506 = vperm.xlu0 %3004, %v34_v29  }
  0x39   :  { %2993 = vset.pattern.permute.xlu1 %v3185_v13  ;;  %514 = vperm.xlu0 %3004, %v36_v30  }
  0x3a   :  { %510 = vperm.xlu1 %2993, %v35_v22  }
  0x3d   :  { %522 = vperm.xlu0 %3004, %v38_v31  }
  0x3e   :  { %2994 = vset.pattern.permute.xlu1 %v3186_v17 }
  0x3f   :  { %894 = vperm.xlu1 %2994, %v34_v29  }
  0x41   :  { %530 = vperm.xlu0 %3004, %v40_v32  }
  0x43   :  { %2995 = vset.pattern.permute.xlu1 %v3184_v2 }
  0x44   :  { %135 = vperm.xlu1 %2995, %v36_v30  }
  0x45   :  { %538 = vperm.xlu0 %3004, %v3344_v33  }
  0x48   :  { %140 = vperm.xlu1 %2995, %v37_v25  }
  0x49   :  { %546 = vperm.xlu0 %3004, %v3351_v34  }
  0x4c   :  { %2996 = vset.pattern.permute.xlu1 %v3185_v13 }
  0x4d   :  { %518 = vperm.xlu1 %2996, %v37_v25   ;;  %554 = vperm.xlu0 %3004, %v3357_v35  }
  0x51   :  { %2997 = vset.pattern.permute.xlu1 %v3186_v17  ;;  %562 = vperm.xlu0 %3004, %v3364_v36  }
  0x52   :  { %902 = vperm.xlu1 %2997, %v36_v30  }
  0x55   :  { %570 = vperm.xlu0 %3004, %v3371_v37  }
  0x56   :  { %2998 = vset.pattern.permute.xlu1 %v3184_v2 }
  0x57   :  { %145 = vperm.xlu1 %2998, %v38_v31  }
  0x59   :  { %578 = vperm.xlu0 %3004, %v3378_v38  }
  0x5b   :  { %150 = vperm.xlu1 %2998, %v39_v27  }
  0x5d   :  { %586 = vperm.xlu0 %3004, %v3384_v39  }
  0x5f   :  { %2999 = vset.pattern.permute.xlu1 %v3185_v13 }
  0x60   :  { %526 = vperm.xlu1 %2999, %v39_v27  }
  0x61   :  { %3024 = vset.pattern.permute.xlu0 %v3186_v17 }
  0x62   :  { %930 = vperm.xlu0 %3024, %v43_v40  }
  0x64   :  { %3000 = vset.pattern.permute.xlu1 %v3186_v17 }
  0x65   :  { %910 = vperm.xlu1 %3000, %v38_v31  }
  0x66   :  { %938 = vperm.xlu0 %3024, %v3396_v41  }
  0x69   :  { %3001 = vset.pattern.permute.xlu1 %v3184_v2 }
  0x6a   :  { %155 = vperm.xlu1 %3001, %v40_v32   ;;  %946 = vperm.xlu0 %3024, %v3403_v42  }
  0x6e   :  { %160 = vperm.xlu1 %3001, %v3319_v28   ;;  %954 = vperm.xlu0 %3024, %v3409_v43  }
  0x72   :  { %3002 = vset.pattern.permute.xlu1 %v3185_v13  ;;  %962 = vperm.xlu0 %3024, %v3416_v44  }
  0x73   :  { %534 = vperm.xlu1 %3002, %v3319_v28  }
  0x76   :  { %970 = vperm.xlu0 %3024, %v3424_v45  }
  0x77   :  { %3003 = vset.pattern.permute.xlu1 %v3186_v17 }
  0x78   :  { %918 = vperm.xlu1 %3003, %v40_v32  }
  0x7a   :  { %978 = vperm.xlu0 %3024, %v3431_v46  }
  0x7c   :  { %3005 = vset.pattern.permute.xlu1 %v3184_v2 }
  0x7d   :  { %v106_v49 = vpop.permute.xlu1 %105  ;;  %165 = vperm.xlu1 %3005, %v3344_v33   ;;  %v96_v50 = vpop.permute.xlu0 %95 }
  0x7e   :  { %986 = vperm.xlu0 %3024, %v3437_v47   ;;  %v417_v1 = vmul.f32 %v3474_v62, %v96_v50  ;;  %v419_v28 = vmul.f32 %v3474_v62, %v106_v49 }
  0x81   :  { %v3447_v53 = vpop.permute.xlu1 %110  ;;  %170 = vperm.xlu1 %3005, %v43_v40   ;;  %v101_v54 = vpop.permute.xlu0 %100 }
  0x82   :  { %994 = vperm.xlu0 %3024, %v3445_v51   ;;  %v418_v7 = vmul.f32 %v3474_v62, %v101_v54  ;;  %v420_v49 = vmul.f32 %v3474_v62, %v3447_v53 }
  0x85   :  { %v3462_v59 = vpop.permute.xlu1 %120  ;;  %3006 = vset.pattern.permute.xlu1 %v3185_v13  ;;  %v3465_v60 = vpop.permute.xlu0 %115 }
  0x86   :  { %542 = vperm.xlu1 %3006, %v43_v40   ;;  %1002 = vperm.xlu0 %3024, %v3453_v55  }
  0x8a   :  { %v487_v3 = vpop.permute.xlu1 %486  ;;  %3007 = vset.pattern.permute.xlu1 %v3186_v17  ;;  %v483_v4 = vpop.permute.xlu0 %482  ;;  %1010 = vperm.xlu0 %3024, %v3471_v61  }
  0x8b   :  { %926 = vperm.xlu1 %3007, %v3344_v33   ;;  %v741_v5 = vmul.f32 %v3477_v63, %v483_v4  ;;  %v742_v8 = vmul.f32 %v3477_v63, %v487_v3 }
  0x8d   :  { %v805_v10 = vadd.f32 %v741_v5, %v417_v1  ;;  %v806_v14 = vadd.f32 %v742_v8, %v418_v7 }
  0x8e   :  { %1018 = vperm.xlu0 %3024, %v3487_v6  }
  0x8f   :  { %3008 = vset.pattern.permute.xlu1 %v3184_v2  ;;  %v871_v11 = vpop.permute.xlu1 %870  ;;  %v875_v12 = vpop.permute.xlu0 %874 }
  0x90   :  { %v1129_v15 = vmul.f32 %v3491_v9, %v871_v11  ;;  %v1130_v16 = vmul.f32 %v3491_v9, %v875_v12  ;;  %175 = vperm.xlu1 %3008, %v3351_v34  }
  0x92   :  { %v1193_v20 = vadd.f32 %v1129_v15, %v805_v10  ;;  %v1194_v21 = vadd.f32 %v1130_v16, %v806_v14  ;;  %3042 = vset.pattern.permute.xlu0 %v3185_v13  ;;  %v3548_v16 = vld [vmem:[%s4708_s0 + $0x100] sm:$0xff] }
  0x93   :  { %v879_v22 = vpop.permute.xlu0 %878  ;;  %594 = vperm.xlu0 %3042, %v3501_v18  }
  0x94   :  { %v1264_v23 = vadd.f32 %v3506_v19, %v1193_v20  ;;  %v1265_v24 = vadd.f32 %v3506_v19, %v1194_v21  ;;  %180 = vperm.xlu1 %3008, %v3396_v41   ;;  %v491_v25 = vpop.permute.xlu1 %490  ;;  %v1131_v33 = vmul.f32 %v3491_v9, %v879_v22 }
  0x95   :  { %v743_v27 = vmul.f32 %v3477_v63, %v491_v25 }
  0x96   :  { %v1328_v29 = vmax.f32 %v1264_v23, 0.0  ;;  %v1329_v30 = vmax.f32 %v1265_v24, 0.0 }
  0x97   :  { %v891_v31 = vpop.permute.xlu0 %890  ;;  %602 = vperm.xlu0 %3042, %v3516_v26   ;;  %v807_v32 = vadd.f32 %v743_v27, %v419_v28 }
  0x98   :  { %3009 = vset.pattern.permute.xlu1 %v3185_v13  ;;  %v495_v40 = vpop.permute.xlu1 %494  ;;  %v1392_v48 = vpack.c.bf16 %v1329_v30, %v1328_v29  ;;  %v1134_v20 = vmul.f32 %v3491_v9, %v891_v31 }
  0x99   :  { %550 = vperm.xlu1 %3009, %v3396_v41   ;;  %v744_v50 = vmul.f32 %v3477_v63, %v495_v40  ;;  %v1195_v54 = vadd.f32 %v1131_v33, %v807_v32 }
  0x9a   :  { %1565 = vmatmul.mubr.bf16.vlgmr.msra.gmra.mxu0 %v1392_v48 }
  0x9b   :  { %v899_v52 = vpop.permute.xlu0 %898  ;;  %1574 = vmatprep.mubr.bf16.mxu0 %v3184_v2  ;;  %v808_v0 = vadd.f32 %v744_v50, %v420_v49  ;;  %v1266_v41 = vadd.f32 %v3506_v19, %v1195_v54  ;;  %610 = vperm.xlu0 %3042, %v3548_v16  }
  0x9c   :  { %v1136_v48 = vmul.f32 %v3491_v9, %v899_v52  ;;  %v3575_v52 = vld [vmem:[%s4708_s0 + $0x110] sm:$0xff] }
  0x9d   :  { %3010 = vset.pattern.permute.xlu1 %v3186_v17  ;;  %v883_v58 = vpop.permute.xlu1 %882  ;;  %v1330_v8 = vmax.f32 %v1266_v41, 0.0 }
  0x9e   :  { %v1132_v1 = vmul.f32 %v3491_v9, %v883_v58  ;;  %934 = vperm.xlu1 %3010, %v3351_v34   ;;  %v422_v34 = vmul.f32 %v3474_v62, %v3462_v59  ;;  %v421_v59 = vmul.f32 %v3474_v62, %v3465_v60 }
  0x9f   :  { %v3531_v3 = vpop.permute.xlu0 %906  ;;  %618 = vperm.xlu0 %3042, %v3575_v52  }
  0xa0   :  { %v1196_v4 = vadd.f32 %v1132_v1, %v808_v0 }
  0xa2   :  { %v1267_v5 = vadd.f32 %v3506_v19, %v1196_v4  ;;  %3011 = vset.pattern.permute.xlu1 %v3184_v2  ;;  %v503_v7 = vpop.permute.xlu1 %502 }
  0xa3   :  { %185 = vperm.xlu1 %3011, %v3357_v35   ;;  %v3537_v53 = vpop.permute.xlu0 %914  ;;  %v746_v11 = vmul.f32 %v3477_v63, %v503_v7 }
  0xa4   :  { %v1331_v10 = vmax.f32 %v1267_v5, 0.0 }
  0xa5   :  { %v810_v21 = vadd.f32 %v746_v11, %v422_v34 }
  0xa6   :  { %v1393_v12 = vpack.c.bf16 %v1331_v10, %v1330_v8 }
  0xa7   :  { %190 = vperm.xlu1 %3011, %v3403_v42   ;;  %v887_v14 = vpop.permute.xlu1 %886  ;;  %v3543_v15 = vpop.permute.xlu0 %922  ;;  %v1198_v24 = vadd.f32 %v1134_v20, %v810_v21  ;;  %v3111_v21 = vld [vmem:[%s4713_s5 + $0x74] ss:$8 sps:$4 sm:$0xff]  }
  0xa8   :  { %1575 = vmatmul.mubr.bf16.gmra.mxu0 %v1393_v12  ;;  %v1133_v27 = vmul.f32 %v3491_v9, %v887_v14  ;;  %2946 = vmatprep.subr.bf16.mxu1 %v3111_v21 }
  0xa9   :  { %1584 = vmatprep.mubr.bf16.mxu0 %v3184_v2  ;;  %v1269_v60 = vadd.f32 %v3506_v19, %v1198_v24  ;;  %2281 = vmatprep.subr.bf16.mxu0 %v3111_v21  ;;  %v1140_v21 = vmul.f32 %v3491_v9, %v3537_v53  ;;  %v3677_v53 = vld [vmem:[%s4708_s0 + $0x150] sm:$0xff] }
  0xab   :  { %3012 = vset.pattern.permute.xlu1 %v3185_v13  ;;  %v1333_v40 = vmax.f32 %v1269_v60, 0.0 }
  0xac   :  { %558 = vperm.xlu1 %3012, %v3403_v42   ;;  %v126_v22 = vpop.permute.xlu1 %125  ;;  %v499_v23 = vpop.permute.xlu0 %498 }
  0xad   :  { %v745_v25 = vmul.f32 %v3477_v63, %v499_v23  ;;  %v423_v0 = vmul.f32 %v3474_v62, %v126_v22 }
  0xaf   :  { %v809_v28 = vadd.f32 %v745_v25, %v421_v59  ;;  %v3114_v25 = vld [vmem:[%s4713_s5 + $0x64] ss:$8 sps:$4 sm:$0xff]  }
  0xb0   :  { %3013 = vset.pattern.permute.xlu1 %v3186_v17  ;;  %v131_v29 = vpop.permute.xlu1 %130  ;;  %v507_v32 = vpop.permute.xlu0 %506 }
  0xb1   :  { %v1197_v30 = vadd.f32 %v1133_v27, %v809_v28  ;;  %942 = vperm.xlu1 %3013, %v3357_v35   ;;  %v424_v50 = vmul.f32 %v3474_v62, %v131_v29  ;;  %v747_v35 = vmul.f32 %v3477_v63, %v507_v32  ;;  %v3116_v29 = vld [vmem:[%s4713_s5 + $0x60] ss:$8 sps:$4 sm:$0xff]  }
  0xb2   :  { %v3610_v32 = vld [vmem:[%s4708_s0 + $0x120] sm:$0xff] }
  0xb3   :  { %v1268_v31 = vadd.f32 %v3506_v19, %v1197_v30  ;;  %v811_v4 = vadd.f32 %v747_v35, %v423_v0  ;;  %626 = vperm.xlu0 %3042, %v3610_v32  }
  0xb4   :  { %v515_v59 = vpop.permute.xlu0 %514 }
  0xb5   :  { %3014 = vset.pattern.permute.xlu1 %v3184_v2  ;;  %v511_v42 = vpop.permute.xlu1 %510  ;;  %v1332_v33 = vmax.f32 %v1268_v31, 0.0  ;;  %v749_v28 = vmul.f32 %v3477_v63, %v515_v59 }
  0xb6   :  { %v748_v49 = vmul.f32 %v3477_v63, %v511_v42  ;;  %195 = vperm.xlu1 %3014, %v3364_v36   ;;  %v3117_v42 = vld [vmem:[%s4713_s5 + $0x54] ss:$8 sps:$4 sm:$0xff]  }
  0xb7   :  { %v1394_v54 = vpack.c.bf16 %v1333_v40, %v1332_v33 }
  0xb8   :  { %v812_v58 = vadd.f32 %v748_v49, %v424_v50  ;;  %v523_v30 = vpop.permute.xlu0 %522 }
  0xb9   :  { %1585 = vmatmul.mubr.bf16.gmra.mxu0 %v1394_v54  ;;  %v3120_v54 = vld [vmem:[%s4713_s5 + $0x44] ss:$8 sps:$4 sm:$0xff]  }
  0xba   :  { %v1200_v1 = vadd.f32 %v1136_v48, %v812_v58  ;;  %200 = vperm.xlu1 %3014, %v3409_v43   ;;  %v895_v41 = vpop.permute.xlu1 %894  ;;  %1594 = vmatprep.mubr.bf16.mxu0 %v3184_v2  ;;  %v3119_v48 = vld [vmem:[%s4713_s5 + $0x50] ss:$8 sps:$4 sm:$0xff]  }
  0xbb   :  { %v1135_v5 = vmul.f32 %v3491_v9, %v895_v41 }
  0xbc   :  { %v1271_v8 = vadd.f32 %v3506_v19, %v1200_v1  ;;  %v3620_v50 = vpop.permute.xlu0 %530  ;;  %v3122_v1 = vld [vmem:[%s4713_s5 + $0x40] ss:$8 sps:$4 sm:$0xff]  }
  0xbd   :  { %v1199_v7 = vadd.f32 %v1135_v5, %v811_v4 }
  0xbe   :  { %3015 = vset.pattern.permute.xlu1 %v3185_v13  ;;  %v1335_v34 = vmax.f32 %v1271_v8, 0.0 }
  0xbf   :  { %v1270_v10 = vadd.f32 %v3506_v19, %v1199_v7  ;;  %566 = vperm.xlu1 %3015, %v3409_v43   ;;  %v136_v11 = vpop.permute.xlu1 %135  ;;  %v3113_v43 = vld [vmem:[%s4713_s5 + $0x70] ss:$8 sps:$4 sm:$0xff]   ;;  %v3123_v7 = vld [vmem:[%s4713_s5 + $0x34] ss:$8 sps:$4 sm:$0xff]  }
  0xc0   :  { %2962 = vmatpush1.bf16.msra.mxu1 %v3113_v43  ;;  %2282 = vmatpush1.bf16.msra.mxu0 %v3113_v43  ;;  %v425_v27 = vmul.f32 %v3474_v62, %v136_v11  ;;  %v3632_v5 = vpop.permute.xlu0 %538  ;;  %v3125_v11 = vld [vmem:[%s4713_s5 + $0x30] ss:$8 sps:$4 sm:$0xff]  }
  0xc1   :  { %v1334_v12 = vmax.f32 %v1270_v10, 0.0  ;;  %2947 = vmatprep.subr.bf16.mxu1 %v3114_v25  ;;  %2283 = vmatprep.subr.bf16.mxu0 %v3114_v25  ;;  %v3641_v10 = vld [vmem:[%s4708_s0 + $0x130] sm:$0xff] }
  0xc2   :  { %v813_v33 = vadd.f32 %v749_v28, %v425_v27  ;;  %634 = vperm.xlu0 %3042, %v3641_v10   ;;  %v3131_v25 = vld [vmem:[%s4713_s5 + $0x10] ss:$8 sps:$4 sm:$0xff]  }
  0xc3   :  { %3016 = vset.pattern.permute.xlu1 %v3186_v17  ;;  %v141_v14 = vpop.permute.xlu1 %140  ;;  %v1395_v20 = vpack.c.bf16 %v1335_v34, %v1334_v12  ;;  %v3126_v12 = vld [vmem:[%s4713_s5 + $0x24] ss:$8 sps:$4 sm:$0xff]  }
  0xc4   :  { %950 = vperm.xlu1 %3016, %v3364_v36   ;;  %v1138_v36 = vmul.f32 %v3491_v9, %v3531_v3  ;;  %v426_v23 = vmul.f32 %v3474_v62, %v141_v14  ;;  %2963 = vmatpush1.bf16.msra.mxu1 %v3116_v29  ;;  %v3655_v34 = vld [vmem:[%s4708_s0 + $0x140] sm:$0xff] }
  0xc5   :  { %1595 = vmatmul.mubr.bf16.gmra.mxu0 %v1395_v20  ;;  %2948 = vmatprep.subr.bf16.mxu1 %v3117_v42  ;;  %v3661_v20 = vpop.permute.xlu0 %546 }
  0xc6   :  { %1604 = vmatprep.mubr.bf16.mxu0 %v3184_v2  ;;  %2284 = vmatpush1.bf16.msra.mxu0 %v3116_v29 }
  0xc7   :  { %2285 = vmatprep.subr.bf16.mxu0 %v3117_v42  ;;  %642 = vperm.xlu0 %3042, %v3655_v34   ;;  %v3134_v42 = vld [vmem:[%s4713_s5] ss:$8 sps:$4 sm:$0xff]  }
  0xc8   :  { %3017 = vset.pattern.permute.xlu1 %v3184_v2  ;;  %v519_v22 = vpop.permute.xlu1 %518  ;;  %2964 = vmatpush1.bf16.msra.mxu1 %v3119_v48 }
  0xc9   :  { %v750_v24 = vmul.f32 %v3477_v63, %v519_v22  ;;  %205 = vperm.xlu1 %3017, %v3371_v37   ;;  %2949 = vmatprep.subr.bf16.mxu1 %v3120_v54 }
  0xca   :  { %2286 = vmatpush1.bf16.msra.mxu0 %v3119_v48 }
  0xcb   :  { %v814_v3 = vadd.f32 %v750_v24, %v426_v23  ;;  %2287 = vmatprep.subr.bf16.mxu0 %v3120_v54  ;;  %v3129_v23 = vld [vmem:[%s4713_s5 + $0x14] ss:$8 sps:$4 sm:$0xff]   ;;  %650 = vperm.xlu0 %3042, %v3677_v53  }
  0xcc   :  { %2965 = vmatpush1.bf16.msra.mxu1 %v3122_v1  ;;  %v3709_v54 = vld [vmem:[%s4708_s0 + $0x170] sm:$0xff] }
  0xcd   :  { %v1202_v60 = vadd.f32 %v1138_v36, %v814_v3  ;;  %210 = vperm.xlu1 %3017, %v3416_v44   ;;  %v903_v31 = vpop.permute.xlu1 %902  ;;  %2950 = vmatprep.subr.bf16.mxu1 %v3123_v7  ;;  %v751_v36 = vmul.f32 %v3477_v63, %v523_v30  ;;  %v3685_v30 = vpop.permute.xlu0 %554 }
  0xce   :  { %v1137_v40 = vmul.f32 %v3491_v9, %v903_v31  ;;  %2288 = vmatpush1.bf16.msra.mxu0 %v3122_v1  ;;  %v3693_v31 = vld [vmem:[%s4708_s0 + $0x160] sm:$0xff] }
  0xcf   :  { %v1273_v35 = vadd.f32 %v3506_v19, %v1202_v60  ;;  %2289 = vmatprep.subr.bf16.mxu0 %v3123_v7  ;;  %v3132_v60 = vld [vmem:[%s4713_s5 + $0x4] ss:$8 sps:$4 sm:$0xff]   ;;  %658 = vperm.xlu0 %3042, %v3693_v31  }
  0xd0   :  { %v1201_v49 = vadd.f32 %v1137_v40, %v813_v33  ;;  %2966 = vmatpush1.bf16.msra.mxu1 %v3125_v11  ;;  %v3138_v7 = vld [vmem:[%s4713_s5 + $0xe4] ss:$8 sps:$4 sm:$0xff]  }
  0xd1   :  { %3018 = vset.pattern.permute.xlu1 %v3185_v13  ;;  %v1337_v4 = vmax.f32 %v1273_v35, 0.0  ;;  %2951 = vmatprep.subr.bf16.mxu1 %v3126_v12  ;;  %v3135_v35 = vld [vmem:[%s4713_s5 + $0xf4] ss:$8 sps:$4 sm:$0xff]  }
  0xd2   :  { %v1272_v58 = vadd.f32 %v3506_v19, %v1201_v49  ;;  %574 = vperm.xlu1 %3018, %v3416_v44   ;;  %v146_v0 = vpop.permute.xlu1 %145  ;;  %2290 = vmatpush1.bf16.msra.mxu0 %v3125_v11 }
  0xd3   :  { %v427_v22 = vmul.f32 %v3474_v62, %v146_v0  ;;  %2291 = vmatprep.subr.bf16.mxu0 %v3126_v12  ;;  %666 = vperm.xlu0 %3042, %v3709_v54  }
  0xd4   :  { %v1336_v41 = vmax.f32 %v1272_v58, 0.0  ;;  %v3137_v58 = vld [vmem:[%s4713_s5 + $0xf0] ss:$8 sps:$4 sm:$0xff]  }
  0xd5   :  { %v815_v29 = vadd.f32 %v751_v36, %v427_v22 }
  0xd6   :  { %3019 = vset.pattern.permute.xlu1 %v3186_v17  ;;  %v151_v44 = vpop.permute.xlu1 %150  ;;  %v1396_v8 = vpack.c.bf16 %v1337_v4, %v1336_v41  ;;  %v3714_v41 = vpop.permute.xlu0 %562 }
  0xd7   :  { %958 = vperm.xlu1 %3019, %v3371_v37   ;;  %v3128_v37 = vld [vmem:[%s4713_s5 + $0x20] ss:$8 sps:$4 sm:$0xff]   ;;  %v428_v43 = vmul.f32 %v3474_v62, %v151_v44  ;;  %3056 = vset.pattern.permute.xlu0 %v3186_v17 }
  0xd8   :  { %1605 = vmatmul.mubr.bf16.gmra.mxu0 %v1396_v8  ;;  %2967 = vmatpush1.bf16.msra.mxu1 %v3128_v37  ;;  %v3140_v44 = vld [vmem:[%s4713_s5 + $0xe0] ss:$8 sps:$4 sm:$0xff]   ;;  %v3729_v8 = vld [vmem:[%s4708_s0 + $0x138] sm:$0xff] }
  0xd9   :  { %1614 = vmatprep.mubr.bf16.mxu0 %v3184_v2  ;;  %2952 = vmatprep.subr.bf16.mxu1 %v3129_v23 }
  0xda   :  { %2292 = vmatpush1.bf16.msra.mxu0 %v3128_v37  ;;  %v3732_v11 = vpop.permute.xlu0 %570  ;;  %1026 = vperm.xlu0 %3056, %v3729_v8   ;;  %v3143_v37 = vld [vmem:[%s4713_s5 + $0xd0] ss:$8 sps:$4 sm:$0xff]  }
  0xdb   :  { %3020 = vset.pattern.permute.xlu1 %v3184_v2  ;;  %v527_v14 = vpop.permute.xlu1 %526  ;;  %2293 = vmatprep.subr.bf16.mxu0 %v3129_v23  ;;  %v3144_v23 = vld [vmem:[%s4713_s5 + $0xc4] ss:$8 sps:$4 sm:$0xff]  }
  0xdc   :  { %v752_v59 = vmul.f32 %v3477_v63, %v527_v14  ;;  %215 = vperm.xlu1 %3020, %v3378_v38   ;;  %2968 = vmatpush1.bf16.msra.mxu1 %v3131_v25  ;;  %v1142_v14 = vmul.f32 %v3491_v9, %v3543_v15  ;;  %v3146_v15 = vld [vmem:[%s4713_s5 + $0xc0] ss:$8 sps:$4 sm:$0xff]  }
  0xdd   :  { %2953 = vmatprep.subr.bf16.mxu1 %v3132_v60 }
  0xde   :  { %v816_v24 = vadd.f32 %v752_v59, %v428_v43  ;;  %2294 = vmatpush1.bf16.msra.mxu0 %v3131_v25  ;;  %v753_v59 = vmul.f32 %v3477_v63, %v3620_v50 }
  0xdf   :  { %2295 = vmatprep.subr.bf16.mxu0 %v3132_v60 }
  0xe0   :  { %v1204_v27 = vadd.f32 %v1140_v21, %v816_v24  ;;  %220 = vperm.xlu1 %3020, %v3424_v45   ;;  %v911_v28 = vpop.permute.xlu1 %910  ;;  %2969 = vmatpush1.bf16.msra.mxu1 %v3134_v42 }
  0xe1   :  { %v1139_v3 = vmul.f32 %v3491_v9, %v911_v28  ;;  %2954 = vmatprep.subr.bf16.mxu1 %v3135_v35 }
  0xe2   :  { %v1275_v40 = vadd.f32 %v3506_v19, %v1204_v27  ;;  %2296 = vmatpush1.bf16.msra.mxu0 %v3134_v42  ;;  %v3757_v27 = vpop.permute.xlu0 %578  ;;  %v3149_v42 = vld [vmem:[%s4713_s5 + $0xb0] ss:$8 sps:$4 sm:$0xff]  }
  0xe3   :  { %v1203_v33 = vadd.f32 %v1139_v3, %v815_v29  ;;  %2297 = vmatprep.subr.bf16.mxu0 %v3135_v35  ;;  %v3147_v29 = vld [vmem:[%s4713_s5 + $0xb4] ss:$8 sps:$4 sm:$0xff]   ;;  %v3150_v35 = vld [vmem:[%s4713_s5 + $0xa4] ss:$8 sps:$4 sm:$0xff]  }
  0xe4   :  { %3021 = vset.pattern.permute.xlu1 %v3185_v13  ;;  %v1339_v1 = vmax.f32 %v1275_v40, 0.0  ;;  %2970 = vmatpush2.bf16.msra.mxu1 %v3137_v58 }
  0xe5   :  { %v1274_v48 = vadd.f32 %v3506_v19, %v1203_v33  ;;  %582 = vperm.xlu1 %3021, %v3424_v45   ;;  %v156_v49 = vpop.permute.xlu1 %155  ;;  %2955 = vmatprep.subr.bf16.mxu1 %v3138_v7  ;;  %v3771_v33 = vld [vmem:[%s4708_s0 + $0x148] sm:$0xff] }
  0xe6   :  { %v429_v22 = vmul.f32 %v3474_v62, %v156_v49  ;;  %2298 = vmatpush2.bf16.msra.mxu0 %v3137_v58  ;;  %1034 = vperm.xlu0 %3056, %v3771_v33   ;;  %v3776_v49 = vpop.permute.xlu0 %586 }
  0xe7   :  { %v1338_v0 = vmax.f32 %v1274_v48, 0.0  ;;  %2299 = vmatprep.subr.bf16.mxu0 %v3138_v7  ;;  %v3155_v7 = vld [vmem:[%s4713_s5 + $0x90] ss:$8 sps:$4 sm:$0xff]  }
  0xe8   :  { %2971 = vmatpush2.bf16.msra.mxu1 %v3140_v44  ;;  %v817_v50 = vadd.f32 %v753_v59, %v429_v22 }
  0xe9   :  { %3022 = vset.pattern.permute.xlu1 %v3186_v17  ;;  %v161_v45 = vpop.permute.xlu1 %160  ;;  %v1397_v4 = vpack.c.bf16 %v1339_v1, %v1338_v0  ;;  %v3152_v1 = vld [vmem:[%s4713_s5 + $0xa0] ss:$8 sps:$4 sm:$0xff]  }
  0xea   :  { %966 = vperm.xlu1 %3022, %v3378_v38   ;;  %v3141_v38 = vld [vmem:[%s4713_s5 + $0xd4] ss:$8 sps:$4 sm:$0xff]   ;;  %v430_v21 = vmul.f32 %v3474_v62, %v161_v45  ;;  %2300 = vmatpush2.bf16.msra.mxu0 %v3140_v44  ;;  %v931_v44 = vpop.permute.xlu0 %930 }
  0xeb   :  { %1615 = vmatmul.mubr.bf16.gmra.mxu0 %v1397_v4  ;;  %2956 = vmatprep.subr.bf16.mxu1 %v3141_v38  ;;  %v3153_v4 = vld [vmem:[%s4713_s5 + $0x94] ss:$8 sps:$4 sm:$0xff]  }
  0xec   :  { %1624 = vmatprep.mubr.bf16.mxu0 %v3184_v2  ;;  %2972 = vmatpush2.bf16.msra.mxu1 %v3143_v37 }
  0xed   :  { %2957 = vmatprep.subr.bf16.mxu1 %v3144_v23  ;;  %2301 = vmatprep.subr.bf16.mxu0 %v3141_v38 }
  0xee   :  { %3023 = vset.pattern.permute.xlu1 %v3184_v2  ;;  %v535_v12 = vpop.permute.xlu1 %534  ;;  %2302 = vmatpush2.bf16.msra.mxu0 %v3143_v37 }
  0xef   :  { %v754_v43 = vmul.f32 %v3477_v63, %v535_v12  ;;  %225 = vperm.xlu1 %3023, %v3384_v39   ;;  %2303 = vmatprep.subr.bf16.mxu0 %v3144_v23 }
  0xf0   :  { %2973 = vmatpush2.bf16.msra.mxu1 %v3146_v15 }
  0xf1   :  { %v818_v36 = vadd.f32 %v754_v43, %v430_v21  ;;  %2958 = vmatprep.subr.bf16.mxu1 %v3147_v29  ;;  %v3158_v21 = vld [vmem:[%s4713_s5 + $0x80] ss:$8 sps:$4 sm:$0xff]   ;;  %v755_v43 = vmul.f32 %v3477_v63, %v3632_v5  ;;  %v3814_v5 = vld [vmem:[%s4708_s0 + $0x158] sm:$0xff] }
  0xf2   :  { %2304 = vmatpush2.bf16.msra.mxu0 %v3146_v15  ;;  %1042 = vperm.xlu0 %3056, %v3814_v5  }
  0xf3   :  { %v1206_v24 = vadd.f32 %v1142_v14, %v818_v36  ;;  %230 = vperm.xlu1 %3023, %v3431_v46   ;;  %v919_v25 = vpop.permute.xlu1 %918  ;;  %v1144_v14 = vmul.f32 %v3491_v9, %v931_v44  ;;  %2305 = vmatprep.subr.bf16.mxu0 %v3147_v29 }
  0xf4   :  { %v1141_v28 = vmul.f32 %v3491_v9, %v919_v25  ;;  %2974 = vmatpush2.bf16.msra.mxu1 %v3149_v42 }
  0xf5   :  { %v1277_v60 = vadd.f32 %v3506_v19, %v1206_v24  ;;  %2959 = vmatprep.subr.bf16.mxu1 %v3150_v35 }
  0xf6   :  { %v1205_v3 = vadd.f32 %v1141_v28, %v817_v50  ;;  %2306 = vmatpush2.bf16.msra.mxu0 %v3149_v42 }
  0xf7   :  { %3025 = vset.pattern.permute.xlu1 %v3185_v13  ;;  %v1341_v0 = vmax.f32 %v1277_v60, 0.0  ;;  %2307 = vmatprep.subr.bf16.mxu0 %v3150_v35 }
  0xf8   :  { %v1276_v40 = vadd.f32 %v3506_v19, %v1205_v3  ;;  %590 = vperm.xlu1 %3025, %v3431_v46   ;;  %v166_v48 = vpop.permute.xlu1 %165  ;;  %2975 = vmatpush2.bf16.msra.mxu1 %v3152_v1 }
  0xf9   :  { %2960 = vmatprep.subr.bf16.mxu1 %v3153_v4  ;;  %v431_v59 = vmul.f32 %v3474_v62, %v166_v48  ;;  %v939_v48 = vpop.permute.xlu0 %938 }
  0xfa   :  { %v1340_v58 = vmax.f32 %v1276_v40, 0.0  ;;  %2308 = vmatpush2.bf16.msra.mxu0 %v3152_v1  ;;  %v757_v1 = vmul.f32 %v3477_v63, %v3661_v20 }
  0xfb   :  { %v819_v15 = vadd.f32 %v755_v43, %v431_v59  ;;  %2309 = vmatprep.subr.bf16.mxu0 %v3153_v4 }
  0xfc   :  { %3026 = vset.pattern.permute.xlu1 %v3186_v17  ;;  %v171_v46 = vpop.permute.xlu1 %170  ;;  %v1398_v45 = vpack.c.bf16 %v1341_v0, %v1340_v58  ;;  %2976 = vmatpush2.bf16.msra.mxu1 %v3155_v7  ;;  %v1146_v0 = vmul.f32 %v3491_v9, %v939_v48 }
  0xfd   :  { %974 = vperm.xlu1 %3026, %v3384_v39   ;;  %v3156_v39 = vld [vmem:[%s4713_s5 + $0x84] ss:$8 sps:$4 sm:$0xff]   ;;  %v432_v12 = vmul.f32 %v3474_v62, %v171_v46 }
  0xfe   :  { %1625 = vmatmul.mubr.bf16.gmra.mxu0 %v1398_v45  ;;  %2961 = vmatprep.subr.bf16.mxu1 %v3156_v39 }
  0xff   :  { %1634 = vmatprep.mubr.bf16.mxu0 %v3184_v2  ;;  %2310 = vmatpush2.bf16.msra.mxu0 %v3155_v7 }
 0x100   :  { %2977 = vmatpush2.bf16.msra.mxu1 %v3158_v21  ;;  %2311 = vmatprep.subr.bf16.mxu0 %v3156_v39 }
 0x101   :  { %3027 = vset.pattern.permute.xlu1 %v3184_v2  ;;  %v543_v38 = vpop.permute.xlu1 %542 }
 0x102   :  { %v756_v37 = vmul.f32 %v3477_v63, %v543_v38  ;;  %235 = vperm.xlu1 %3027, %v3501_v18  }
 0x103   :  { %2312 = vmatpush2.bf16.msra.mxu0 %v3158_v21 }
 0x104   :  { %v820_v22 = vadd.f32 %v756_v37, %v432_v12  ;;  %v3837_v12 = vld [vmem:[%s4708_s0 + $0x168] sm:$0xff] }
 0x105   :  { %1050 = vperm.xlu0 %3056, %v3837_v12  }
 0x106   :  { %v1208_v36 = vadd.f32 %v1144_v14, %v820_v22  ;;  %240 = vperm.xlu1 %3027, %v3437_v47   ;;  %v927_v23 = vpop.permute.xlu1 %926  ;;  %v947_v22 = vpop.permute.xlu0 %946 }
 0x107   :  { %v1143_v24 = vmul.f32 %v3491_v9, %v927_v23 }
 0x108   :  { %v1279_v25 = vadd.f32 %v3506_v19, %v1208_v36 }
 0x109   :  { %v1207_v50 = vadd.f32 %v1143_v24, %v819_v15  ;;  %v1148_v15 = vmul.f32 %v3491_v9, %v947_v22  ;;  %v759_v24 = vmul.f32 %v3477_v63, %v3685_v30 }
 0x10a   :  { %3028 = vset.pattern.permute.xlu1 %v3185_v13  ;;  %v1343_v3 = vmax.f32 %v1279_v25, 0.0 }
 0x10b   :  { %v1278_v28 = vadd.f32 %v3506_v19, %v1207_v50  ;;  %598 = vperm.xlu1 %3028, %v3437_v47   ;;  %v176_v29 = vpop.permute.xlu1 %175 }
 0x10d   :  { %v1342_v60 = vmax.f32 %v1278_v28, 0.0 }
 0x10f   :  { %3029 = vset.pattern.permute.xlu1 %v3186_v17  ;;  %v181_v42 = vpop.permute.xlu1 %180  ;;  %v1399_v40 = vpack.c.bf16 %v1343_v3, %v1342_v60  ;;  %v3858_v60 = vld [vmem:[%s4708_s0 + $0x178] sm:$0xff] }
 0x110   :  { %982 = vperm.xlu1 %3029, %v3501_v18   ;;  %v434_v35 = vmul.f32 %v3474_v62, %v181_v42  ;;  %v433_v18 = vmul.f32 %v3474_v62, %v176_v29  ;;  %1058 = vperm.xlu0 %3056, %v3858_v60  }
 0x111   :  { %1635 = vmatmul.mubr.bf16.gmra.mxu0 %v1399_v40 }
 0x112   :  { %1644 = vmatprep.mubr.bf16.mxu0 %v3184_v2  ;;  %v821_v7 = vadd.f32 %v757_v1, %v433_v18  ;;  %v955_v18 = vpop.permute.xlu0 %954 }
 0x114   :  { %3030 = vset.pattern.permute.xlu1 %v3184_v2  ;;  %v551_v47 = vpop.permute.xlu1 %550 }
 0x115   :  { %v758_v58 = vmul.f32 %v3477_v63, %v551_v47  ;;  %245 = vperm.xlu1 %3030, %v3516_v26   ;;  %v3868_v47 = vld [vmem:[%s4708_s0 + $0x188] sm:$0xff] }
 0x116   :  { %1066 = vperm.xlu0 %3056, %v3868_v47  }
 0x117   :  { %v822_v46 = vadd.f32 %v758_v58, %v434_v35 }
 0x119   :  { %v1210_v45 = vadd.f32 %v1146_v0, %v822_v46  ;;  %250 = vperm.xlu1 %3030, %v3445_v51   ;;  %v935_v4 = vpop.permute.xlu1 %934 }
 0x11a   :  { %v1145_v44 = vmul.f32 %v3491_v9, %v935_v4 }
 0x11b   :  { %v1281_v38 = vadd.f32 %v3506_v19, %v1210_v45  ;;  %v3884_v45 = vld [vmem:[%s4708_s0 + $0x1a8] sm:$0xff] }
 0x11c   :  { %v1209_v39 = vadd.f32 %v1145_v44, %v821_v7  ;;  %v1150_v7 = vmul.f32 %v3491_v9, %v955_v18  ;;  %v761_v44 = vmul.f32 %v3477_v63, %v3714_v41 }
 0x11d   :  { %3031 = vset.pattern.permute.xlu1 %v3185_v13  ;;  %v1345_v14 = vmax.f32 %v1281_v38, 0.0 }
 0x11e   :  { %v1280_v20 = vadd.f32 %v3506_v19, %v1209_v39  ;;  %606 = vperm.xlu1 %3031, %v3445_v51   ;;  %v186_v37 = vpop.permute.xlu1 %185 }
 0x120   :  { %v1344_v21 = vmax.f32 %v1280_v20, 0.0 }
 0x122   :  { %3032 = vset.pattern.permute.xlu1 %v3186_v17  ;;  %v191_v43 = vpop.permute.xlu1 %190  ;;  %v1400_v59 = vpack.c.bf16 %v1345_v14, %v1344_v21  ;;  %v3899_v14 = vld [vmem:[%s4708_s0 + $0x180] sm:$0xff] }
 0x123   :  { %990 = vperm.xlu1 %3032, %v3516_v26   ;;  %v436_v51 = vmul.f32 %v3474_v62, %v191_v43  ;;  %v435_v26 = vmul.f32 %v3474_v62, %v186_v37 }
 0x124   :  { %1645 = vmatmul.mubr.bf16.gmra.mxu0 %v1400_v59 }
 0x125   :  { %1654 = vmatprep.mubr.bf16.mxu0 %v3184_v2  ;;  %v823_v29 = vadd.f32 %v759_v24, %v435_v26  ;;  %v963_v26 = vpop.permute.xlu0 %962 }
 0x127   :  { %3033 = vset.pattern.permute.xlu1 %v3184_v2  ;;  %v559_v36 = vpop.permute.xlu1 %558 }
 0x128   :  { %v760_v23 = vmul.f32 %v3477_v63, %v559_v36  ;;  %255 = vperm.xlu1 %3033, %v3548_v16  }
 0x12a   :  { %v824_v25 = vadd.f32 %v760_v23, %v436_v51 }
 0x12c   :  { %v1212_v50 = vadd.f32 %v1148_v15, %v824_v25  ;;  %260 = vperm.xlu1 %3033, %v3453_v55   ;;  %v943_v28 = vpop.permute.xlu1 %942 }
 0x12d   :  { %v1147_v3 = vmul.f32 %v3491_v9, %v943_v28  ;;  %v1152_v28 = vmul.f32 %v3491_v9, %v963_v26 }
 0x12e   :  { %v1283_v42 = vadd.f32 %v3506_v19, %v1212_v50 }
 0x12f   :  { %v1211_v40 = vadd.f32 %v1147_v3, %v823_v29  ;;  %v763_v29 = vmul.f32 %v3477_v63, %v3732_v11 }
 0x130   :  { %3034 = vset.pattern.permute.xlu1 %v3185_v13  ;;  %v1347_v35 = vmax.f32 %v1283_v42, 0.0 }
 0x131   :  { %v1282_v30 = vadd.f32 %v3506_v19, %v1211_v40  ;;  %614 = vperm.xlu1 %3034, %v3453_v55   ;;  %v196_v48 = vpop.permute.xlu1 %195  ;;  %v3876_v55 = vld [vmem:[%s4708_s0 + $0x198] sm:$0xff] }
 0x132   :  { %1074 = vperm.xlu0 %3056, %v3876_v55   ;;  %v437_v38 = vmul.f32 %v3474_v62, %v196_v48 }
 0x133   :  { %v1346_v58 = vmax.f32 %v1282_v30, 0.0  ;;  %v3922_v30 = vld [vmem:[%s4708_s0 + $0x190] sm:$0xff] }
 0x134   :  { %v825_v21 = vadd.f32 %v761_v44, %v437_v38 }
 0x135   :  { %3035 = vset.pattern.permute.xlu1 %v3186_v17  ;;  %v201_v0 = vpop.permute.xlu1 %200  ;;  %v1401_v1 = vpack.c.bf16 %v1347_v35, %v1346_v58 }
 0x136   :  { %998 = vperm.xlu1 %3035, %v3548_v16   ;;  %v438_v16 = vmul.f32 %v3474_v62, %v201_v0  ;;  %1082 = vperm.xlu0 %3056, %v3884_v45   ;;  %v3931_v0 = vld [vmem:[%s4712_s4] sm:$0x3] }
 0x137   :  { %1655 = vmatmul.mubr.bf16.gmra.mxu0 %v1401_v1 }
 0x138   :  { %1664 = vmatprep.mubr.bf16.mxu0 %v3184_v2 }
 0x13a   :  { %3036 = vset.pattern.permute.xlu1 %v3184_v2  ;;  %v567_v46 = vpop.permute.xlu1 %566  ;;  %3068 = vset.pattern.permute.xlu0 %v3185_v13 }
 0x13b   :  { %v762_v4 = vmul.f32 %v3477_v63, %v567_v46  ;;  %265 = vperm.xlu1 %3036, %v3575_v52   ;;  %674 = vperm.xlu0 %3068, %v3899_v14  }
 0x13d   :  { %v826_v39 = vadd.f32 %v762_v4, %v438_v16  ;;  %v3937_v16 = vrot.slane %v3931_v0, %v3455_v56 }
 0x13f   :  { %v1214_v20 = vadd.f32 %v1150_v7, %v826_v39  ;;  %270 = vperm.xlu1 %3036, %v3471_v61   ;;  %v951_v37 = vpop.permute.xlu1 %950  ;;  %682 = vperm.xlu0 %3068, %v3922_v30   ;;  %v971_v39 = vpop.permute.xlu0 %970 }
 0x140   :  { %v1149_v43 = vmul.f32 %v3491_v9, %v951_v37 }
 0x141   :  { %v1285_v41 = vadd.f32 %v3506_v19, %v1214_v20 }
 0x142   :  { %v1213_v59 = vadd.f32 %v1149_v43, %v825_v21 }
 0x143   :  { %3037 = vset.pattern.permute.xlu1 %v3185_v13  ;;  %v1349_v51 = vmax.f32 %v1285_v41, 0.0  ;;  %v1154_v41 = vmul.f32 %v3491_v9, %v971_v39 }
 0x144   :  { %v1284_v22 = vadd.f32 %v3506_v19, %v1213_v59  ;;  %622 = vperm.xlu1 %3037, %v3471_v61   ;;  %v206_v36 = vpop.permute.xlu1 %205 }
 0x146   :  { %v1348_v23 = vmax.f32 %v1284_v22, 0.0 }
 0x148   :  { %3038 = vset.pattern.permute.xlu1 %v3186_v17  ;;  %v211_v15 = vpop.permute.xlu1 %210  ;;  %v1402_v24 = vpack.c.bf16 %v1349_v51, %v1348_v23  ;;  %v979_v51 = vpop.permute.xlu0 %978  ;;  %v765_v23 = vmul.f32 %v3477_v63, %v3757_v27 }
 0x149   :  { %1006 = vperm.xlu1 %3038, %v3575_v52   ;;  %v440_v50 = vmul.f32 %v3474_v62, %v211_v15  ;;  %v439_v52 = vmul.f32 %v3474_v62, %v206_v36 }
 0x14a   :  { %1665 = vmatmul.mubr.bf16.gmra.mxu0 %v1402_v24 }
 0x14b   :  { %1674 = vmatprep.mubr.bf16.mxu0 %v3184_v2  ;;  %v827_v48 = vadd.f32 %v763_v29, %v439_v52 }
 0x14c   :  { %v3966_v27 = vpop.permute.xlu0 %986 }
 0x14d   :  { %3039 = vset.pattern.permute.xlu1 %v3184_v2  ;;  %v575_v25 = vpop.permute.xlu1 %574 }
 0x14e   :  { %v764_v61 = vmul.f32 %v3477_v63, %v575_v25  ;;  %275 = vperm.xlu1 %3039, %v3610_v32  }
 0x150   :  { %v828_v3 = vadd.f32 %v764_v61, %v440_v50  ;;  %v3960_v61 = vld [vmem:[%s4708_s0 + $0x1a0] sm:$0xff] }
 0x151   :  { %690 = vperm.xlu0 %3068, %v3960_v61  }
 0x152   :  { %v1216_v42 = vadd.f32 %v1152_v28, %v828_v3  ;;  %280 = vperm.xlu1 %3039, %v3487_v6   ;;  %v959_v40 = vpop.permute.xlu1 %958 }
 0x153   :  { %v1151_v35 = vmul.f32 %v3491_v9, %v959_v40 }
 0x154   :  { %v1287_v58 = vadd.f32 %v3506_v19, %v1216_v42 }
 0x155   :  { %v1215_v11 = vadd.f32 %v1151_v35, %v827_v48 }
 0x156   :  { %3040 = vset.pattern.permute.xlu1 %v3185_v13  ;;  %v1351_v46 = vmax.f32 %v1287_v58, 0.0 }
 0x157   :  { %v1286_v1 = vadd.f32 %v3506_v19, %v1215_v11  ;;  %630 = vperm.xlu1 %3040, %v3487_v6   ;;  %v216_v18 = vpop.permute.xlu1 %215 }
 0x158   :  { %v441_v15 = vmul.f32 %v3474_v62, %v216_v18 }
 0x159   :  { %v1350_v4 = vmax.f32 %v1286_v1, 0.0 }
 0x15a   :  { %v1566_v7 = vpop.f32.mrf.mxu0  ;;  %v829_v28 = vadd.f32 %v765_v23, %v441_v15 }
 0x15b   :  { %3041 = vset.pattern.permute.xlu1 %v3186_v17  ;;  %v221_v44 = vpop.permute.xlu1 %220  ;;  %v1403_v38 = vpack.c.bf16 %v1351_v46, %v1350_v4  ;;  %v1567_v37 = vadd.f32 %v1566_v7, %v3937_v16  ;;  %v3976_v7 = vpop.permute.xlu0 %994 }
 0x15c   :  { %1014 = vperm.xlu1 %3041, %v3610_v32   ;;  %v3941_v20 = vpop.f32.mrf.mxu0  ;;  %v442_v22 = vmul.f32 %v3474_v62, %v221_v44 }
 0x15d   :  { %1675 = vmatmul.mubr.bf16.gmra.mxu0 %v1403_v38  ;;  %v1885_v59 = vmax.f32 %v1567_v37, 0.0 }
 0x15e   :  { %v1570_v6 = vpop.f32.mrf.mxu0  ;;  %1684 = vmatprep.mubr.bf16.mxu0 %v3184_v2 }
 0x15f   :  { %v1571_v21 = vadd.f32 %v1570_v6, %v3937_v16  ;;  %v3983_v37 = vpop.permute.xlu0 %1002 }
 0x160   :  { %3043 = vset.pattern.permute.xlu1 %v3184_v2  ;;  %v583_v43 = vpop.permute.xlu1 %582  ;;  %v3962_v29 = vpop.f32.mrf.mxu0 }
 0x161   :  { %v1887_v36 = vmax.f32 %v1571_v21, 0.0  ;;  %v766_v32 = vmul.f32 %v3477_v63, %v583_v43  ;;  %285 = vperm.xlu1 %3043, %v3641_v10   ;;  %v1156_v21 = vmul.f32 %v3491_v9, %v979_v51 }
 0x163   :  { %v3954_v24 = vpack.c.bf16 %v1887_v36, %v1885_v59  ;;  %v830_v26 = vadd.f32 %v766_v32, %v442_v22  ;;  %v3996_v22 = vld [vmem:[%s4708_s0 + $0x1b0] sm:$0xff] }
 0x164   :  { %698 = vperm.xlu0 %3068, %v3996_v22  }
 0x165   :  { %v1218_v25 = vadd.f32 %v1154_v41, %v830_v26  ;;  %290 = vperm.xlu1 %3043, %v3729_v8   ;;  %v967_v50 = vpop.permute.xlu1 %966  ;;  %v4002_v26 = vpop.permute.xlu0 %1010 }
 0x166   :  { %v1153_v52 = vmul.f32 %v3491_v9, %v967_v50  ;;  %v4008_v50 = vld [vmem:[%s4708_s0 + $0x1c0] sm:$0xff] }
 0x167   :  { %v1289_v3 = vadd.f32 %v3506_v19, %v1218_v25 }
 0x168   :  { %v1217_v42 = vadd.f32 %v1153_v52, %v829_v28  ;;  %v1576_v40 = vpop.f32.mrf.mxu0  ;;  %706 = vperm.xlu0 %3068, %v4008_v50  }
 0x169   :  { %3044 = vset.pattern.permute.xlu1 %v3185_v13  ;;  %v1577_v11 = vadd.f32 %v1576_v40, %v3937_v16  ;;  %v1353_v1 = vmax.f32 %v1289_v3, 0.0  ;;  %v4013_v3 = vld [vmem:[%s4710_s2] ss:$0 sm:$0xff]  ;;  %v4019_v40 = vrot.slane %v3931_v0, %v3457_v57 }
 0x16a   :  { %v1288_v48 = vadd.f32 %v3506_v19, %v1217_v42  ;;  %638 = vperm.xlu1 %3044, %v3729_v8   ;;  %v226_v35 = vpop.permute.xlu1 %225  ;;  %v3972_v58 = vpop.f32.mrf.mxu0 }
 0x16b   :  { %v1889_v39 = vmax.f32 %v1577_v11, 0.0  ;;  %v443_v59 = vmul.f32 %v3474_v62, %v226_v35 }
 0x16c   :  { %v1580_v18 = vpop.f32.mrf.mxu0  ;;  %v1352_v46 = vmax.f32 %v1288_v48, 0.0 }
 0x16d   :  { %v1581_v4 = vadd.f32 %v1580_v18, %v3937_v16 }
 0x16e   :  { %3045 = vset.pattern.permute.xlu1 %v3186_v17  ;;  %v231_v44 = vpop.permute.xlu1 %230  ;;  %v1404_v38 = vpack.c.bf16 %v1353_v1, %v1352_v46  ;;  %v3999_v32 = vpop.f32.mrf.mxu0  ;;  %v4029_v46 = vld [vmem:[%s4708_s0 + $0x1d0] sm:$0xff] }
 0x16f   :  { %v1891_v19 = vmax.f32 %v1581_v4, 0.0  ;;  %1022 = vperm.xlu1 %3045, %v3641_v10   ;;  %v444_v43 = vmul.f32 %v3474_v62, %v231_v44  ;;  %v767_v10 = vmul.f32 %v3477_v63, %v3776_v49  ;;  %v4032_v4 = vpop.permute.xlu0 %1018  ;;  %714 = vperm.xlu0 %3068, %v4029_v46  }
 0x170   :  { %1685 = vmatmul.mubr.bf16.gmra.mxu0 %v1404_v38 }
 0x171   :  { %v3980_v8 = vpack.c.bf16 %v1891_v19, %v1889_v39  ;;  %1694 = vmatprep.mubr.bf16.mxu0 %v3184_v2  ;;  %v831_v15 = vadd.f32 %v767_v10, %v443_v59  ;;  %v4041_v59 = vld [vmem:[%s4708_s0 + $0x1b8] sm:$0xff] }
 0x173   :  { %3046 = vset.pattern.permute.xlu1 %v3184_v2  ;;  %v591_v6 = vpop.permute.xlu1 %590  ;;  %3076 = vset.pattern.permute.xlu0 %v3186_v17 }
 0x174   :  { %v768_v41 = vmul.f32 %v3477_v63, %v591_v6  ;;  %295 = vperm.xlu1 %3046, %v3655_v34   ;;  %1090 = vperm.xlu0 %3076, %v4041_v59  }
 0x176   :  { %v832_v36 = vadd.f32 %v768_v41, %v444_v43 }
 0x178   :  { %v1220_v51 = vadd.f32 %v1156_v21, %v832_v36  ;;  %300 = vperm.xlu1 %3046, %v3771_v33   ;;  %v975_v23 = vpop.permute.xlu1 %974 }
 0x179   :  { %v1155_v49 = vmul.f32 %v3491_v9, %v975_v23  ;;  %v1586_v25 = vpop.f32.mrf.mxu0  ;;  %v595_v23 = vpop.permute.xlu0 %594 }
 0x17a   :  { %v1291_v42 = vadd.f32 %v4013_v3, %v1220_v51  ;;  %v1587_v0 = vadd.f32 %v1586_v25, %v3937_v16 }
 0x17b   :  { %v1219_v28 = vadd.f32 %v1155_v49, %v831_v15  ;;  %v1588_v52 = vpop.f32.mrf.mxu0  ;;  %v1158_v49 = vmul.f32 %v3491_v9, %v3966_v27 }
 0x17c   :  { %3047 = vset.pattern.permute.xlu1 %v3185_v13  ;;  %v1589_v1 = vadd.f32 %v1588_v52, %v4019_v40  ;;  %v1355_v39 = vmax.f32 %v1291_v42, 0.0  ;;  %v1893_v10 = vmax.f32 %v1587_v0, 0.0 }
 0x17d   :  { %v1290_v48 = vadd.f32 %v4013_v3, %v1219_v28  ;;  %646 = vperm.xlu1 %3047, %v3771_v33   ;;  %v236_v35 = vpop.permute.xlu1 %235  ;;  %v1590_v11 = vpop.f32.mrf.mxu0 }
 0x17e   :  { %v1591_v18 = vadd.f32 %v1590_v11, %v3937_v16  ;;  %v1894_v43 = vmax.f32 %v1589_v1, 0.0  ;;  %v445_v42 = vmul.f32 %v3474_v62, %v236_v35 }
 0x17f   :  { %v1592_v44 = vpop.f32.mrf.mxu0  ;;  %v1354_v38 = vmax.f32 %v1290_v48, 0.0  ;;  %v769_v48 = vmul.f32 %v3477_v63, %v595_v23 }
 0x180   :  { %v1593_v33 = vadd.f32 %v1592_v44, %v4019_v40  ;;  %v1895_v19 = vmax.f32 %v1591_v18, 0.0 }
 0x181   :  { %3048 = vset.pattern.permute.xlu1 %v3186_v17  ;;  %v241_v6 = vpop.permute.xlu1 %240  ;;  %v1405_v21 = vpack.c.bf16 %v1355_v39, %v1354_v38 }
 0x182   :  { %1030 = vperm.xlu1 %3048, %v3655_v34   ;;  %v1896_v41 = vmax.f32 %v1593_v33, 0.0  ;;  %v2017_v51 = vpack.c.bf16 %v1895_v19, %v1893_v10  ;;  %v446_v25 = vmul.f32 %v3474_v62, %v241_v6  ;;  %v833_v33 = vadd.f32 %v769_v48, %v445_v42  ;;  %v603_v48 = vpop.permute.xlu0 %602 }
 0x183   :  { %1695 = vmatmul.mubr.bf16.gmra.mxu0 %v1405_v21 }
 0x184   :  { %v2018_v36 = vpack.c.bf16 %v1896_v41, %v1894_v43  ;;  %1704 = vmatprep.mubr.bf16.mxu0 %v3184_v2 }
 0x185   :  { %v1596_v15 = vpop.f32.mrf.mxu0 }
 0x186   :  { %3049 = vset.pattern.permute.xlu1 %v3184_v2  ;;  %v599_v34 = vpop.permute.xlu1 %598  ;;  %2333 = vmatprep.mubr.bf16.mxu1 %v2018_v36  ;;  %v1597_v27 = vadd.f32 %v1596_v15, %v3937_v16 }
 0x187   :  { %v770_v28 = vmul.f32 %v3477_v63, %v599_v34  ;;  %305 = vperm.xlu1 %3049, %v3677_v53   ;;  %v1598_v52 = vpop.f32.mrf.mxu0  ;;  %2334 = vmatmul.mubr.bf16.vlgmr.msra.gmra.mxu1 %v2017_v51  ;;  %v4065_v51 = vld [vmem:[%s4708_s0 + $0x1c8] sm:$0xff] }
 0x188   :  { %v1599_v18 = vadd.f32 %v1598_v52, %v4019_v40  ;;  %v1897_v36 = vmax.f32 %v1597_v27, 0.0  ;;  %1098 = vperm.xlu0 %3076, %v4065_v51  }
 0x189   :  { %v834_v11 = vadd.f32 %v770_v28, %v446_v25  ;;  %v1600_v1 = vpop.f32.mrf.mxu0 }
 0x18a   :  { %v1601_v0 = vadd.f32 %v1600_v1, %v3937_v16  ;;  %v1898_v21 = vmax.f32 %v1599_v18, 0.0  ;;  %v1160_v1 = vmul.f32 %v3491_v9, %v3976_v7 }
 0x18b   :  { %v1222_v44 = vadd.f32 %v1158_v49, %v834_v11  ;;  %310 = vperm.xlu1 %3049, %v3814_v5   ;;  %v983_v38 = vpop.permute.xlu1 %982  ;;  %v1602_v39 = vpop.f32.mrf.mxu0 }
 0x18c   :  { %v1157_v19 = vmul.f32 %v3491_v9, %v983_v38  ;;  %v1603_v35 = vadd.f32 %v1602_v39, %v4019_v40  ;;  %v1899_v6 = vmax.f32 %v1601_v0, 0.0 }
 0x18d   :  { %v1293_v10 = vadd.f32 %v4013_v3, %v1222_v44  ;;  %v771_v44 = vmul.f32 %v3477_v63, %v603_v48 }
 0x18e   :  { %v1221_v43 = vadd.f32 %v1157_v19, %v833_v33  ;;  %v1900_v41 = vmax.f32 %v1603_v35, 0.0  ;;  %v2019_v49 = vpack.c.bf16 %v1899_v6, %v1897_v36 }
 0x18f   :  { %3050 = vset.pattern.permute.xlu1 %v3185_v13  ;;  %v1357_v28 = vmax.f32 %v1293_v10, 0.0 }
 0x190   :  { %v1292_v23 = vadd.f32 %v4013_v3, %v1221_v43  ;;  %654 = vperm.xlu1 %3050, %v3814_v5   ;;  %v246_v15 = vpop.permute.xlu1 %245  ;;  %v2020_v34 = vpack.c.bf16 %v1900_v41, %v1898_v21 }
 0x192   :  { %2343 = vmatprep.mubr.bf16.mxu1 %v2020_v34  ;;  %v1356_v25 = vmax.f32 %v1292_v23, 0.0 }
 0x193   :  { %2344 = vmatmul.mubr.bf16.gmra.mxu1 %v2019_v49 }
 0x194   :  { %3051 = vset.pattern.permute.xlu1 %v3186_v17  ;;  %v251_v52 = vpop.permute.xlu1 %250  ;;  %v1406_v42 = vpack.c.bf16 %v1357_v28, %v1356_v25  ;;  %v4092_v28 = vld [vmem:[%s4708_s0 + $0x1d8] sm:$0xff] }
 0x195   :  { %1038 = vperm.xlu1 %3051, %v3677_v53   ;;  %v448_v18 = vmul.f32 %v3474_v62, %v251_v52  ;;  %v447_v53 = vmul.f32 %v3474_v62, %v246_v15  ;;  %1106 = vperm.xlu0 %3076, %v4092_v28  }
 0x196   :  { %1705 = vmatmul.mubr.bf16.gmra.mxu0 %v1406_v42 }
 0x197   :  { %1714 = vmatprep.mubr.bf16.mxu0 %v3184_v2  ;;  %v835_v43 = vadd.f32 %v771_v44, %v447_v53  ;;  %v4104_v44 = vld [vmem:[%s4708_s0 + $0x1e8] sm:$0xff] }
 0x198   :  { %v1606_v5 = vpop.f32.mrf.mxu0 }
 0x199   :  { %3052 = vset.pattern.permute.xlu1 %v3184_v2  ;;  %v607_v11 = vpop.permute.xlu1 %606  ;;  %v1607_v35 = vadd.f32 %v1606_v5, %v3937_v16  ;;  %1114 = vperm.xlu0 %3076, %v4104_v44  }
 0x19a   :  { %v772_v0 = vmul.f32 %v3477_v63, %v607_v11  ;;  %315 = vperm.xlu1 %3052, %v3693_v31   ;;  %v1608_v27 = vpop.f32.mrf.mxu0 }
 0x19b   :  { %v1609_v33 = vadd.f32 %v1608_v27, %v4019_v40  ;;  %v1901_v25 = vmax.f32 %v1607_v35, 0.0  ;;  %v611_v27 = vpop.permute.xlu0 %610 }
 0x19c   :  { %v836_v38 = vadd.f32 %v772_v0, %v448_v18  ;;  %v1610_v39 = vpop.f32.mrf.mxu0  ;;  %v773_v35 = vmul.f32 %v3477_v63, %v611_v27 }
 0x19d   :  { %v1611_v19 = vadd.f32 %v1610_v39, %v3937_v16  ;;  %v1902_v23 = vmax.f32 %v1609_v33, 0.0  ;;  %3082 = vset.pattern.permute.xlu0 %v3185_v13 }
 0x19e   :  { %v1224_v7 = vadd.f32 %v1160_v1, %v836_v38  ;;  %320 = vperm.xlu1 %3052, %v3837_v12   ;;  %v991_v6 = vpop.permute.xlu1 %990  ;;  %v1612_v21 = vpop.f32.mrf.mxu0  ;;  %v1162_v38 = vmul.f32 %v3491_v9, %v3983_v37 }
 0x19f   :  { %v1159_v41 = vmul.f32 %v3491_v9, %v991_v6  ;;  %v1613_v10 = vadd.f32 %v1612_v21, %v4019_v40  ;;  %v1903_v36 = vmax.f32 %v1611_v19, 0.0 }
 0x1a0   :  { %v1295_v49 = vadd.f32 %v4013_v3, %v1224_v7 }
 0x1a1   :  { %v1223_v15 = vadd.f32 %v1159_v41, %v835_v43  ;;  %v1904_v34 = vmax.f32 %v1613_v10, 0.0  ;;  %v2021_v5 = vpack.c.bf16 %v1903_v36, %v1901_v25  ;;  %v4122_v36 = vld [vmem:[%s4708_s0 + $0x1e0] sm:$0xff] }
 0x1a2   :  { %3053 = vset.pattern.permute.xlu1 %v3185_v13  ;;  %v1359_v1 = vmax.f32 %v1295_v49, 0.0  ;;  %722 = vperm.xlu0 %3082, %v4122_v36  }
 0x1a3   :  { %v1294_v52 = vadd.f32 %v4013_v3, %v1223_v15  ;;  %662 = vperm.xlu1 %3053, %v3837_v12   ;;  %v256_v42 = vpop.permute.xlu1 %255  ;;  %v2022_v48 = vpack.c.bf16 %v1904_v34, %v1902_v23 }
 0x1a4   :  { %v449_v19 = vmul.f32 %v3474_v62, %v256_v42 }
 0x1a5   :  { %2353 = vmatprep.mubr.bf16.mxu1 %v2022_v48  ;;  %v1358_v11 = vmax.f32 %v1294_v52, 0.0 }
 0x1a6   :  { %2354 = vmatmul.mubr.bf16.gmra.mxu1 %v2021_v5  ;;  %v837_v23 = vadd.f32 %v773_v35, %v449_v19  ;;  %v1164_v35 = vmul.f32 %v3491_v9, %v4002_v26 }
 0x1a7   :  { %3054 = vset.pattern.permute.xlu1 %v3186_v17  ;;  %v261_v18 = vpop.permute.xlu1 %260  ;;  %v1407_v0 = vpack.c.bf16 %v1359_v1, %v1358_v11 }
 0x1a8   :  { %1046 = vperm.xlu1 %3054, %v3693_v31   ;;  %v450_v39 = vmul.f32 %v3474_v62, %v261_v18 }
 0x1a9   :  { %1715 = vmatmul.mubr.bf16.gmra.mxu0 %v1407_v0 }
 0x1aa   :  { %1724 = vmatprep.mubr.bf16.mxu0 %v3184_v2 }
 0x1ab   :  { %v1616_v12 = vpop.f32.mrf.mxu0 }
 0x1ac   :  { %3055 = vset.pattern.permute.xlu1 %v3184_v2  ;;  %v615_v53 = vpop.permute.xlu1 %614  ;;  %v1617_v37 = vadd.f32 %v1616_v12, %v3937_v16 }
 0x1ad   :  { %v774_v31 = vmul.f32 %v3477_v63, %v615_v53  ;;  %325 = vperm.xlu1 %3055, %v3709_v54   ;;  %v1618_v33 = vpop.f32.mrf.mxu0 }
 0x1ae   :  { %v1619_v21 = vadd.f32 %v1618_v33, %v4019_v40  ;;  %v1905_v5 = vmax.f32 %v1617_v37, 0.0 }
 0x1af   :  { %v838_v7 = vadd.f32 %v774_v31, %v450_v39  ;;  %v1620_v6 = vpop.f32.mrf.mxu0  ;;  %v619_v39 = vpop.permute.xlu0 %618  ;;  %v3160_v31 = vld [vmem:[%s4708_s0 + $0x170] sm:$0xff] }
 0x1b0   :  { %v1621_v43 = vadd.f32 %v1620_v6, %v3937_v16  ;;  %v1906_v25 = vmax.f32 %v1619_v21, 0.0  ;;  %v775_v37 = vmul.f32 %v3477_v63, %v619_v39 }
 0x1b1   :  { %v1226_v41 = vadd.f32 %v1162_v38, %v838_v7  ;;  %330 = vperm.xlu1 %3055, %v3858_v60   ;;  %v999_v10 = vpop.permute.xlu1 %998  ;;  %v1622_v54 = vpop.f32.mrf.mxu0 }
 0x1b2   :  { %v1161_v15 = vmul.f32 %v3491_v9, %v999_v10  ;;  %v1623_v34 = vadd.f32 %v1622_v54, %v4019_v40  ;;  %v1907_v49 = vmax.f32 %v1621_v43, 0.0 }
 0x1b3   :  { %v1297_v48 = vadd.f32 %v4013_v3, %v1226_v41  ;;  %v627_v19 = vpop.permute.xlu0 %626 }
 0x1b4   :  { %v1225_v52 = vadd.f32 %v1161_v15, %v837_v23  ;;  %v1908_v42 = vmax.f32 %v1623_v34, 0.0  ;;  %v2023_v0 = vpack.c.bf16 %v1907_v49, %v1905_v5 }
 0x1b5   :  { %3057 = vset.pattern.permute.xlu1 %v3185_v13  ;;  %v1361_v12 = vmax.f32 %v1297_v48, 0.0 }
 0x1b6   :  { %v1296_v11 = vadd.f32 %v4013_v3, %v1225_v52  ;;  %670 = vperm.xlu1 %3057, %v3858_v60   ;;  %v266_v1 = vpop.permute.xlu1 %265  ;;  %v2024_v18 = vpack.c.bf16 %v1908_v42, %v1906_v25  ;;  %v4153_v52 = vld [vmem:[%s4708_s0 + $0x1f0] sm:$0xff] }
 0x1b7   :  { %v451_v43 = vmul.f32 %v3474_v62, %v266_v1  ;;  %v4146_v15 = vpop.permute.xlu0 %634  ;;  %730 = vperm.xlu0 %3082, %v4153_v52  }
 0x1b8   :  { %2363 = vmatprep.mubr.bf16.mxu1 %v2024_v18  ;;  %v1360_v27 = vmax.f32 %v1296_v11, 0.0 }
 0x1b9   :  { %2364 = vmatmul.mubr.bf16.gmra.mxu1 %v2023_v0  ;;  %v839_v42 = vadd.f32 %v775_v37, %v451_v43 }
 0x1ba   :  { %3058 = vset.pattern.permute.xlu1 %v3186_v17  ;;  %v271_v53 = vpop.permute.xlu1 %270  ;;  %v1408_v38 = vpack.c.bf16 %v1361_v12, %v1360_v27 }
 0x1bb   :  { %1054 = vperm.xlu1 %3058, %v3160_v31   ;;  %v452_v7 = vmul.f32 %v3474_v62, %v271_v53  ;;  %v4165_v31 = vld [vmem:[%s4708_s0 + $0x1f8] sm:$0xff]  ;;  %3086 = vset.pattern.permute.xlu0 %v3186_v17 }
 0x1bc   :  { %1725 = vmatmul.mubr.bf16.gmra.mxu0 %v1408_v38  ;;  %1122 = vperm.xlu0 %3086, %v4165_v31  }
 0x1bd   :  { %1734 = vmatprep.mubr.bf16.mxu0 %v3184_v2 }
 0x1be   :  { %v1626_v60 = vpop.f32.mrf.mxu0 }
 0x1bf   :  { %3059 = vset.pattern.permute.xlu1 %v3184_v2  ;;  %v623_v33 = vpop.permute.xlu1 %622  ;;  %v1627_v26 = vadd.f32 %v1626_v60, %v3937_v16 }
 0x1c0   :  { %v776_v6 = vmul.f32 %v3477_v63, %v623_v33  ;;  %335 = vperm.xlu1 %3059, %v3899_v14   ;;  %v1628_v21 = vpop.f32.mrf.mxu0  ;;  %v4168_v33 = vpop.permute.xlu0 %642 }
 0x1c1   :  { %v1629_v54 = vadd.f32 %v1628_v21, %v4019_v40  ;;  %v1909_v12 = vmax.f32 %v1627_v26, 0.0  ;;  %v777_v26 = vmul.f32 %v3477_v63, %v627_v19 }
 0x1c2   :  { %v840_v41 = vadd.f32 %v776_v6, %v452_v7  ;;  %v1630_v10 = vpop.f32.mrf.mxu0 }
 0x1c3   :  { %v1631_v23 = vadd.f32 %v1630_v10, %v3937_v16  ;;  %v1910_v1 = vmax.f32 %v1629_v54, 0.0 }
 0x1c4   :  { %v1228_v34 = vadd.f32 %v1164_v35, %v840_v41  ;;  %340 = vperm.xlu1 %3059, %v3868_v47   ;;  %v1007_v49 = vpop.permute.xlu1 %1006  ;;  %v1632_v25 = vpop.f32.mrf.mxu0  ;;  %v1166_v41 = vmul.f32 %v3491_v9, %v4032_v4 }
 0x1c5   :  { %v1163_v48 = vmul.f32 %v3491_v9, %v1007_v49  ;;  %v1633_v5 = vadd.f32 %v1632_v25, %v4019_v40  ;;  %v1911_v11 = vmax.f32 %v1631_v23, 0.0  ;;  %v4173_v21 = vpop.permute.xlu0 %650 }
 0x1c6   :  { %v1299_v27 = vadd.f32 %v4013_v3, %v1228_v34 }
 0x1c7   :  { %v1227_v18 = vadd.f32 %v1163_v48, %v839_v42  ;;  %v1912_v0 = vmax.f32 %v1633_v5, 0.0  ;;  %v2025_v60 = vpack.c.bf16 %v1911_v11, %v1909_v12 }
 0x1c8   :  { %3060 = vset.pattern.permute.xlu1 %v3185_v13  ;;  %v1363_v7 = vmax.f32 %v1299_v27, 0.0 }
 0x1c9   :  { %v1298_v53 = vadd.f32 %v4013_v3, %v1227_v18  ;;  %v2026_v38 = vpack.c.bf16 %v1912_v0, %v1910_v1  ;;  %678 = vperm.xlu1 %3060, %v3868_v47   ;;  %v276_v39 = vpop.permute.xlu1 %275  ;;  %v4186_v48 = vpop.permute.xlu0 %658 }
 0x1cb   :  { %2373 = vmatprep.mubr.bf16.mxu1 %v2026_v38  ;;  %v1362_v35 = vmax.f32 %v1298_v53, 0.0 }
 0x1cc   :  { %2374 = vmatmul.mubr.bf16.gmra.mxu1 %v2025_v60 }
 0x1cd   :  { %3061 = vset.pattern.permute.xlu1 %v3186_v17  ;;  %v281_v47 = vpop.permute.xlu1 %280  ;;  %v1409_v6 = vpack.c.bf16 %v1363_v7, %v1362_v35 }
 0x1ce   :  { %1062 = vperm.xlu1 %3061, %v3899_v14   ;;  %v454_v10 = vmul.f32 %v3474_v62, %v281_v47  ;;  %v453_v14 = vmul.f32 %v3474_v62, %v276_v39 }
 0x1cf   :  { %1735 = vmatmul.mubr.bf16.gmra.mxu0 %v1409_v6 }
 0x1d0   :  { %1744 = vmatprep.mubr.bf16.mxu0 %v3184_v2  ;;  %v841_v18 = vadd.f32 %v777_v26, %v453_v14 }
 0x1d1   :  { %v1636_v43 = vpop.f32.mrf.mxu0 }
 0x1d2   :  { %3062 = vset.pattern.permute.xlu1 %v3184_v2  ;;  %v631_v37 = vpop.permute.xlu1 %630  ;;  %v1637_v4 = vadd.f32 %v1636_v43, %v3937_v16  ;;  %v4196_v43 = vpop.permute.xlu0 %666 }
 0x1d3   :  { %v778_v54 = vmul.f32 %v3477_v63, %v631_v37  ;;  %345 = vperm.xlu1 %3062, %v3922_v30   ;;  %v1638_v23 = vpop.f32.mrf.mxu0 }
 0x1d4   :  { %v1639_v25 = vadd.f32 %v1638_v23, %v4019_v40  ;;  %v1913_v60 = vmax.f32 %v1637_v4, 0.0 }
 0x1d5   :  { %v842_v34 = vadd.f32 %v778_v54, %v454_v10  ;;  %v1640_v49 = vpop.f32.mrf.mxu0 }
 0x1d6   :  { %v1641_v42 = vadd.f32 %v1640_v49, %v3937_v16  ;;  %v1914_v12 = vmax.f32 %v1639_v25, 0.0  ;;  %v1027_v23 = vpop.permute.xlu0 %1026 }
 0x1d7   :  { %v1230_v5 = vadd.f32 %v1166_v41, %v842_v34  ;;  %350 = vperm.xlu1 %3062, %v3876_v55   ;;  %v1015_v11 = vpop.permute.xlu1 %1014  ;;  %v1642_v1 = vpop.f32.mrf.mxu0  ;;  %v1168_v25 = vmul.f32 %v3491_v9, %v1027_v23 }
 0x1d8   :  { %v1165_v0 = vmul.f32 %v3491_v9, %v1015_v11  ;;  %v1643_v19 = vadd.f32 %v1642_v1, %v4019_v40  ;;  %v1915_v27 = vmax.f32 %v1641_v42, 0.0 }
 0x1d9   :  { %v1301_v39 = vadd.f32 %v4013_v3, %v1230_v5 }
 0x1da   :  { %v1229_v53 = vadd.f32 %v1165_v0, %v841_v18  ;;  %v1916_v38 = vmax.f32 %v1643_v19, 0.0  ;;  %v2027_v6 = vpack.c.bf16 %v1915_v27, %v1913_v60 }
 0x1db   :  { %3063 = vset.pattern.permute.xlu1 %v3185_v13  ;;  %v1365_v41 = vmax.f32 %v1301_v39, 0.0 }
 0x1dc   :  { %v1300_v35 = vadd.f32 %v4013_v3, %v1229_v53  ;;  %v2028_v7 = vpack.c.bf16 %v1916_v38, %v1914_v12  ;;  %686 = vperm.xlu1 %3063, %v3876_v55   ;;  %v286_v47 = vpop.permute.xlu1 %285 }
 0x1dd   :  { %v455_v42 = vmul.f32 %v3474_v62, %v286_v47 }
 0x1de   :  { %2383 = vmatprep.mubr.bf16.mxu1 %v2028_v7  ;;  %v1364_v37 = vmax.f32 %v1300_v35, 0.0 }
 0x1df   :  { %2384 = vmatmul.mubr.bf16.gmra.mxu1 %v2027_v6 }
 0x1e0   :  { %3064 = vset.pattern.permute.xlu1 %v3186_v17  ;;  %v291_v10 = vpop.permute.xlu1 %290  ;;  %v1410_v54 = vpack.c.bf16 %v1365_v41, %v1364_v37 }
 0x1e1   :  { %1070 = vperm.xlu1 %3064, %v3922_v30   ;;  %v456_v26 = vmul.f32 %v3474_v62, %v291_v10  ;;  %v779_v30 = vmul.f32 %v3477_v63, %v4146_v15 }
 0x1e2   :  { %1745 = vmatmul.mubr.bf16.gmra.mxu0 %v1410_v54 }
 0x1e3   :  { %1754 = vmatprep.mubr.bf16.mxu0 %v3184_v2  ;;  %v843_v12 = vadd.f32 %v779_v30, %v455_v42 }
 0x1e4   :  { %v1646_v14 = vpop.f32.mrf.mxu0 }
 0x1e5   :  { %3065 = vset.pattern.permute.xlu1 %v3184_v2  ;;  %v639_v55 = vpop.permute.xlu1 %638  ;;  %v1647_v18 = vadd.f32 %v1646_v14, %v3937_v16 }
 0x1e6   :  { %v780_v34 = vmul.f32 %v3477_v63, %v639_v55  ;;  %355 = vperm.xlu1 %3065, %v3960_v61   ;;  %v1648_v49 = vpop.f32.mrf.mxu0 }
 0x1e7   :  { %v1649_v11 = vadd.f32 %v1648_v49, %v4019_v40  ;;  %v1917_v47 = vmax.f32 %v1647_v18, 0.0 }
 0x1e8   :  { %v844_v4 = vadd.f32 %v780_v34, %v456_v26  ;;  %v1650_v5 = vpop.f32.mrf.mxu0  ;;  %v1035_v26 = vpop.permute.xlu0 %1034 }
 0x1e9   :  { %v1651_v1 = vadd.f32 %v1650_v5, %v3937_v16  ;;  %v1918_v39 = vmax.f32 %v1649_v11, 0.0  ;;  %v1170_v42 = vmul.f32 %v3491_v9, %v1035_v26 }
 0x1ea   :  { %v1232_v0 = vadd.f32 %v1168_v25, %v844_v4  ;;  %360 = vperm.xlu1 %3065, %v3884_v45   ;;  %v1023_v19 = vpop.permute.xlu1 %1022  ;;  %v1652_v27 = vpop.f32.mrf.mxu0 }
 0x1eb   :  { %v1167_v53 = vmul.f32 %v3491_v9, %v1023_v19  ;;  %v1653_v15 = vadd.f32 %v1652_v27, %v4019_v40  ;;  %v1919_v38 = vmax.f32 %v1651_v1, 0.0 }
 0x1ec   :  { %v1303_v60 = vadd.f32 %v4013_v3, %v1232_v0  ;;  %v1043_v26 = vpop.permute.xlu0 %1042 }
 0x1ed   :  { %v1231_v35 = vadd.f32 %v1167_v53, %v843_v12  ;;  %v1920_v7 = vmax.f32 %v1653_v15, 0.0  ;;  %v2029_v10 = vpack.c.bf16 %v1919_v38, %v1917_v47 }
 0x1ee   :  { %3066 = vset.pattern.permute.xlu1 %v3185_v13  ;;  %v1367_v54 = vmax.f32 %v1303_v60, 0.0 }
 0x1ef   :  { %v1302_v6 = vadd.f32 %v4013_v3, %v1231_v35  ;;  %v2030_v37 = vpack.c.bf16 %v1920_v7, %v1918_v39  ;;  %694 = vperm.xlu1 %3066, %v3884_v45   ;;  %v296_v41 = vpop.permute.xlu1 %295 }
 0x1f0   :  { %v457_v4 = vmul.f32 %v3474_v62, %v296_v41 }
 0x1f1   :  { %v1366_v23 = vmax.f32 %v1302_v6, 0.0  ;;  %2393 = vmatprep.mubr.bf16.mxu1 %v2030_v37 }
 0x1f2   :  { %2394 = vmatmul.mubr.bf16.gmra.mxu1 %v2029_v10 }
 0x1f3   :  { %3067 = vset.pattern.permute.xlu1 %v3186_v17  ;;  %v301_v14 = vpop.permute.xlu1 %300  ;;  %v1411_v55 = vpack.c.bf16 %v1367_v54, %v1366_v23 }
 0x1f4   :  { %1078 = vperm.xlu1 %3067, %v3960_v61   ;;  %v458_v49 = vmul.f32 %v3474_v62, %v301_v14  ;;  %v781_v61 = vmul.f32 %v3477_v63, %v4168_v33 }
 0x1f5   :  { %1755 = vmatmul.mubr.bf16.gmra.mxu0 %v1411_v55 }
 0x1f6   :  { %1764 = vmatprep.mubr.bf16.mxu0 %v3184_v2  ;;  %v845_v53 = vadd.f32 %v781_v61, %v457_v4 }
 0x1f7   :  { %v1656_v34 = vpop.f32.mrf.mxu0 }
 0x1f8   :  { %3069 = vset.pattern.permute.xlu1 %v3184_v2  ;;  %v647_v45 = vpop.permute.xlu1 %646  ;;  %v1657_v0 = vadd.f32 %v1656_v34, %v3937_v16 }
 0x1f9   :  { %v782_v25 = vmul.f32 %v3477_v63, %v647_v45  ;;  %365 = vperm.xlu1 %3069, %v3996_v22   ;;  %v1658_v30 = vpop.f32.mrf.mxu0 }
 0x1fa   :  { %v1659_v1 = vadd.f32 %v1658_v30, %v4019_v40  ;;  %v1921_v47 = vmax.f32 %v1657_v0, 0.0  ;;  %v1172_v30 = vmul.f32 %v3491_v9, %v1043_v26 }
 0x1fb   :  { %v846_v5 = vadd.f32 %v782_v25, %v458_v49  ;;  %v1660_v11 = vpop.f32.mrf.mxu0 }
 0x1fc   :  { %v1661_v18 = vadd.f32 %v1660_v11, %v3937_v16  ;;  %v1922_v39 = vmax.f32 %v1659_v1, 0.0 }
 0x1fd   :  { %v1234_v19 = vadd.f32 %v1170_v42, %v846_v5  ;;  %370 = vperm.xlu1 %3069, %v4041_v59   ;;  %v1031_v27 = vpop.permute.xlu1 %1030  ;;  %v1662_v12 = vpop.f32.mrf.mxu0 }
 0x1fe   :  { %v1169_v15 = vmul.f32 %v3491_v9, %v1031_v27  ;;  %v1663_v33 = vadd.f32 %v1662_v12, %v4019_v40  ;;  %v1923_v38 = vmax.f32 %v1661_v18, 0.0 }
 0x1ff   :  { %v1305_v60 = vadd.f32 %v4013_v3, %v1234_v19 }
 0x200   :  { %v1233_v35 = vadd.f32 %v1169_v15, %v845_v53  ;;  %v1924_v7 = vmax.f32 %v1663_v33, 0.0  ;;  %v2031_v10 = vpack.c.bf16 %v1923_v38, %v1921_v47 }
 0x201   :  { %3070 = vset.pattern.permute.xlu1 %v3185_v13  ;;  %v1369_v54 = vmax.f32 %v1305_v60, 0.0 }
 0x202   :  { %v1304_v6 = vadd.f32 %v4013_v3, %v1233_v35  ;;  %v2032_v37 = vpack.c.bf16 %v1924_v7, %v1922_v39  ;;  %702 = vperm.xlu1 %3070, %v4041_v59   ;;  %v306_v41 = vpop.permute.xlu1 %305 }
 0x203   :  { %v459_v42 = vmul.f32 %v3474_v62, %v306_v41 }
 0x204   :  { %v1368_v23 = vmax.f32 %v1304_v6, 0.0  ;;  %2403 = vmatprep.mubr.bf16.mxu1 %v2032_v37 }
 0x205   :  { %2404 = vmatmul.mubr.bf16.gmra.mxu1 %v2031_v10 }
 0x206   :  { %3071 = vset.pattern.permute.xlu1 %v3186_v17  ;;  %v311_v14 = vpop.permute.xlu1 %310  ;;  %v1412_v55 = vpack.c.bf16 %v1369_v54, %v1368_v23  ;;  %v1051_v23 = vpop.permute.xlu0 %1050 }
 0x207   :  { %1086 = vperm.xlu1 %3071, %v3996_v22   ;;  %v460_v45 = vmul.f32 %v3474_v62, %v311_v14  ;;  %v783_v22 = vmul.f32 %v3477_v63, %v4173_v21 }
 0x208   :  { %1765 = vmatmul.mubr.bf16.gmra.mxu0 %v1412_v55 }
 0x209   :  { %1774 = vmatprep.mubr.bf16.mxu0 %v3184_v2  ;;  %v847_v27 = vadd.f32 %v783_v22, %v459_v42 }
 0x20a   :  { %v1666_v34 = vpop.f32.mrf.mxu0 }
 0x20b   :  { %3072 = vset.pattern.permute.xlu1 %v3184_v2  ;;  %v655_v59 = vpop.permute.xlu1 %654  ;;  %v1667_v1 = vadd.f32 %v1666_v34, %v3937_v16 }
 0x20c   :  { %v784_v49 = vmul.f32 %v3477_v63, %v655_v59  ;;  %375 = vperm.xlu1 %3072, %v4008_v50   ;;  %v1668_v25 = vpop.f32.mrf.mxu0  ;;  %v1174_v59 = vmul.f32 %v3491_v9, %v1051_v23 }
 0x20d   :  { %v1669_v5 = vadd.f32 %v1668_v25, %v4019_v40  ;;  %v1925_v60 = vmax.f32 %v1667_v1, 0.0 }
 0x20e   :  { %v848_v61 = vadd.f32 %v784_v49, %v460_v45  ;;  %v1670_v4 = vpop.f32.mrf.mxu0 }
 0x20f   :  { %v1671_v11 = vadd.f32 %v1670_v4, %v3937_v16  ;;  %v1926_v15 = vmax.f32 %v1669_v5, 0.0 }
 0x210   :  { %v1236_v18 = vadd.f32 %v1172_v30, %v848_v61  ;;  %380 = vperm.xlu1 %3072, %v4065_v51   ;;  %v1039_v0 = vpop.permute.xlu1 %1038  ;;  %v1672_v19 = vpop.f32.mrf.mxu0 }
 0x211   :  { %v1171_v12 = vmul.f32 %v3491_v9, %v1039_v0  ;;  %v1673_v21 = vadd.f32 %v1672_v19, %v4019_v40  ;;  %v1927_v53 = vmax.f32 %v1671_v11, 0.0 }
 0x212   :  { %v1307_v33 = vadd.f32 %v4013_v3, %v1236_v18 }
 0x213   :  { %v1235_v38 = vadd.f32 %v1171_v12, %v847_v27  ;;  %v1928_v39 = vmax.f32 %v1673_v21, 0.0  ;;  %v2033_v6 = vpack.c.bf16 %v1927_v53, %v1925_v60 }
 0x214   :  { %3073 = vset.pattern.permute.xlu1 %v3185_v13  ;;  %v1371_v37 = vmax.f32 %v1307_v33, 0.0 }
 0x215   :  { %v1306_v35 = vadd.f32 %v4013_v3, %v1235_v38  ;;  %v2034_v7 = vpack.c.bf16 %v1928_v39, %v1926_v15  ;;  %710 = vperm.xlu1 %3073, %v4065_v51   ;;  %v316_v47 = vpop.permute.xlu1 %315 }
 0x216   :  { %v461_v45 = vmul.f32 %v3474_v62, %v316_v47 }
 0x217   :  { %v1370_v41 = vmax.f32 %v1306_v35, 0.0  ;;  %2413 = vmatprep.mubr.bf16.mxu1 %v2034_v7  ;;  %v1059_v35 = vpop.permute.xlu0 %1058 }
 0x218   :  { %2414 = vmatmul.mubr.bf16.gmra.mxu1 %v2033_v6 }
 0x219   :  { %3074 = vset.pattern.permute.xlu1 %v3186_v17  ;;  %v321_v10 = vpop.permute.xlu1 %320  ;;  %v1413_v54 = vpack.c.bf16 %v1371_v37, %v1370_v41  ;;  %v1176_v41 = vmul.f32 %v3491_v9, %v1059_v35 }
 0x21a   :  { %1094 = vperm.xlu1 %3074, %v4008_v50   ;;  %v462_v55 = vmul.f32 %v3474_v62, %v321_v10  ;;  %v785_v50 = vmul.f32 %v3477_v63, %v4186_v48 }
 0x21b   :  { %1775 = vmatmul.mubr.bf16.gmra.mxu0 %v1413_v54  ;;  %v1067_v37 = vpop.permute.xlu0 %1066 }
 0x21c   :  { %1784 = vmatprep.mubr.bf16.mxu0 %v3184_v2  ;;  %v849_v11 = vadd.f32 %v785_v50, %v461_v45 }
 0x21d   :  { %v1676_v14 = vpop.f32.mrf.mxu0 }
 0x21e   :  { %3075 = vset.pattern.permute.xlu1 %v3184_v2  ;;  %v663_v51 = vpop.permute.xlu1 %662  ;;  %v1677_v42 = vadd.f32 %v1676_v14, %v3937_v16 }
 0x21f   :  { %v786_v26 = vmul.f32 %v3477_v63, %v663_v51  ;;  %385 = vperm.xlu1 %3075, %v4029_v46   ;;  %v1678_v34 = vpop.f32.mrf.mxu0 }
 0x220   :  { %v1679_v30 = vadd.f32 %v1678_v34, %v4019_v40  ;;  %v1929_v21 = vmax.f32 %v1677_v42, 0.0 }
 0x221   :  { %v850_v49 = vadd.f32 %v786_v26, %v462_v55  ;;  %v1680_v25 = vpop.f32.mrf.mxu0 }
 0x222   :  { %v1681_v22 = vadd.f32 %v1680_v25, %v3937_v16  ;;  %v1930_v0 = vmax.f32 %v1679_v30, 0.0  ;;  %v4297_v30 = vpop.permute.xlu0 %1074 }
 0x223   :  { %v1238_v61 = vadd.f32 %v1174_v59, %v850_v49  ;;  %390 = vperm.xlu1 %3075, %v4092_v28   ;;  %v1047_v4 = vpop.permute.xlu1 %1046  ;;  %v1682_v5 = vpop.f32.mrf.mxu0 }
 0x224   :  { %v1173_v1 = vmul.f32 %v3491_v9, %v1047_v4  ;;  %v1683_v48 = vadd.f32 %v1682_v5, %v4019_v40  ;;  %v1931_v18 = vmax.f32 %v1681_v22, 0.0 }
 0x225   :  { %v1309_v19 = vadd.f32 %v4013_v3, %v1238_v61 }
 0x226   :  { %v1237_v27 = vadd.f32 %v1173_v1, %v849_v11  ;;  %v1932_v12 = vmax.f32 %v1683_v48, 0.0  ;;  %v2035_v38 = vpack.c.bf16 %v1931_v18, %v1929_v21 }
 0x227   :  { %3077 = vset.pattern.permute.xlu1 %v3185_v13  ;;  %v1373_v39 = vmax.f32 %v1309_v19, 0.0 }
 0x228   :  { %v1308_v53 = vadd.f32 %v4013_v3, %v1237_v27  ;;  %v2036_v15 = vpack.c.bf16 %v1932_v12, %v1930_v0  ;;  %718 = vperm.xlu1 %3077, %v4092_v28   ;;  %v326_v33 = vpop.permute.xlu1 %325  ;;  %v4305_v12 = vpop.permute.xlu0 %1082 }
 0x229   :  { %v463_v14 = vmul.f32 %v3474_v62, %v326_v33 }
 0x22a   :  { %v1372_v60 = vmax.f32 %v1308_v53, 0.0  ;;  %2423 = vmatprep.mubr.bf16.mxu1 %v2036_v15 }
 0x22b   :  { %2424 = vmatmul.mubr.bf16.gmra.mxu1 %v2035_v38  ;;  %v1178_v38 = vmul.f32 %v3491_v9, %v1067_v37 }
 0x22c   :  { %3078 = vset.pattern.permute.xlu1 %v3186_v17  ;;  %v331_v7 = vpop.permute.xlu1 %330  ;;  %v1414_v47 = vpack.c.bf16 %v1373_v39, %v1372_v60 }
 0x22d   :  { %1102 = vperm.xlu1 %3078, %v4029_v46   ;;  %v464_v10 = vmul.f32 %v3474_v62, %v331_v7  ;;  %v787_v46 = vmul.f32 %v3477_v63, %v4196_v43 }
 0x22e   :  { %1785 = vmatmul.mubr.bf16.gmra.mxu0 %v1414_v47 }
 0x22f   :  { %1794 = vmatprep.mubr.bf16.mxu0 %v3184_v2  ;;  %v851_v25 = vadd.f32 %v787_v46, %v463_v14 }
 0x230   :  { %v1686_v6 = vpop.f32.mrf.mxu0 }
 0x231   :  { %3079 = vset.pattern.permute.xlu1 %v3184_v2  ;;  %v671_v28 = vpop.permute.xlu1 %670  ;;  %v1687_v59 = vadd.f32 %v1686_v6, %v3937_v16 }
 0x232   :  { %v788_v54 = vmul.f32 %v3477_v63, %v671_v28  ;;  %395 = vperm.xlu1 %3079, %v4122_v36   ;;  %v1688_v23 = vpop.f32.mrf.mxu0 }
 0x233   :  { %v1689_v26 = vadd.f32 %v1688_v23, %v4019_v40  ;;  %v1933_v1 = vmax.f32 %v1687_v59, 0.0 }
 0x234   :  { %v852_v51 = vadd.f32 %v788_v54, %v464_v10  ;;  %v1690_v55 = vpop.f32.mrf.mxu0 }
 0x235   :  { %v1691_v34 = vadd.f32 %v1690_v55, %v3937_v16  ;;  %v1934_v61 = vmax.f32 %v1689_v26, 0.0 }
 0x236   :  { %v1240_v50 = vadd.f32 %v1176_v41, %v852_v51  ;;  %400 = vperm.xlu1 %3079, %v4104_v44   ;;  %v1055_v45 = vpop.permute.xlu1 %1054  ;;  %v1692_v49 = vpop.f32.mrf.mxu0 }
 0x237   :  { %v1175_v43 = vmul.f32 %v3491_v9, %v1055_v45  ;;  %v1693_v22 = vadd.f32 %v1692_v49, %v4019_v40  ;;  %v1935_v42 = vmax.f32 %v1691_v34, 0.0  ;;  %v4328_v45 = vld [vmem:[%s4710_s2] ss:$0 sm:$0xff] }
 0x238   :  { %v1311_v11 = vadd.f32 %v4013_v3, %v1240_v50 }
 0x239   :  { %v1239_v4 = vadd.f32 %v1175_v43, %v851_v25  ;;  %v1936_v5 = vmax.f32 %v1693_v22, 0.0  ;;  %v2037_v19 = vpack.c.bf16 %v1935_v42, %v1933_v1 }
 0x23a   :  { %3080 = vset.pattern.permute.xlu1 %v3185_v13  ;;  %v1375_v21 = vmax.f32 %v1311_v11, 0.0 }
 0x23b   :  { %v1310_v48 = vadd.f32 %v4013_v3, %v1239_v4  ;;  %v2038_v18 = vpack.c.bf16 %v1936_v5, %v1934_v61  ;;  %726 = vperm.xlu1 %3080, %v4104_v44   ;;  %v336_v0 = vpop.permute.xlu1 %335  ;;  %v675_v3 = vpop.permute.xlu0 %674 }
 0x23c   :  { %v465_v7 = vmul.f32 %v3474_v62, %v336_v0 }
 0x23d   :  { %v1374_v27 = vmax.f32 %v1310_v48, 0.0  ;;  %2433 = vmatprep.mubr.bf16.mxu1 %v2038_v18 }
 0x23e   :  { %2434 = vmatmul.mubr.bf16.gmra.mxu1 %v2037_v19 }
 0x23f   :  { %3081 = vset.pattern.permute.xlu1 %v3186_v17  ;;  %v341_v53 = vpop.permute.xlu1 %340  ;;  %v1415_v15 = vpack.c.bf16 %v1375_v21, %v1374_v27  ;;  %v1180_v21 = vmul.f32 %v3491_v9, %v4297_v30 }
 0x240   :  { %1110 = vperm.xlu1 %3081, %v4122_v36   ;;  %v466_v39 = vmul.f32 %v3474_v62, %v341_v53  ;;  %v789_v36 = vmul.f32 %v3477_v63, %v675_v3 }
 0x241   :  { %1795 = vmatmul.mubr.bf16.gmra.mxu0 %v1415_v15 }
 0x242   :  { %1804 = vmatprep.mubr.bf16.mxu0 %v3184_v2  ;;  %v853_v14 = vadd.f32 %v789_v36, %v465_v7 }
 0x243   :  { %v1696_v33 = vpop.f32.mrf.mxu0 }
 0x244   :  { %3083 = vset.pattern.permute.xlu1 %v3184_v2  ;;  %v679_v44 = vpop.permute.xlu1 %678  ;;  %v1697_v37 = vadd.f32 %v1696_v33, %v3937_v16 }
 0x245   :  { %v790_v60 = vmul.f32 %v3477_v63, %v679_v44  ;;  %405 = vperm.xlu1 %3083, %v4153_v52   ;;  %v1698_v35 = vpop.f32.mrf.mxu0 }
 0x246   :  { %v1699_v28 = vadd.f32 %v1698_v35, %v4019_v40  ;;  %v1937_v25 = vmax.f32 %v1697_v37, 0.0 }
 0x247   :  { %v854_v47 = vadd.f32 %v790_v60, %v466_v39  ;;  %v1700_v6 = vpop.f32.mrf.mxu0  ;;  %v4319_v10 = vpop.f32.mrf.mxu1 }
 0x248   :  { %v1701_v41 = vadd.f32 %v1700_v6, %v3937_v16  ;;  %v1938_v34 = vmax.f32 %v1699_v28, 0.0 }
 0x249   :  { %v1242_v54 = vadd.f32 %v1178_v38, %v854_v47  ;;  %410 = vperm.xlu1 %3083, %v4165_v31   ;;  %v1063_v23 = vpop.permute.xlu1 %1062  ;;  %v1702_v46 = vpop.f32.mrf.mxu0 }
 0x24a   :  { %v1177_v51 = vmul.f32 %v3491_v9, %v1063_v23  ;;  %v1703_v55 = vadd.f32 %v1702_v46, %v4019_v40  ;;  %v1939_v26 = vmax.f32 %v1701_v41, 0.0  ;;  %v4331_v43 = vpop.f32.mrf.mxu1 }
 0x24b   :  { %v1313_v49 = vadd.f32 %v4328_v45, %v1242_v54 }
 0x24c   :  { %v1241_v59 = vadd.f32 %v1177_v51, %v853_v14  ;;  %v1940_v50 = vmax.f32 %v1703_v55, 0.0  ;;  %v2039_v4 = vpack.c.bf16 %v1939_v26, %v1937_v25  ;;  %v4336_v1 = vpop.f32.mrf.mxu1 }
 0x24d   :  { %3084 = vset.pattern.permute.xlu1 %v3185_v13  ;;  %v1377_v11 = vmax.f32 %v1313_v49, 0.0 }
 0x24e   :  { %v1312_v22 = vadd.f32 %v4328_v45, %v1241_v59  ;;  %v2040_v42 = vpack.c.bf16 %v1940_v50, %v1938_v34  ;;  %734 = vperm.xlu1 %3084, %v4165_v31   ;;  %v346_v61 = vpop.permute.xlu1 %345  ;;  %v4340_v13 = vpop.f32.mrf.mxu1 }
 0x24f   :  { %v683_v31 = vpop.permute.xlu0 %682 }
 0x250   :  { %v1376_v5 = vmax.f32 %v1312_v22, 0.0  ;;  %2443 = vmatprep.mubr.bf16.mxu1 %v2040_v42  ;;  %v791_v3 = vmul.f32 %v3477_v63, %v683_v31 }
 0x251   :  { %2444 = vmatmul.mubr.bf16.gmra.mxu1 %v2039_v4  ;;  %v2109_v4 = vld [vmem:[%s4714_s6] sm:$0x3]  ;;  %s3187_s6 = smov [#allocation2]  }
 0x252   :  { %3085 = vset.pattern.permute.xlu1 %v3186_v17  ;;  %v351_v48 = vpop.permute.xlu1 %350  ;;  %v1416_v18 = vpack.c.bf16 %v1377_v11, %v1376_v5  ;;  %s2889_s12 = sshll.u32 %s3187_s6, 4  ;;  %s2890_s12 = int_to_ptr.vmem [resolvable:$true] %s2889_s12 }
 0x253   :  { %1118 = vperm.xlu1 %3085, %v4153_v52   ;;  %v4343_v19 = vpop.f32.mrf.mxu1  ;;  %v468_v53 = vmul.f32 %v3474_v62, %v351_v48  ;;  %v467_v52 = vmul.f32 %v3474_v62, %v346_v61  ;;  %v691_v22 = vpop.permute.xlu0 %690  ;;  %s3162_s13 = scalar_lea.vmem %s2890_s12, 256  ;;  %p3167_p1 = scmp.lt.s32.totalorder %s2890_s12, %s2890_s12 }
 0x254   :  { %1805 = vmatmul.mubr.bf16.gmra.mxu0 %v1416_v18  ;;  %v4371_v18 = vrot.slane %v2109_v4, %v3455_v56  ;;  %p3163_p0 = scmp.ne.s32.totalorder %s2890_s12, %s3162_s13  ;;  %p3168_p2 = scmp.lt.s32.totalorder %s3162_s13, %s3162_s13 }
 0x255   :  { %1814 = vmatprep.mubr.bf16.mxu0 %v3184_v2  ;;  %v4351_v38 = vpop.f32.mrf.mxu1  ;;  %v855_v47 = vadd.f32 %v791_v3, %v467_v52 }
 0x256   :  { %v1706_v0 = vpop.f32.mrf.mxu0  ;;  %p3169_p3 = por %p3168_p2, %p3167_p1 }
 0x257   :  { %v687_v27 = vpop.permute.xlu1 %686  ;;  %v1707_v35 = vadd.f32 %v1706_v0, %v3937_v16  ;;  %v4359_v51 = vpop.f32.mrf.mxu1  ;;  %v1182_v0 = vmul.f32 %v3491_v9, %v4305_v12 }
 0x258   :  { %v792_v17 = vmul.f32 %v3477_v63, %v687_v27  ;;  %v1708_v15 = vpop.f32.mrf.mxu0  ;;  %v4367_v48 = vpop.permute.xlu0 %698  ;;  %v4376_v27 = vrot.slane %v2109_v4, %v3457_v57  ;;  %p3170_p4 = pnand %p3169_p3, %p3163_p0 }
 0x259   :  { %v1709_v39 = vadd.f32 %v1708_v15, %v4019_v40  ;;  %v1941_v14 = vmax.f32 %v1707_v35, 0.0  ;;  %v4362_v25 = vpop.f32.mrf.mxu1 }
 0x25a   :  { %v856_v33 = vadd.f32 %v792_v17, %v468_v53  ;;  %v1710_v44 = vpop.f32.mrf.mxu0 }
 0x25b   :  { %v1711_v60 = vadd.f32 %v1710_v44, %v3937_v16  ;;  %v1942_v37 = vmax.f32 %v1709_v39, 0.0  ;;  %v793_v44 = vmul.f32 %v3477_v63, %v691_v22 }
 0x25c   :  { %v1244_v30 = vadd.f32 %v1180_v21, %v856_v33  ;;  %v1071_v7 = vpop.permute.xlu1 %1070  ;;  %v1712_v36 = vpop.f32.mrf.mxu0 }
 0x25d   :  { %v1179_v6 = vmul.f32 %v3491_v9, %v1071_v7  ;;  %v1713_v28 = vadd.f32 %v1712_v36, %v4019_v40  ;;  %v1943_v41 = vmax.f32 %v1711_v60, 0.0 }
 0x25e   :  { %v1315_v46 = vadd.f32 %v4328_v45, %v1244_v30 }
 0x25f   :  { %v1243_v54 = vadd.f32 %v1179_v6, %v855_v47  ;;  %v1944_v23 = vmax.f32 %v1713_v28, 0.0  ;;  %v2041_v59 = vpack.c.bf16 %v1943_v41, %v1941_v14  ;;  %v4388_v47 = vpop.permute.xlu0 %706 }
 0x260   :  { %v1379_v49 = vmax.f32 %v1315_v46, 0.0 }
 0x261   :  { %v1314_v55 = vadd.f32 %v4328_v45, %v1243_v54  ;;  %v2042_v26 = vpack.c.bf16 %v1944_v23, %v1942_v37  ;;  %v356_v34 = vpop.permute.xlu1 %355 }
 0x262   :  { %v469_v56 = vmul.f32 %v3474_v62, %v356_v34 }
 0x263   :  { %v1378_v50 = vmax.f32 %v1314_v55, 0.0  ;;  %2453 = vmatprep.mubr.bf16.mxu1 %v2042_v26  ;;  %v4395_v4 = vpop.permute.xlu0 %714 }
 0x264   :  { %2454 = vmatmul.mubr.bf16.gmra.mxu1 %v2041_v59  ;;  %v857_v23 = vadd.f32 %v793_v44, %v469_v56 }
 0x265   :  { %v361_v42 = vpop.permute.xlu1 %360  ;;  %v1417_v61 = vpack.c.bf16 %v1379_v49, %v1378_v50 }
 0x266   :  { %v2355_v5 = vpop.f32.mrf.mxu1  ;;  %v470_v17 = vmul.f32 %v3474_v62, %v361_v42 }
 0x267   :  { %1815 = vmatmul.mubr.bf16.gmra.mxu0 %v1417_v61  ;;  %v2356_v15 = vadd.f32 %v2355_v5, %v4371_v18 }
 0x268   :  { %v2357_v11 = vpop.f32.mrf.mxu1  ;;  %1824 = vmatprep.mubr.bf16.mxu0 %v3184_v2 }
 0x269   :  { %v1716_v31 = vpop.f32.mrf.mxu0  ;;  %v2358_v12 = vadd.f32 %v2357_v11, %v4376_v27 }
 0x26a   :  { %v695_v21 = vpop.permute.xlu1 %694  ;;  %v2359_v53 = vpop.f32.mrf.mxu1  ;;  %v1717_v6 = vadd.f32 %v1716_v31, %v3937_v16 }
 0x26b   :  { %v794_v52 = vmul.f32 %v3477_v63, %v695_v21  ;;  %v2360_v3 = vadd.f32 %v2359_v53, %v4371_v18  ;;  %v1718_v33 = vpop.f32.mrf.mxu0 }
 0x26c   :  { %v2361_v39 = vpop.f32.mrf.mxu1  ;;  %v1719_v7 = vadd.f32 %v1718_v33, %v4019_v40  ;;  %v1945_v49 = vmax.f32 %v1717_v6, 0.0  ;;  %v795_v6 = vmul.f32 %v3477_v63, %v4367_v48 }
 0x26d   :  { %v858_v57 = vadd.f32 %v794_v52, %v470_v17  ;;  %v2660_v60 = vmax.f32 %v2356_v15, %v2360_v3  ;;  %v2362_v35 = vadd.f32 %v2361_v39, %v4376_v27  ;;  %v1720_v30 = vpop.f32.mrf.mxu0  ;;  %v1091_v15 = vpop.permute.xlu0 %1090 }
 0x26e   :  { %v1721_v36 = vadd.f32 %v1720_v30, %v3937_v16  ;;  %v1946_v26 = vmax.f32 %v1719_v7, 0.0 }
 0x26f   :  { %v1246_v28 = vadd.f32 %v1182_v0, %v858_v57  ;;  %v2673_v41 = vmax.f32 %v2358_v12, %v2362_v35  ;;  %v1079_v37 = vpop.permute.xlu1 %1078  ;;  %v1722_v54 = vpop.f32.mrf.mxu0  ;;  %v1184_v12 = vmul.f32 %v3491_v9, %v1091_v15 }
 0x270   :  { %v1181_v46 = vmul.f32 %v3491_v9, %v1079_v37  ;;  %v1723_v14 = vadd.f32 %v1722_v54, %v4019_v40  ;;  %v1947_v55 = vmax.f32 %v1721_v36, 0.0 }
 0x271   :  { %v1317_v50 = vadd.f32 %v4328_v45, %v1246_v28 }
 0x272   :  { %v1245_v34 = vadd.f32 %v1181_v46, %v857_v23  ;;  %v1948_v59 = vmax.f32 %v1723_v14, 0.0  ;;  %v2043_v5 = vpack.c.bf16 %v1947_v55, %v1945_v49 }
 0x273   :  { %v1381_v31 = vmax.f32 %v1317_v50, 0.0 }
 0x274   :  { %v1316_v22 = vadd.f32 %v4328_v45, %v1245_v34  ;;  %v2044_v42 = vpack.c.bf16 %v1948_v59, %v1946_v26  ;;  %v366_v61 = vpop.permute.xlu1 %365 }
 0x276   :  { %v1380_v11 = vmax.f32 %v1316_v22, 0.0  ;;  %2463 = vmatprep.mubr.bf16.mxu1 %v2044_v42 }
 0x277   :  { %2464 = vmatmul.mubr.bf16.gmra.mxu1 %v2043_v5 }
 0x278   :  { %v371_v0 = vpop.permute.xlu1 %370  ;;  %v1418_v21 = vpack.c.bf16 %v1381_v31, %v1380_v11 }
 0x279   :  { %v2365_v53 = vpop.f32.mrf.mxu1  ;;  %v472_v57 = vmul.f32 %v3474_v62, %v371_v0 }
 0x27a   :  { %v2366_v17 = vadd.f32 %v2365_v53, %v4371_v18  ;;  %1825 = vmatmul.mubr.bf16.gmra.mxu0 %v1418_v21 }
 0x27b   :  { %v2367_v52 = vpop.f32.mrf.mxu1  ;;  %1834 = vmatprep.mubr.bf16.mxu0 %v3184_v2 }
 0x27c   :  { %v2661_v3 = vmax.f32 %v2660_v60, %v2366_v17  ;;  %v2368_v33 = vadd.f32 %v2367_v52, %v4376_v27  ;;  %v1726_v56 = vpop.f32.mrf.mxu0  ;;  %v471_v60 = vmul.f32 %v3474_v62, %v366_v61 }
 0x27d   :  { %v703_v44 = vpop.permute.xlu1 %702  ;;  %v2369_v39 = vpop.f32.mrf.mxu1  ;;  %v1727_v55 = vadd.f32 %v1726_v56, %v3937_v16 }
 0x27e   :  { %v2674_v35 = vmax.f32 %v2673_v41, %v2368_v33  ;;  %v796_v30 = vmul.f32 %v3477_v63, %v703_v44  ;;  %v2370_v7 = vadd.f32 %v2369_v39, %v4371_v18  ;;  %v1728_v36 = vpop.f32.mrf.mxu0  ;;  %v859_v49 = vadd.f32 %v795_v6, %v471_v60 }
 0x27f   :  { %v2371_v28 = vpop.f32.mrf.mxu1  ;;  %v1729_v14 = vadd.f32 %v1728_v36, %v4019_v40  ;;  %v1949_v0 = vmax.f32 %v1727_v55, 0.0 }
 0x280   :  { %v860_v37 = vadd.f32 %v796_v30, %v472_v57  ;;  %v2662_v54 = vmax.f32 %v2661_v3, %v2370_v7  ;;  %v2372_v23 = vadd.f32 %v2371_v28, %v4376_v27  ;;  %v1730_v46 = vpop.f32.mrf.mxu0 }
 0x281   :  { %v1731_v41 = vadd.f32 %v1730_v46, %v3937_v16  ;;  %v1950_v61 = vmax.f32 %v1729_v14, 0.0 }
 0x282   :  { %v2675_v26 = vmax.f32 %v2674_v35, %v2372_v23  ;;  %v1248_v34 = vadd.f32 %v1184_v12, %v860_v37  ;;  %v1087_v59 = vpop.permute.xlu1 %1086  ;;  %v1732_v50 = vpop.f32.mrf.mxu0 }
 0x283   :  { %v1183_v48 = vmul.f32 %v3491_v9, %v1087_v59  ;;  %v1733_v22 = vadd.f32 %v1732_v50, %v4019_v40  ;;  %v1951_v42 = vmax.f32 %v1731_v41, 0.0  ;;  %v1099_v12 = vpop.permute.xlu0 %1098  ;;  %v797_v41 = vmul.f32 %v3477_v63, %v4388_v47 }
 0x284   :  { %v1319_v5 = vadd.f32 %v4328_v45, %v1248_v34  ;;  %v1186_v60 = vmul.f32 %v3491_v9, %v1099_v12 }
 0x285   :  { %v1247_v11 = vadd.f32 %v1183_v48, %v859_v49  ;;  %v1952_v31 = vmax.f32 %v1733_v22, 0.0  ;;  %v2045_v15 = vpack.c.bf16 %v1951_v42, %v1949_v0 }
 0x286   :  { %v1383_v52 = vmax.f32 %v1319_v5, 0.0 }
 0x287   :  { %v1318_v21 = vadd.f32 %v4328_v45, %v1247_v11  ;;  %v2046_v53 = vpack.c.bf16 %v1952_v31, %v1950_v61  ;;  %v376_v17 = vpop.permute.xlu1 %375 }
 0x289   :  { %v1382_v3 = vmax.f32 %v1318_v21, 0.0  ;;  %2473 = vmatprep.mubr.bf16.mxu1 %v2046_v53 }
 0x28a   :  { %2474 = vmatmul.mubr.bf16.gmra.mxu1 %v2045_v15 }
 0x28b   :  { %v381_v33 = vpop.permute.xlu1 %380  ;;  %v1419_v56 = vpack.c.bf16 %v1383_v52, %v1382_v3 }
 0x28c   :  { %v2375_v44 = vpop.f32.mrf.mxu1  ;;  %v474_v28 = vmul.f32 %v3474_v62, %v381_v33 }
 0x28d   :  { %v2376_v39 = vadd.f32 %v2375_v44, %v4371_v18  ;;  %1835 = vmatmul.mubr.bf16.gmra.mxu0 %v1419_v56 }
 0x28e   :  { %v2377_v57 = vpop.f32.mrf.mxu1  ;;  %1844 = vmatprep.mubr.bf16.mxu0 %v3184_v2 }
 0x28f   :  { %v2663_v35 = vmax.f32 %v2662_v54, %v2376_v39  ;;  %v2378_v30 = vadd.f32 %v2377_v57, %v4376_v27  ;;  %v1736_v7 = vpop.f32.mrf.mxu0  ;;  %v473_v54 = vmul.f32 %v3474_v62, %v376_v17 }
 0x290   :  { %v711_v36 = vpop.permute.xlu1 %710  ;;  %v2379_v6 = vpop.f32.mrf.mxu1  ;;  %v1737_v22 = vadd.f32 %v1736_v7, %v3937_v16 }
 0x291   :  { %v2676_v37 = vmax.f32 %v2675_v26, %v2378_v30  ;;  %v798_v23 = vmul.f32 %v3477_v63, %v711_v36  ;;  %v2380_v46 = vadd.f32 %v2379_v6, %v4371_v18  ;;  %v1738_v14 = vpop.f32.mrf.mxu0  ;;  %v861_v31 = vadd.f32 %v797_v41, %v473_v54  ;;  %v1107_v6 = vpop.permute.xlu0 %1106 }
 0x292   :  { %v2381_v55 = vpop.f32.mrf.mxu1  ;;  %v1739_v48 = vadd.f32 %v1738_v14, %v4019_v40  ;;  %v1953_v3 = vmax.f32 %v1737_v22, 0.0  ;;  %v1188_v41 = vmul.f32 %v3491_v9, %v1107_v6 }
 0x293   :  { %v862_v34 = vadd.f32 %v798_v23, %v474_v28  ;;  %v2664_v59 = vmax.f32 %v2663_v35, %v2380_v46  ;;  %v2382_v50 = vadd.f32 %v2381_v55, %v4376_v27  ;;  %v1740_v49 = vpop.f32.mrf.mxu0 }
 0x294   :  { %v1741_v26 = vadd.f32 %v1740_v49, %v3937_v16  ;;  %v1954_v53 = vmax.f32 %v1739_v48, 0.0 }
 0x295   :  { %v2677_v42 = vmax.f32 %v2676_v37, %v2382_v50  ;;  %v1250_v61 = vadd.f32 %v1186_v60, %v862_v34  ;;  %v1095_v5 = vpop.permute.xlu1 %1094  ;;  %v1742_v11 = vpop.f32.mrf.mxu0 }
 0x296   :  { %v1185_v47 = vmul.f32 %v3491_v9, %v1095_v5  ;;  %v1743_v0 = vadd.f32 %v1742_v11, %v4019_v40  ;;  %v1955_v21 = vmax.f32 %v1741_v26, 0.0  ;;  %v799_v11 = vmul.f32 %v3477_v63, %v4395_v4 }
 0x297   :  { %v1321_v17 = vadd.f32 %v4328_v45, %v1250_v61 }
 0x298   :  { %v1249_v15 = vadd.f32 %v1185_v47, %v861_v31  ;;  %v1956_v52 = vmax.f32 %v1743_v0, 0.0  ;;  %v2047_v39 = vpack.c.bf16 %v1955_v21, %v1953_v3 }
 0x299   :  { %v1385_v12 = vmax.f32 %v1321_v17, 0.0 }
 0x29a   :  { %v1320_v33 = vadd.f32 %v4328_v45, %v1249_v15  ;;  %v2048_v56 = vpack.c.bf16 %v1956_v52, %v1954_v53  ;;  %v386_v44 = vpop.permute.xlu1 %385 }
 0x29b   :  { %v475_v48 = vmul.f32 %v3474_v62, %v386_v44 }
 0x29c   :  { %v1384_v57 = vmax.f32 %v1320_v33, 0.0  ;;  %2483 = vmatprep.mubr.bf16.mxu1 %v2048_v56 }
 0x29d   :  { %2484 = vmatmul.mubr.bf16.gmra.mxu1 %v2047_v39  ;;  %v863_v15 = vadd.f32 %v799_v11, %v475_v48 }
 0x29e   :  { %v1420_v35 = vpack.c.bf16 %v1385_v12, %v1384_v57  ;;  %v391_v30 = vpop.permute.xlu1 %390 }
 0x29f   :  { %v2385_v7 = vpop.f32.mrf.mxu1  ;;  %v476_v54 = vmul.f32 %v3474_v62, %v391_v30 }
 0x2a0   :  { %v2386_v36 = vadd.f32 %v2385_v7, %v4371_v18  ;;  %1845 = vmatmul.mubr.bf16.gmra.mxu0 %v1420_v35 }
 0x2a1   :  { %v2387_v60 = vpop.f32.mrf.mxu1  ;;  %1854 = vmatprep.mubr.bf16.mxu0 %v3184_v2 }
 0x2a2   :  { %v2665_v28 = vmax.f32 %v2664_v59, %v2386_v36  ;;  %v2388_v37 = vadd.f32 %v2387_v60, %v4376_v27  ;;  %v1746_v23 = vpop.f32.mrf.mxu0  ;;  %v1115_v60 = vpop.permute.xlu0 %1114 }
 0x2a3   :  { %v719_v46 = vpop.permute.xlu1 %718  ;;  %v2389_v14 = vpop.f32.mrf.mxu1  ;;  %v1747_v47 = vadd.f32 %v1746_v23, %v3937_v16 }
 0x2a4   :  { %v2678_v55 = vmax.f32 %v2677_v42, %v2388_v37  ;;  %v800_v34 = vmul.f32 %v3477_v63, %v719_v46  ;;  %v2390_v50 = vadd.f32 %v2389_v14, %v4371_v18  ;;  %v1748_v49 = vpop.f32.mrf.mxu0 }
 0x2a5   :  { %v2391_v26 = vpop.f32.mrf.mxu1  ;;  %v1749_v31 = vadd.f32 %v1748_v49, %v4019_v40  ;;  %v1957_v12 = vmax.f32 %v1747_v47, 0.0 }
 0x2a6   :  { %v864_v22 = vadd.f32 %v800_v34, %v476_v54  ;;  %v4441_v59 = vmax.f32 %v2665_v28, %v2390_v50  ;;  %v2392_v61 = vadd.f32 %v2391_v26, %v4376_v27  ;;  %v1750_v5 = vpop.f32.mrf.mxu0  ;;  %v723_v14 = vpop.permute.xlu0 %722 }
 0x2a7   :  { %v1751_v42 = vadd.f32 %v1750_v5, %v3937_v16  ;;  %v1958_v56 = vmax.f32 %v1749_v31, 0.0  ;;  %v801_v5 = vmul.f32 %v3477_v63, %v723_v14 }
 0x2a8   :  { %v4449_v0 = vmax.f32 %v2678_v55, %v2392_v61  ;;  %v1252_v21 = vadd.f32 %v1188_v41, %v864_v22  ;;  %v1103_v53 = vpop.permute.xlu1 %1102  ;;  %v1752_v17 = vpop.f32.mrf.mxu0  ;;  %v1190_v22 = vmul.f32 %v3491_v9, %v1115_v60 }
 0x2a9   :  { %v1187_v52 = vmul.f32 %v3491_v9, %v1103_v53  ;;  %v1753_v3 = vadd.f32 %v1752_v17, %v4019_v40  ;;  %v1959_v33 = vmax.f32 %v1751_v42, 0.0 }
 0x2aa   :  { %v1323_v4 = vadd.f32 %v4328_v45, %v1252_v21 }
 0x2ab   :  { %v1251_v44 = vadd.f32 %v1187_v52, %v863_v15  ;;  %v1960_v39 = vmax.f32 %v1753_v3, 0.0  ;;  %v2049_v7 = vpack.c.bf16 %v1959_v33, %v1957_v12 }
 0x2ac   :  { %v1387_v36 = vmax.f32 %v1323_v4, 0.0 }
 0x2ad   :  { %v1322_v57 = vadd.f32 %v4328_v45, %v1251_v44  ;;  %v2050_v35 = vpack.c.bf16 %v1960_v39, %v1958_v56  ;;  %v396_v30 = vpop.permute.xlu1 %395 }
 0x2ae   :  { %v477_v61 = vmul.f32 %v3474_v62, %v396_v30 }
 0x2af   :  { %v1386_v6 = vmax.f32 %v1322_v57, 0.0  ;;  %2493 = vmatprep.mubr.bf16.mxu1 %v2050_v35 }
 0x2b0   :  { %2494 = vmatmul.mubr.bf16.gmra.mxu1 %v2049_v7  ;;  %v865_v44 = vadd.f32 %v801_v5, %v477_v61 }
 0x2b1   :  { %v1421_v28 = vpack.c.bf16 %v1387_v36, %v1386_v6  ;;  %v401_v37 = vpop.permute.xlu1 %400 }
 0x2b2   :  { %v2395_v23 = vpop.f32.mrf.mxu1  ;;  %v478_v34 = vmul.f32 %v3474_v62, %v401_v37 }
 0x2b3   :  { %1855 = vmatmul.mubr.bf16.gmra.mxu0 %v1421_v28  ;;  %v2396_v50 = vadd.f32 %v2395_v23, %v4371_v18 }
 0x2b4   :  { %v2397_v46 = vpop.f32.mrf.mxu1  ;;  %1864 = vmatprep.mubr.bf16.mxu0 %v3184_v2 }
 0x2b5   :  { %v1756_v41 = vpop.f32.mrf.mxu0  ;;  %v2398_v31 = vadd.f32 %v2397_v46, %v4376_v27 }
 0x2b6   :  { %v727_v54 = vpop.permute.xlu1 %726  ;;  %v2399_v55 = vpop.f32.mrf.mxu1  ;;  %v1757_v52 = vadd.f32 %v1756_v41, %v3937_v16 }
 0x2b7   :  { %v802_v49 = vmul.f32 %v3477_v63, %v727_v54  ;;  %v2400_v48 = vadd.f32 %v2399_v55, %v4371_v18  ;;  %v1758_v26 = vpop.f32.mrf.mxu0  ;;  %v731_v41 = vpop.permute.xlu0 %730 }
 0x2b8   :  { %v2401_v11 = vpop.f32.mrf.mxu1  ;;  %v1759_v17 = vadd.f32 %v1758_v26, %v4019_v40  ;;  %v1961_v6 = vmax.f32 %v1757_v52, 0.0 }
 0x2b9   :  { %v866_v42 = vadd.f32 %v802_v49, %v478_v34  ;;  %v2686_v47 = vmax.f32 %v2396_v50, %v2400_v48  ;;  %v2402_v21 = vadd.f32 %v2401_v11, %v4376_v27  ;;  %v1760_v53 = vpop.f32.mrf.mxu0 }
 0x2ba   :  { %v1761_v15 = vadd.f32 %v1760_v53, %v3937_v16  ;;  %v1962_v30 = vmax.f32 %v1759_v17, 0.0 }
 0x2bb   :  { %v1254_v3 = vadd.f32 %v1190_v22, %v866_v42  ;;  %v2699_v33 = vmax.f32 %v2398_v31, %v2402_v21  ;;  %v1111_v56 = vpop.permute.xlu1 %1110  ;;  %v1762_v4 = vpop.f32.mrf.mxu0 }
 0x2bc   :  { %v1189_v39 = vmul.f32 %v3491_v9, %v1111_v56  ;;  %v1763_v12 = vadd.f32 %v1762_v4, %v4019_v40  ;;  %v1963_v57 = vmax.f32 %v1761_v15, 0.0  ;;  %v1123_v49 = vpop.permute.xlu0 %1122 }
 0x2bd   :  { %v1325_v35 = vadd.f32 %v4328_v45, %v1254_v3  ;;  %v1192_v31 = vmul.f32 %v3491_v9, %v1123_v49 }
 0x2be   :  { %v1253_v7 = vadd.f32 %v1189_v39, %v865_v44  ;;  %v1964_v36 = vmax.f32 %v1763_v12, 0.0  ;;  %v2051_v23 = vpack.c.bf16 %v1963_v57, %v1961_v6  ;;  %v1573_v6 = vadd.f32 %v3962_v29, %v4019_v40 }
 0x2bf   :  { %v1389_v46 = vmax.f32 %v1325_v35, 0.0 }
 0x2c0   :  { %v1324_v60 = vadd.f32 %v4328_v45, %v1253_v7  ;;  %v2052_v28 = vpack.c.bf16 %v1964_v36, %v1962_v30  ;;  %v406_v37 = vpop.permute.xlu1 %405 }
 0x2c1   :  { %v479_v52 = vmul.f32 %v3474_v62, %v406_v37 }
 0x2c2   :  { %v1388_v14 = vmax.f32 %v1324_v60, 0.0  ;;  %2503 = vmatprep.mubr.bf16.mxu1 %v2052_v28 }
 0x2c3   :  { %2504 = vmatmul.mubr.bf16.gmra.mxu1 %v2051_v23 }
 0x2c4   :  { %v1422_v54 = vpack.c.bf16 %v1389_v46, %v1388_v14  ;;  %v411_v55 = vpop.permute.xlu1 %410  ;;  %v1569_v14 = vadd.f32 %v3941_v20, %v4019_v40  ;;  %v1579_v20 = vadd.f32 %v3972_v58, %v4019_v40 }
 0x2c5   :  { %v2405_v34 = vpop.f32.mrf.mxu1  ;;  %v480_v42 = vmul.f32 %v3474_v62, %v411_v55 }
 0x2c6   :  { %v2406_v50 = vadd.f32 %v2405_v34, %v4371_v18  ;;  %1865 = vmatmul.mubr.bf16.gmra.mxu0 %v1422_v54  ;;  %v1888_v34 = vmax.f32 %v1573_v6, 0.0 }
 0x2c7   :  { %v2407_v48 = vpop.f32.mrf.mxu1  ;;  %1874 = vmatprep.mubr.bf16.mxu0 %v3184_v2  ;;  %v803_v2 = vmul.f32 %v3477_v63, %v731_v41 }
 0x2c8   :  { %v2687_v26 = vmax.f32 %v2686_v47, %v2406_v50  ;;  %v2408_v22 = vadd.f32 %v2407_v48, %v4376_v27  ;;  %v1766_v61 = vpop.f32.mrf.mxu0  ;;  %v1886_v48 = vmax.f32 %v1569_v14, 0.0 }
 0x2c9   :  { %v735_v5 = vpop.permute.xlu1 %734  ;;  %v2409_v11 = vpop.f32.mrf.mxu1  ;;  %v867_v36 = vadd.f32 %v803_v2, %v479_v52  ;;  %v1890_v52 = vmax.f32 %v1579_v20, 0.0 }
 0x2ca   :  { %v2700_v21 = vmax.f32 %v2699_v33, %v2408_v22  ;;  %v804_v53 = vmul.f32 %v3477_v63, %v735_v5  ;;  %v2410_v17 = vadd.f32 %v2409_v11, %v4371_v18  ;;  %v1768_v15 = vpop.f32.mrf.mxu0  ;;  %v1767_v33 = vadd.f32 %v1766_v61, %v3937_v16 }
 0x2cb   :  { %v2411_v47 = vpop.f32.mrf.mxu1  ;;  %v1769_v39 = vadd.f32 %v1768_v15, %v4019_v40  ;;  %v2014_v61 = vpack.c.bf16 %v1888_v34, %v1886_v48 }
 0x2cc   :  { %v868_v3 = vadd.f32 %v804_v53, %v480_v42  ;;  %v2688_v56 = vmax.f32 %v2687_v26, %v2410_v17  ;;  %v2412_v4 = vadd.f32 %v2411_v47, %v4376_v27  ;;  %v1770_v44 = vpop.f32.mrf.mxu0  ;;  %v1965_v41 = vmax.f32 %v1767_v33, 0.0 }
 0x2cd   :  { %v1771_v12 = vadd.f32 %v1770_v44, %v3937_v16  ;;  %v1966_v28 = vmax.f32 %v1769_v39, 0.0  ;;  %v1583_v26 = vadd.f32 %v3999_v32, %v4019_v40 }
 0x2ce   :  { %v2701_v57 = vmax.f32 %v2700_v21, %v2412_v4  ;;  %v1256_v35 = vadd.f32 %v1192_v31, %v868_v3  ;;  %v1119_v30 = vpop.permute.xlu1 %1118  ;;  %v1772_v7 = vpop.f32.mrf.mxu0 }
 0x2cf   :  { %v1191_v62 = vmul.f32 %v3491_v9, %v1119_v30  ;;  %v1773_v63 = vadd.f32 %v1772_v7, %v4019_v40  ;;  %v1967_v60 = vmax.f32 %v1771_v12, 0.0  ;;  %v1892_v21 = vmax.f32 %v1583_v26, 0.0 }
 0x2d0   :  { %v1327_v37 = vadd.f32 %v4328_v45, %v1256_v35 }
 0x2d1   :  { %v1255_v23 = vadd.f32 %v1191_v62, %v867_v36  ;;  %v1968_v46 = vmax.f32 %v1773_v63, 0.0  ;;  %v2053_v9 = vpack.c.bf16 %v1967_v60, %v1965_v41 }
 0x2d2   :  { %v1391_v50 = vmax.f32 %v1327_v37, 0.0 }
 0x2d3   :  { %v1326_v54 = vadd.f32 %v4328_v45, %v1255_v23  ;;  %v2054_v55 = vpack.c.bf16 %v1968_v46, %v1966_v28 }
 0x2d5   :  { %v1390_v49 = vmax.f32 %v1326_v54, 0.0  ;;  %2513 = vmatprep.mubr.bf16.mxu1 %v2054_v55 }
 0x2d6   :  { %2514 = vmatmul.mubr.bf16.gmra.mxu1 %v2053_v9 }
 0x2d7   :  { %v1423_v29 = vpack.c.bf16 %v1391_v50, %v1390_v49 }
 0x2d8   :  { %v2415_v22 = vpop.f32.mrf.mxu1 }
 0x2d9   :  { %v2416_v5 = vadd.f32 %v2415_v22, %v4371_v18  ;;  %1875 = vmatmul.mubr.bf16.gmra.mxu0 %v1423_v29 }
 0x2da   :  { %2313 = vmatprep.mubr.bf16.mxu0 %v2014_v61  ;;  %v2417_v45 = vpop.f32.mrf.mxu1 }
 0x2db   :  { %v2689_v11 = vmax.f32 %v2688_v56, %v2416_v5  ;;  %v2418_v31 = vadd.f32 %v2417_v45, %v4376_v27  ;;  %v1776_v42 = vpop.f32.mrf.mxu0  ;;  %v2016_v56 = vpack.c.bf16 %v1892_v21, %v1890_v52 }
 0x2dc   :  { %v2419_v53 = vpop.f32.mrf.mxu1  ;;  %v1777_v39 = vadd.f32 %v1776_v42, %v3937_v16 }
 0x2dd   :  { %v2702_v17 = vmax.f32 %v2701_v57, %v2418_v31  ;;  %v2420_v15 = vadd.f32 %v2419_v53, %v4371_v18  ;;  %v1778_v32 = vpop.f32.mrf.mxu0 }
 0x2de   :  { %v2421_v2 = vpop.f32.mrf.mxu1  ;;  %v1779_v58 = vadd.f32 %v1778_v32, %v4019_v40  ;;  %v1969_v36 = vmax.f32 %v1777_v39, 0.0 }
 0x2df   :  { %v2690_v47 = vmax.f32 %v2689_v11, %v2420_v15  ;;  %v2422_v3 = vadd.f32 %v2421_v2, %v4376_v27  ;;  %v1780_v4 = vpop.f32.mrf.mxu0 }
 0x2e0   :  { %v1781_v44 = vadd.f32 %v1780_v4, %v3937_v16  ;;  %v1970_v30 = vmax.f32 %v1779_v58, 0.0 }
 0x2e1   :  { %v2703_v12 = vmax.f32 %v2702_v17, %v2422_v3  ;;  %v1782_v33 = vpop.f32.mrf.mxu0  ;;  %2314 = vmatmul.mubr.bf16.vlgmr.msra.gmra.mxu0 %v3954_v24 }
 0x2e2   :  { %v1783_v57 = vadd.f32 %v1782_v33, %v4019_v40  ;;  %2323 = vmatprep.mubr.bf16.mxu0 %v2016_v56  ;;  %v1971_v35 = vmax.f32 %v1781_v44, 0.0 }
 0x2e4   :  { %v1972_v7 = vmax.f32 %v1783_v57, 0.0  ;;  %v2055_v63 = vpack.c.bf16 %v1971_v35, %v1969_v36 }
 0x2e6   :  { %v2056_v62 = vpack.c.bf16 %v1972_v7, %v1970_v30 }
 0x2e8   :  { %2523 = vmatprep.mubr.bf16.mxu1 %v2056_v62 }
 0x2e9   :  { %2324 = vmatmul.mubr.bf16.gmra.mxu0 %v3980_v8  ;;  %2524 = vmatmul.mubr.bf16.gmra.mxu1 %v2055_v63 }
 0x2eb   :  { %v2425_v6 = vpop.f32.mrf.mxu1 }
 0x2ec   :  { %v2426_v60 = vadd.f32 %v2425_v6, %v4371_v18 }
 0x2ed   :  { %v2427_v28 = vpop.f32.mrf.mxu1 }
 0x2ee   :  { %v2691_v37 = vmax.f32 %v2690_v47, %v2426_v60  ;;  %v2428_v24 = vadd.f32 %v2427_v28, %v4376_v27  ;;  %v1786_v23 = vpop.f32.mrf.mxu0 }
 0x2ef   :  { %v2429_v46 = vpop.f32.mrf.mxu1  ;;  %v1787_v48 = vadd.f32 %v1786_v23, %v3937_v16 }
 0x2f0   :  { %v2704_v14 = vmax.f32 %v2703_v12, %v2428_v24  ;;  %v2430_v41 = vadd.f32 %v2429_v46, %v4371_v18  ;;  %v1788_v54 = vpop.f32.mrf.mxu0 }
 0x2f1   :  { %v2431_v55 = vpop.f32.mrf.mxu1  ;;  %v1789_v50 = vadd.f32 %v1788_v54, %v4019_v40  ;;  %v1973_v45 = vmax.f32 %v1787_v48, 0.0 }
 0x2f2   :  { %v4510_v34 = vmax.f32 %v2691_v37, %v2430_v41  ;;  %v2432_v9 = vadd.f32 %v2431_v55, %v4376_v27  ;;  %v1790_v8 = vpop.f32.mrf.mxu0 }
 0x2f3   :  { %v1791_v49 = vadd.f32 %v1790_v8, %v3937_v16  ;;  %v1974_v5 = vmax.f32 %v1789_v50, 0.0 }
 0x2f4   :  { %v4516_v29 = vmax.f32 %v2704_v14, %v2432_v9  ;;  %v1792_v26 = vpop.f32.mrf.mxu0 }
 0x2f5   :  { %v1793_v22 = vadd.f32 %v1792_v26, %v4019_v40  ;;  %v1975_v61 = vmax.f32 %v1791_v49, 0.0 }
 0x2f7   :  { %v1976_v20 = vmax.f32 %v1793_v22, 0.0  ;;  %v2057_v31 = vpack.c.bf16 %v1975_v61, %v1973_v45 }
 0x2f9   :  { %v2058_v11 = vpack.c.bf16 %v1976_v20, %v1974_v5 }
 0x2fb   :  { %2533 = vmatprep.mubr.bf16.mxu1 %v2058_v11 }
 0x2fc   :  { %2534 = vmatmul.mubr.bf16.gmra.mxu1 %v2057_v31 }
 0x2fe   :  { %v2435_v42 = vpop.f32.mrf.mxu1 }
 0x2ff   :  { %v2436_v15 = vadd.f32 %v2435_v42, %v4371_v18 }
 0x300   :  { %v2437_v21 = vpop.f32.mrf.mxu1 }
 0x301   :  { %v1796_v53 = vpop.f32.mrf.mxu0  ;;  %v2438_v47 = vadd.f32 %v2437_v21, %v4376_v27 }
 0x302   :  { %v2439_v17 = vpop.f32.mrf.mxu1  ;;  %v1797_v39 = vadd.f32 %v1796_v53, %v3937_v16 }
 0x303   :  { %v2440_v32 = vadd.f32 %v2439_v17, %v4371_v18  ;;  %v1798_v52 = vpop.f32.mrf.mxu0 }
 0x304   :  { %v2441_v2 = vpop.f32.mrf.mxu1  ;;  %v1799_v44 = vadd.f32 %v1798_v52, %v4019_v40  ;;  %v1977_v36 = vmax.f32 %v1797_v39, 0.0 }
 0x305   :  { %v2712_v3 = vmax.f32 %v2436_v15, %v2440_v32  ;;  %v2442_v4 = vadd.f32 %v2441_v2, %v4376_v27  ;;  %v1800_v58 = vpop.f32.mrf.mxu0 }
 0x306   :  { %v1801_v56 = vadd.f32 %v1800_v58, %v3937_v16  ;;  %v1978_v30 = vmax.f32 %v1799_v44, 0.0 }
 0x307   :  { %v2725_v12 = vmax.f32 %v2438_v47, %v2442_v4  ;;  %v1802_v33 = vpop.f32.mrf.mxu0 }
 0x308   :  { %v1803_v57 = vadd.f32 %v1802_v33, %v4019_v40  ;;  %v1979_v35 = vmax.f32 %v1801_v56, 0.0 }
 0x30a   :  { %v1980_v7 = vmax.f32 %v1803_v57, 0.0  ;;  %v2059_v63 = vpack.c.bf16 %v1979_v35, %v1977_v36 }
 0x30c   :  { %v2060_v62 = vpack.c.bf16 %v1980_v7, %v1978_v30 }
 0x30e   :  { %2543 = vmatprep.mubr.bf16.mxu1 %v2060_v62 }
 0x30f   :  { %2544 = vmatmul.mubr.bf16.gmra.mxu1 %v2059_v63 }
 0x311   :  { %v2445_v6 = vpop.f32.mrf.mxu1 }
 0x312   :  { %v2446_v60 = vadd.f32 %v2445_v6, %v4371_v18 }
 0x313   :  { %v2447_v28 = vpop.f32.mrf.mxu1 }
 0x314   :  { %v2713_v37 = vmax.f32 %v2712_v3, %v2446_v60  ;;  %v2448_v24 = vadd.f32 %v2447_v28, %v4376_v27  ;;  %v1806_v23 = vpop.f32.mrf.mxu0 }
 0x315   :  { %v2449_v46 = vpop.f32.mrf.mxu1  ;;  %v1807_v26 = vadd.f32 %v1806_v23, %v3937_v16 }
 0x316   :  { %v2726_v14 = vmax.f32 %v2725_v12, %v2448_v24  ;;  %v2450_v41 = vadd.f32 %v2449_v46, %v4371_v18  ;;  %v1808_v54 = vpop.f32.mrf.mxu0 }
 0x317   :  { %v2451_v55 = vpop.f32.mrf.mxu1  ;;  %v1809_v49 = vadd.f32 %v1808_v54, %v4019_v40  ;;  %v1981_v31 = vmax.f32 %v1807_v26, 0.0 }
 0x318   :  { %v2714_v9 = vmax.f32 %v2713_v37, %v2450_v41  ;;  %v2452_v8 = vadd.f32 %v2451_v55, %v4376_v27  ;;  %v1810_v50 = vpop.f32.mrf.mxu0 }
 0x319   :  { %v1811_v48 = vadd.f32 %v1810_v50, %v3937_v16  ;;  %v1982_v45 = vmax.f32 %v1809_v49, 0.0 }
 0x31a   :  { %v2727_v22 = vmax.f32 %v2726_v14, %v2452_v8  ;;  %v1812_v61 = vpop.f32.mrf.mxu0 }
 0x31b   :  { %v1813_v5 = vadd.f32 %v1812_v61, %v4019_v40  ;;  %v1983_v20 = vmax.f32 %v1811_v48, 0.0 }
 0x31d   :  { %v1984_v11 = vmax.f32 %v1813_v5, 0.0  ;;  %v2061_v21 = vpack.c.bf16 %v1983_v20, %v1981_v31 }
 0x31f   :  { %v2062_v42 = vpack.c.bf16 %v1984_v11, %v1982_v45 }
 0x321   :  { %2553 = vmatprep.mubr.bf16.mxu1 %v2062_v42 }
 0x322   :  { %2554 = vmatmul.mubr.bf16.gmra.mxu1 %v2061_v21 }
 0x324   :  { %v2455_v53 = vpop.f32.mrf.mxu1 }
 0x325   :  { %v2456_v17 = vadd.f32 %v2455_v53, %v4371_v18 }
 0x326   :  { %v2457_v15 = vpop.f32.mrf.mxu1 }
 0x327   :  { %v2715_v32 = vmax.f32 %v2714_v9, %v2456_v17  ;;  %v2458_v52 = vadd.f32 %v2457_v15, %v4376_v27  ;;  %v1816_v2 = vpop.f32.mrf.mxu0 }
 0x328   :  { %v2459_v47 = vpop.f32.mrf.mxu1  ;;  %v1817_v35 = vadd.f32 %v1816_v2, %v3937_v16 }
 0x329   :  { %v2728_v3 = vmax.f32 %v2727_v22, %v2458_v52  ;;  %v2460_v4 = vadd.f32 %v2459_v47, %v4371_v18  ;;  %v1818_v58 = vpop.f32.mrf.mxu0 }
 0x32a   :  { %v2461_v44 = vpop.f32.mrf.mxu1  ;;  %v1819_v33 = vadd.f32 %v1818_v58, %v4019_v40  ;;  %v1985_v60 = vmax.f32 %v1817_v35, 0.0 }
 0x32b   :  { %v2716_v56 = vmax.f32 %v2715_v32, %v2460_v4  ;;  %v2462_v39 = vadd.f32 %v2461_v44, %v4376_v27  ;;  %v1820_v12 = vpop.f32.mrf.mxu0 }
 0x32c   :  { %v1821_v57 = vadd.f32 %v1820_v12, %v3937_v16  ;;  %v1986_v63 = vmax.f32 %v1819_v33, 0.0 }
 0x32d   :  { %v2729_v30 = vmax.f32 %v2728_v3, %v2462_v39  ;;  %v1822_v7 = vpop.f32.mrf.mxu0 }
 0x32e   :  { %v1823_v36 = vadd.f32 %v1822_v7, %v4019_v40  ;;  %v1987_v62 = vmax.f32 %v1821_v57, 0.0 }
 0x330   :  { %v1988_v6 = vmax.f32 %v1823_v36, 0.0  ;;  %v2063_v37 = vpack.c.bf16 %v1987_v62, %v1985_v60 }
 0x332   :  { %v2064_v28 = vpack.c.bf16 %v1988_v6, %v1986_v63 }
 0x334   :  { %2563 = vmatprep.mubr.bf16.mxu1 %v2064_v28 }
 0x335   :  { %2564 = vmatmul.mubr.bf16.gmra.mxu1 %v2063_v37 }
 0x337   :  { %v2465_v24 = vpop.f32.mrf.mxu1 }
 0x338   :  { %v2466_v23 = vadd.f32 %v2465_v24, %v4371_v18 }
 0x339   :  { %v2467_v46 = vpop.f32.mrf.mxu1 }
 0x33a   :  { %v2717_v14 = vmax.f32 %v2716_v56, %v2466_v23  ;;  %v2468_v41 = vadd.f32 %v2467_v46, %v4376_v27  ;;  %v1826_v54 = vpop.f32.mrf.mxu0 }
 0x33b   :  { %v2469_v55 = vpop.f32.mrf.mxu1  ;;  %v1827_v20 = vadd.f32 %v1826_v54, %v3937_v16 }
 0x33c   :  { %v2730_v9 = vmax.f32 %v2729_v30, %v2468_v41  ;;  %v2470_v8 = vadd.f32 %v2469_v55, %v4371_v18  ;;  %v1828_v50 = vpop.f32.mrf.mxu0 }
 0x33d   :  { %v2471_v49 = vpop.f32.mrf.mxu1  ;;  %v1829_v61 = vadd.f32 %v1828_v50, %v4019_v40  ;;  %v1989_v17 = vmax.f32 %v1827_v20, 0.0 }
 0x33e   :  { %v4546_v48 = vmax.f32 %v2717_v14, %v2470_v8  ;;  %v2472_v26 = vadd.f32 %v2471_v49, %v4376_v27  ;;  %v1830_v22 = vpop.f32.mrf.mxu0 }
 0x33f   :  { %v1831_v5 = vadd.f32 %v1830_v22, %v3937_v16  ;;  %v1990_v21 = vmax.f32 %v1829_v61, 0.0 }
 0x340   :  { %v4552_v45 = vmax.f32 %v2730_v9, %v2472_v26  ;;  %v1832_v11 = vpop.f32.mrf.mxu0 }
 0x341   :  { %v1833_v31 = vadd.f32 %v1832_v11, %v4019_v40  ;;  %v1991_v42 = vmax.f32 %v1831_v5, 0.0 }
 0x343   :  { %v1992_v53 = vmax.f32 %v1833_v31, 0.0  ;;  %v2065_v32 = vpack.c.bf16 %v1991_v42, %v1989_v17 }
 0x345   :  { %v2066_v15 = vpack.c.bf16 %v1992_v53, %v1990_v21 }
 0x347   :  { %2573 = vmatprep.mubr.bf16.mxu1 %v2066_v15 }
 0x348   :  { %2574 = vmatmul.mubr.bf16.gmra.mxu1 %v2065_v32 }
 0x34a   :  { %v2475_v52 = vpop.f32.mrf.mxu1 }
 0x34b   :  { %v2476_v4 = vadd.f32 %v2475_v52, %v4371_v18 }
 0x34c   :  { %v2477_v2 = vpop.f32.mrf.mxu1 }
 0x34d   :  { %v1836_v47 = vpop.f32.mrf.mxu0  ;;  %v2478_v39 = vadd.f32 %v2477_v2, %v4376_v27 }
 0x34e   :  { %v2479_v3 = vpop.f32.mrf.mxu1  ;;  %v1837_v7 = vadd.f32 %v1836_v47, %v3937_v16 }
 0x34f   :  { %v2480_v58 = vadd.f32 %v2479_v3, %v4371_v18  ;;  %v1838_v44 = vpop.f32.mrf.mxu0 }
 0x350   :  { %v2481_v56 = vpop.f32.mrf.mxu1  ;;  %v1839_v35 = vadd.f32 %v1838_v44, %v4019_v40  ;;  %v1993_v37 = vmax.f32 %v1837_v7, 0.0 }
 0x351   :  { %v2738_v12 = vmax.f32 %v2476_v4, %v2480_v58  ;;  %v2482_v33 = vadd.f32 %v2481_v56, %v4376_v27  ;;  %v1840_v57 = vpop.f32.mrf.mxu0 }
 0x352   :  { %v1841_v30 = vadd.f32 %v1840_v57, %v3937_v16  ;;  %v1994_v60 = vmax.f32 %v1839_v35, 0.0 }
 0x353   :  { %v2751_v36 = vmax.f32 %v2478_v39, %v2482_v33  ;;  %v1842_v62 = vpop.f32.mrf.mxu0 }
 0x354   :  { %v1843_v63 = vadd.f32 %v1842_v62, %v4019_v40  ;;  %v1995_v6 = vmax.f32 %v1841_v30, 0.0 }
 0x356   :  { %v1996_v28 = vmax.f32 %v1843_v63, 0.0  ;;  %v2067_v23 = vpack.c.bf16 %v1995_v6, %v1993_v37 }
 0x358   :  { %v2068_v24 = vpack.c.bf16 %v1996_v28, %v1994_v60 }
 0x35a   :  { %2583 = vmatprep.mubr.bf16.mxu1 %v2068_v24 }
 0x35b   :  { %2584 = vmatmul.mubr.bf16.gmra.mxu1 %v2067_v23 }
 0x35d   :  { %v2485_v46 = vpop.f32.mrf.mxu1 }
 0x35e   :  { %v2486_v14 = vadd.f32 %v2485_v46, %v4371_v18 }
 0x35f   :  { %v2487_v41 = vpop.f32.mrf.mxu1 }
 0x360   :  { %v2739_v54 = vmax.f32 %v2738_v12, %v2486_v14  ;;  %v2488_v55 = vadd.f32 %v2487_v41, %v4376_v27  ;;  %v1846_v9 = vpop.f32.mrf.mxu0 }
 0x361   :  { %v2489_v8 = vpop.f32.mrf.mxu1  ;;  %v1847_v42 = vadd.f32 %v1846_v9, %v3937_v16 }
 0x362   :  { %v2752_v50 = vmax.f32 %v2751_v36, %v2488_v55  ;;  %v2490_v49 = vadd.f32 %v2489_v8, %v4371_v18  ;;  %v1848_v26 = vpop.f32.mrf.mxu0 }
 0x363   :  { %v2491_v22 = vpop.f32.mrf.mxu1  ;;  %v1849_v11 = vadd.f32 %v1848_v26, %v4019_v40  ;;  %v1997_v2 = vmax.f32 %v1847_v42, 0.0 }
 0x364   :  { %v2740_v61 = vmax.f32 %v2739_v54, %v2490_v49  ;;  %v2492_v5 = vadd.f32 %v2491_v22, %v4376_v27  ;;  %v1850_v20 = vpop.f32.mrf.mxu0 }
 0x365   :  { %v1851_v31 = vadd.f32 %v1850_v20, %v3937_v16  ;;  %v1998_v32 = vmax.f32 %v1849_v11, 0.0 }
 0x366   :  { %v2753_v21 = vmax.f32 %v2752_v50, %v2492_v5  ;;  %v1852_v53 = vpop.f32.mrf.mxu0 }
 0x367   :  { %v1853_v17 = vadd.f32 %v1852_v53, %v4019_v40  ;;  %v1999_v15 = vmax.f32 %v1851_v31, 0.0 }
 0x369   :  { %v2000_v52 = vmax.f32 %v1853_v17, 0.0  ;;  %v2069_v3 = vpack.c.bf16 %v1999_v15, %v1997_v2 }
 0x36b   :  { %v2070_v47 = vpack.c.bf16 %v2000_v52, %v1998_v32 }
 0x36d   :  { %2593 = vmatprep.mubr.bf16.mxu1 %v2070_v47 }
 0x36e   :  { %2594 = vmatmul.mubr.bf16.gmra.mxu1 %v2069_v3 }
 0x370   :  { %v2495_v4 = vpop.f32.mrf.mxu1 }
 0x371   :  { %v2496_v58 = vadd.f32 %v2495_v4, %v4371_v18 }
 0x372   :  { %v2497_v44 = vpop.f32.mrf.mxu1 }
 0x373   :  { %v2741_v56 = vmax.f32 %v2740_v61, %v2496_v58  ;;  %v2498_v39 = vadd.f32 %v2497_v44, %v4376_v27  ;;  %v1856_v12 = vpop.f32.mrf.mxu0 }
 0x374   :  { %v2499_v33 = vpop.f32.mrf.mxu1  ;;  %v1857_v28 = vadd.f32 %v1856_v12, %v3937_v16 }
 0x375   :  { %v2754_v57 = vmax.f32 %v2753_v21, %v2498_v39  ;;  %v2500_v35 = vadd.f32 %v2499_v33, %v4371_v18  ;;  %v1858_v30 = vpop.f32.mrf.mxu0 }
 0x376   :  { %v2501_v7 = vpop.f32.mrf.mxu1  ;;  %v1859_v6 = vadd.f32 %v1858_v30, %v4019_v40  ;;  %v2001_v54 = vmax.f32 %v1857_v28, 0.0 }
 0x377   :  { %v2742_v36 = vmax.f32 %v2741_v56, %v2500_v35  ;;  %v2502_v62 = vadd.f32 %v2501_v7, %v4376_v27  ;;  %v1860_v63 = vpop.f32.mrf.mxu0 }
 0x378   :  { %v1861_v60 = vadd.f32 %v1860_v63, %v3937_v16  ;;  %v2002_v14 = vmax.f32 %v1859_v6, 0.0 }
 0x379   :  { %v2755_v37 = vmax.f32 %v2754_v57, %v2502_v62  ;;  %v1862_v24 = vpop.f32.mrf.mxu0 }
 0x37a   :  { %v1863_v23 = vadd.f32 %v1862_v24, %v4019_v40  ;;  %v2003_v46 = vmax.f32 %v1861_v60, 0.0 }
 0x37c   :  { %v2004_v41 = vmax.f32 %v1863_v23, 0.0  ;;  %v2071_v9 = vpack.c.bf16 %v2003_v46, %v2001_v54 }
 0x37e   :  { %v2072_v55 = vpack.c.bf16 %v2004_v41, %v2002_v14 }
 0x380   :  { %2603 = vmatprep.mubr.bf16.mxu1 %v2072_v55 }
 0x381   :  { %2604 = vmatmul.mubr.bf16.gmra.mxu1 %v2071_v9 }
 0x383   :  { %v2505_v8 = vpop.f32.mrf.mxu1 }
 0x384   :  { %v2506_v50 = vadd.f32 %v2505_v8, %v4371_v18 }
 0x385   :  { %v2507_v49 = vpop.f32.mrf.mxu1 }
 0x386   :  { %v2743_v26 = vmax.f32 %v2742_v36, %v2506_v50  ;;  %v2508_v22 = vadd.f32 %v2507_v49, %v4376_v27  ;;  %v1866_v61 = vpop.f32.mrf.mxu0 }
 0x387   :  { %v2509_v5 = vpop.f32.mrf.mxu1  ;;  %v1867_v52 = vadd.f32 %v1866_v61, %v3937_v16 }
 0x388   :  { %v2756_v20 = vmax.f32 %v2755_v37, %v2508_v22  ;;  %v2510_v11 = vadd.f32 %v2509_v5, %v4371_v18  ;;  %v1868_v31 = vpop.f32.mrf.mxu0 }
 0x389   :  { %v2511_v42 = vpop.f32.mrf.mxu1  ;;  %v1869_v15 = vadd.f32 %v1868_v31, %v4019_v40  ;;  %v2005_v56 = vmax.f32 %v1867_v52, 0.0 }
 0x38a   :  { %v4582_v21 = vmax.f32 %v2743_v26, %v2510_v11  ;;  %v2512_v53 = vadd.f32 %v2511_v42, %v4376_v27  ;;  %v1870_v17 = vpop.f32.mrf.mxu0 }
 0x38b   :  { %v1871_v32 = vadd.f32 %v1870_v17, %v3937_v16  ;;  %v2006_v58 = vmax.f32 %v1869_v15, 0.0  ;;  %v2667_v15 = vrot.slane %v4441_v59, 4 }
 0x38c   :  { %v4588_v2 = vmax.f32 %v2756_v20, %v2512_v53  ;;  %v1872_v47 = vpop.f32.mrf.mxu0 }
 0x38d   :  { %v1873_v3 = vadd.f32 %v1872_v47, %v4019_v40  ;;  %v2007_v4 = vmax.f32 %v1871_v32, 0.0  ;;  %v2680_v32 = vrot.slane %v4449_v0, 4 }
 0x38f   :  { %v2008_v44 = vmax.f32 %v1873_v3, 0.0  ;;  %v2073_v12 = vpack.c.bf16 %v2007_v4, %v2005_v56 }
 0x391   :  { %v2074_v39 = vpack.c.bf16 %v2008_v44, %v2006_v58 }
 0x393   :  { %2613 = vmatprep.mubr.bf16.mxu1 %v2074_v39 }
 0x394   :  { %2614 = vmatmul.mubr.bf16.gmra.mxu1 %v2073_v12 }
 0x396   :  { %v2515_v33 = vpop.f32.mrf.mxu1 }
 0x397   :  { %v2516_v7 = vadd.f32 %v2515_v33, %v4371_v18 }
 0x398   :  { %v2517_v57 = vpop.f32.mrf.mxu1 }
 0x399   :  { %v1876_v35 = vpop.f32.mrf.mxu0  ;;  %v2518_v6 = vadd.f32 %v2517_v57, %v4376_v27 }
 0x39a   :  { %v2519_v30 = vpop.f32.mrf.mxu1  ;;  %v1877_v46 = vadd.f32 %v1876_v35, %v3937_v16 }
 0x39b   :  { %v2520_v36 = vadd.f32 %v2519_v30, %v4371_v18  ;;  %v1878_v62 = vpop.f32.mrf.mxu0 }
 0x39c   :  { %v2521_v63 = vpop.f32.mrf.mxu1  ;;  %v1879_v24 = vadd.f32 %v1878_v62, %v4019_v40  ;;  %v2009_v49 = vmax.f32 %v1877_v46, 0.0  ;;  %v2668_v62 = vmax.f32 %v4441_v59, %v2667_v15  ;;  %v2693_v59 = vrot.slane %v4510_v34, 4 }
 0x39d   :  { %v2764_v60 = vmax.f32 %v2516_v7, %v2520_v36  ;;  %v2522_v28 = vadd.f32 %v2521_v63, %v4376_v27  ;;  %v1880_v37 = vpop.f32.mrf.mxu0  ;;  %v2336_v36 = vadd.f32 %v4319_v10, %v4371_v18  ;;  %v2681_v63 = vmax.f32 %v4449_v0, %v2680_v32 }
 0x39e   :  { %v1881_v23 = vadd.f32 %v1880_v37, %v3937_v16  ;;  %v2010_v8 = vmax.f32 %v1879_v24, 0.0  ;;  %v2340_v10 = vadd.f32 %v4336_v1, %v4371_v18  ;;  %v2706_v0 = vrot.slane %v4516_v29, 4 }
 0x39f   :  { %v2777_v14 = vmax.f32 %v2518_v6, %v2522_v28  ;;  %v1882_v41 = vpop.f32.mrf.mxu0  ;;  %v2745_v1 = vrot.slane %v4582_v21, 4 }
 0x3a0   :  { %v1883_v54 = vadd.f32 %v1882_v41, %v4019_v40  ;;  %v2011_v55 = vmax.f32 %v1881_v23, 0.0  ;;  %v2719_v41 = vrot.slane %v4546_v48, 4 }
 0x3a1   :  { %v2315_v9 = vpop.f32.mrf.mxu0 }
 0x3a2   :  { %v2012_v50 = vmax.f32 %v1883_v54, 0.0  ;;  %v2075_v61 = vpack.c.bf16 %v2011_v55, %v2009_v49  ;;  %v2316_v40 = vadd.f32 %v2315_v9, %v4371_v18  ;;  %v2682_v49 = vrot.slane %v2681_v63, 2 }
 0x3a3   :  { %v2317_v26 = vpop.f32.mrf.mxu0 }
 0x3a4   :  { %v2076_v22 = vpack.c.bf16 %v2012_v50, %v2010_v8  ;;  %v2318_v52 = vadd.f32 %v2317_v26, %v4376_v27  ;;  %v2342_v8 = vadd.f32 %v4340_v13, %v4376_v27  ;;  %v2669_v50 = vrot.slane %v2668_v62, 2 }
 0x3a5   :  { %v2319_v5 = vpop.f32.mrf.mxu0  ;;  %v2732_v26 = vrot.slane %v4552_v45, 4  ;;  %v2758_v13 = vrot.slane %v4588_v2, 4 }
 0x3a6   :  { %2623 = vmatprep.mubr.bf16.mxu1 %v2076_v22  ;;  %v2320_v11 = vadd.f32 %v2319_v5, %v4371_v18  ;;  %v2348_v5 = vadd.f32 %v4351_v38, %v4376_v27  ;;  %v2683_v38 = vmax.f32 %v2681_v63, %v2682_v49 }
 0x3a7   :  { %v2321_v20 = vpop.f32.mrf.mxu0  ;;  %2624 = vmatmul.mubr.bf16.gmra.mxu1 %v2075_v61  ;;  %v2733_v15 = vmax.f32 %v4552_v45, %v2732_v26 }
 0x3a8   :  { %v2322_v16 = vadd.f32 %v2321_v20, %v4376_v27  ;;  %v2634_v4 = vmax.f32 %v2316_v40, %v2320_v11  ;;  %v2350_v20 = vadd.f32 %v4359_v51, %v4371_v18  ;;  %v2694_v11 = vmax.f32 %v4510_v34, %v2693_v59 }
 0x3a9   :  { %v2325_v31 = vpop.f32.mrf.mxu0  ;;  %v2525_v42 = vpop.f32.mrf.mxu1  ;;  %v2352_v40 = vadd.f32 %v4362_v25, %v4376_v27 }
 0x3aa   :  { %v2326_v53 = vadd.f32 %v2325_v31, %v4371_v18  ;;  %v2526_v17 = vadd.f32 %v2525_v42, %v4371_v18  ;;  %v2647_v39 = vmax.f32 %v2318_v52, %v2322_v16  ;;  %v2720_v16 = vmax.f32 %v4546_v48, %v2719_v41 }
 0x3ab   :  { %v2327_v47 = vpop.f32.mrf.mxu0  ;;  %v2527_v3 = vpop.f32.mrf.mxu1  ;;  %v2695_v34 = vrot.slane %v2694_v11, 2  ;;  %v2759_v52 = vmax.f32 %v4588_v2, %v2758_v13 }
 0x3ac   :  { %v4607_v58 = vmax.f32 %v2764_v60, %v2526_v17  ;;  %v2328_v44 = vadd.f32 %v2327_v47, %v4376_v27  ;;  %v2528_v56 = vadd.f32 %v2527_v3, %v4376_v27  ;;  %v2635_v57 = vmax.f32 %v2634_v4, %v2326_v53 }
 0x3ad   :  { %v2329_v12 = vpop.f32.mrf.mxu0  ;;  %v2529_v33 = vpop.f32.mrf.mxu1  ;;  %v2670_v53 = vmax.f32 %v2668_v62, %v2669_v50  ;;  %v2746_v17 = vmax.f32 %v4582_v21, %v2745_v1  ;;  %v2696_v21 = vmax.f32 %v2694_v11, %v2695_v34 }
 0x3ae   :  { %v4611_v35 = vmax.f32 %v2777_v14, %v2528_v56  ;;  %v2330_v30 = vadd.f32 %v2329_v12, %v4371_v18  ;;  %v4615_v7 = vadd.f32 %v2529_v33, %v4371_v18  ;;  %v2648_v6 = vmax.f32 %v2647_v39, %v2328_v44 }
 0x3af   :  { %v2331_v60 = vpop.f32.mrf.mxu0  ;;  %v2531_v28 = vpop.f32.mrf.mxu1  ;;  %v2338_v14 = vadd.f32 %v4331_v43, %v4376_v27  ;;  %v2346_v43 = vadd.f32 %v4343_v19, %v4371_v18  ;;  %v2707_v19 = vmax.f32 %v4516_v29, %v2706_v0  ;;  %v2721_v29 = vrot.slane %v2720_v16, 2 }
 0x3b0   :  { %v2636_v37 = vmax.f32 %v2635_v57, %v2330_v30  ;;  %v2766_v24 = vmax.f32 %v4607_v58, %v4615_v7  ;;  %v2332_v23 = vadd.f32 %v2331_v60, %v4376_v27  ;;  %v4625_v46 = vadd.f32 %v2531_v28, %v4376_v27 }
 0x3b1   :  { %v2708_v47 = vrot.slane %v2707_v19, 2  ;;  %v2671_v4 = vrot.slane %v2670_v53, 1  ;;  %v2747_v58 = vrot.slane %v2746_v17, 2  ;;  %v2684_v44 = vrot.slane %v2683_v38, 1 }
 0x3b2   :  { %v2637_v54 = vmax.f32 %v2636_v37, %v2336_v36  ;;  %v2649_v55 = vmax.f32 %v2648_v6, %v2332_v23  ;;  %v2779_v9 = vmax.f32 %v4611_v35, %v4625_v46  ;;  %v2734_v56 = vrot.slane %v2733_v15, 2 }
 0x3b3   :  { %v2760_v33 = vrot.slane %v2759_v52, 2  ;;  %v2709_v57 = vmax.f32 %v2707_v19, %v2708_v47  ;;  %v2722_v35 = vmax.f32 %v2720_v16, %v2721_v29  ;;  %v2672_v36 = vmax.f32 %v2670_v53, %v2671_v4 }
 0x3b4   :  { %v2638_v22 = vmax.f32 %v2637_v54, %v2340_v10  ;;  %v2650_v61 = vmax.f32 %v2649_v55, %v2338_v14  ;;  %v2748_v62 = vmax.f32 %v2746_v17, %v2747_v58  ;;  %v2685_v60 = vmax.f32 %v2683_v38, %v2684_v44 }
 0x3b5   :  { %v2735_v28 = vmax.f32 %v2733_v15, %v2734_v56  ;;  %v2697_v14 = vrot.slane %v2696_v21, 1  ;;  %v2761_v10 = vmax.f32 %v2759_v52, %v2760_v33  ;;  %v2710_v41 = vrot.slane %v2709_v57, 1 }
 0x3b6   :  { %v2639_v31 = vmax.f32 %v2638_v22, %v2346_v43  ;;  %v2651_v42 = vmax.f32 %v2650_v61, %v2342_v8  ;;  %v2723_v54 = vrot.slane %v2722_v35, 1  ;;  %v2749_v50 = vrot.slane %v2748_v62, 1 }
 0x3b7   :  { %v2736_v49 = vrot.slane %v2735_v28, 1  ;;  %v2698_v61 = vmax.f32 %v2696_v21, %v2697_v14  ;;  %v2711_v19 = vmax.f32 %v2709_v57, %v2710_v41 }
 0x3b8   :  { %v2640_v51 = vmax.f32 %v2639_v31, %v2350_v20  ;;  %v2652_v32 = vmax.f32 %v2651_v42, %v2348_v5  ;;  %v2762_v5 = vrot.slane %v2761_v10, 1  ;;  %v2750_v16 = vmax.f32 %v2748_v62, %v2749_v50 }
 0x3b9   :  { %v2737_v42 = vmax.f32 %v2735_v28, %v2736_v49 }
 0x3ba   :  { %v2641_v3 = vrot.slane %v2640_v51, 4  ;;  %v2653_v48 = vmax.f32 %v2652_v32, %v2352_v40  ;;  %v2763_v17 = vmax.f32 %v2761_v10, %v2762_v5 }
 0x3bc   :  { %v2642_v25 = vmax.f32 %v2640_v51, %v2641_v3  ;;  %v2654_v39 = vrot.slane %v2653_v48, 4  ;;  %v2535_v12 = vpop.f32.mrf.mxu1 }
 0x3bd   :  { %v2536_v45 = vadd.f32 %v2535_v12, %v4371_v18 }
 0x3be   :  { %v2643_v30 = vrot.slane %v2642_v25, 2  ;;  %v2655_v7 = vmax.f32 %v2653_v48, %v2654_v39  ;;  %v2537_v2 = vpop.f32.mrf.mxu1 }
 0x3bf   :  { %v2767_v63 = vmax.f32 %v2766_v24, %v2536_v45  ;;  %v2538_v6 = vadd.f32 %v2537_v2, %v4376_v27 }
 0x3c0   :  { %v2644_v37 = vmax.f32 %v2642_v25, %v2643_v30  ;;  %v2656_v23 = vrot.slane %v2655_v7, 2  ;;  %v2539_v46 = vpop.f32.mrf.mxu1 }
 0x3c1   :  { %v2780_v59 = vmax.f32 %v2779_v9, %v2538_v6  ;;  %v2540_v0 = vadd.f32 %v2539_v46, %v4371_v18  ;;  %v2724_v9 = vmax.f32 %v2722_v35, %v2723_v54 }
 0x3c2   :  { %v2645_v55 = vrot.slane %v2644_v37, 1  ;;  %v2657_v8 = vmax.f32 %v2655_v7, %v2656_v23  ;;  %v2541_v43 = vpop.f32.mrf.mxu1 }
 0x3c3   :  { %v2768_v1 = vmax.f32 %v2767_v63, %v2540_v0  ;;  %v2542_v24 = vadd.f32 %v2541_v43, %v4376_v27 }
 0x3c4   :  { %v2646_v26 = vmax.f32 %v2644_v37, %v2645_v55  ;;  %v2658_v22 = vrot.slane %v2657_v8, 1 }
 0x3c5   :  { %v2781_v20 = vmax.f32 %v2780_v59, %v2542_v24 }
 0x3c6   :  { %v2659_v11 = vmax.f32 %v2657_v8, %v2658_v22  ;;  %v2859_v13 = vsel %vm2858_vm0, %v2672_v36, %v2646_v26 }
 0x3c7   :  { %v2861_v31 = vsel %vm2860_vm1, %v2698_v61, %v2859_v13 }
 0x3c8   :  { %v2863_v40 = vsel %vm2862_vm2, %v2724_v9, %v2861_v31  ;;  %v2872_v53 = vsel %vm2858_vm0, %v2685_v60, %v2659_v11 }
 0x3c9   :  { %v2865_v38 = vsel %vm2864_vm3, %v2750_v16, %v2863_v40  ;;  %v2873_v15 = vsel %vm2860_vm1, %v2711_v19, %v2872_v53 }
 0x3ca   :  { %v2874_v51 = vsel %vm2862_vm2, %v2737_v42, %v2873_v15 }
 0x3cb   :  { %v2875_v32 = vsel %vm2864_vm3, %v2763_v17, %v2874_v51 }
 0x3cf   :  { %v2545_v34 = vpop.f32.mrf.mxu1 }
 0x3d0   :  { %v2546_v52 = vadd.f32 %v2545_v34, %v4371_v18 }
 0x3d1   :  { %v2547_v47 = vpop.f32.mrf.mxu1 }
 0x3d2   :  { %v2769_v29 = vmax.f32 %v2768_v1, %v2546_v52  ;;  %v2548_v3 = vadd.f32 %v2547_v47, %v4376_v27 }
 0x3d3   :  { %v2549_v48 = vpop.f32.mrf.mxu1 }
 0x3d4   :  { %v2782_v4 = vmax.f32 %v2781_v20, %v2548_v3  ;;  %v2550_v58 = vadd.f32 %v2549_v48, %v4371_v18 }
 0x3d5   :  { %v2551_v44 = vpop.f32.mrf.mxu1 }
 0x3d6   :  { %v2770_v56 = vmax.f32 %v2769_v29, %v2550_v58  ;;  %v2552_v25 = vadd.f32 %v2551_v44, %v4376_v27 }
 0x3d8   :  { %v2771_v39 = vrot.slane %v2770_v56, 4  ;;  %v2783_v12 = vmax.f32 %v2782_v4, %v2552_v25 }
 0x3da   :  { %v2772_v21 = vmax.f32 %v2770_v56, %v2771_v39  ;;  %v2784_v33 = vrot.slane %v2783_v12, 4 }
 0x3dc   :  { %v2773_v45 = vrot.slane %v2772_v21, 2  ;;  %v2785_v57 = vmax.f32 %v2783_v12, %v2784_v33 }
 0x3de   :  { %v2774_v35 = vmax.f32 %v2772_v21, %v2773_v45  ;;  %v2786_v30 = vrot.slane %v2785_v57, 2 }
 0x3e0   :  { %v2775_v7 = vrot.slane %v2774_v35, 1  ;;  %v2787_v2 = vmax.f32 %v2785_v57, %v2786_v30 }
 0x3e2   :  { %v2776_v36 = vmax.f32 %v2774_v35, %v2775_v7  ;;  %v2788_v62 = vrot.slane %v2787_v2, 1  ;;  %v2555_v28 = vpop.f32.mrf.mxu1 }
 0x3e3   :  { %v2556_v11 = vadd.f32 %v2555_v28, %v4371_v18 }
 0x3e4   :  { %v2789_v63 = vmax.f32 %v2787_v2, %v2788_v62  ;;  %v4667_v6 = vsel %vm2866_vm4, %v2776_v36, %v2865_v38  ;;  %v2557_v37 = vpop.f32.mrf.mxu1 }
 0x3e5   :  { %v2558_v16 = vadd.f32 %v2557_v37, %v4376_v27 }
 0x3e6   :  { %v4669_v60 = vsel %vm2866_vm4, %v2789_v63, %v2875_v32  ;;  %v2559_v23 = vpop.f32.mrf.mxu1 }
 0x3e7   :  { %v2560_v20 = vadd.f32 %v2559_v23, %v4371_v18 }
 0x3e8   :  { %v2561_v46 = vpop.f32.mrf.mxu1 }
 0x3e9   :  { %v2562_v13 = vadd.f32 %v2561_v46, %v4376_v27  ;;  %v2790_v31 = vmax.f32 %v2556_v11, %v2560_v20 }
 0x3eb   :  { %v2803_v17 = vmax.f32 %v2558_v16, %v2562_v13 }
 0x3f5   :  { %v2565_v14 = vpop.f32.mrf.mxu1 }
 0x3f6   :  { %v2566_v19 = vadd.f32 %v2565_v14, %v4371_v18 }
 0x3f7   :  { %v2567_v10 = vpop.f32.mrf.mxu1 }
 0x3f8   :  { %v2568_v42 = vadd.f32 %v2567_v10, %v4376_v27  ;;  %v2791_v38 = vmax.f32 %v2790_v31, %v2566_v19 }
 0x3f9   :  { %v2569_v59 = vpop.f32.mrf.mxu1 }
 0x3fa   :  { %v2570_v40 = vadd.f32 %v2569_v59, %v4371_v18  ;;  %v2804_v32 = vmax.f32 %v2803_v17, %v2568_v42 }
 0x3fb   :  { %v2571_v0 = vpop.f32.mrf.mxu1 }
 0x3fc   :  { %v2572_v15 = vadd.f32 %v2571_v0, %v4376_v27  ;;  %v2792_v34 = vmax.f32 %v2791_v38, %v2570_v40 }
 0x3fe   :  { %v2805_v3 = vmax.f32 %v2804_v32, %v2572_v15 }
 0x408   :  { %v2575_v41 = vpop.f32.mrf.mxu1 }
 0x409   :  { %v2576_v51 = vadd.f32 %v2575_v41, %v4371_v18 }
 0x40a   :  { %v2577_v54 = vpop.f32.mrf.mxu1 }
 0x40b   :  { %v2578_v52 = vadd.f32 %v2577_v54, %v4376_v27  ;;  %v2793_v48 = vmax.f32 %v2792_v34, %v2576_v51 }
 0x40c   :  { %v2579_v55 = vpop.f32.mrf.mxu1 }
 0x40d   :  { %v2580_v47 = vadd.f32 %v2579_v55, %v4371_v18  ;;  %v2806_v56 = vmax.f32 %v2805_v3, %v2578_v52 }
 0x40e   :  { %v2581_v8 = vpop.f32.mrf.mxu1 }
 0x40f   :  { %v2582_v4 = vadd.f32 %v2581_v8, %v4376_v27  ;;  %v2794_v25 = vmax.f32 %v2793_v48, %v2580_v47 }
 0x411   :  { %v2807_v21 = vmax.f32 %v2806_v56, %v2582_v4 }
 0x41b   :  { %v2585_v43 = vpop.f32.mrf.mxu1 }
 0x41c   :  { %v2586_v58 = vadd.f32 %v2585_v43, %v4371_v18 }
 0x41d   :  { %v2587_v50 = vpop.f32.mrf.mxu1 }
 0x41e   :  { %v2588_v39 = vadd.f32 %v2587_v50, %v4376_v27  ;;  %v2795_v33 = vmax.f32 %v2794_v25, %v2586_v58 }
 0x41f   :  { %v2589_v1 = vpop.f32.mrf.mxu1 }
 0x420   :  { %v2590_v12 = vadd.f32 %v2589_v1, %v4371_v18  ;;  %v2808_v30 = vmax.f32 %v2807_v21, %v2588_v39 }
 0x421   :  { %v2591_v24 = vpop.f32.mrf.mxu1 }
 0x422   :  { %v2592_v45 = vadd.f32 %v2591_v24, %v4376_v27  ;;  %v2796_v7 = vmax.f32 %v2795_v33, %v2590_v12 }
 0x424   :  { %v2809_v63 = vmax.f32 %v2808_v30, %v2592_v45  ;;  %v2797_v10 = vrot.slane %v2796_v7, 4 }
 0x426   :  { %v2810_v55 = vrot.slane %v2809_v63, 4 }
 0x42e   :  { %v2595_v49 = vpop.f32.mrf.mxu1 }
 0x42f   :  { %v2596_v2 = vadd.f32 %v2595_v49, %v4371_v18  ;;  %v2798_v49 = vmax.f32 %v2796_v7, %v2797_v10 }
 0x430   :  { %v2597_v26 = vpop.f32.mrf.mxu1 }
 0x431   :  { %v2598_v37 = vadd.f32 %v2597_v26, %v4376_v27  ;;  %v2799_v31 = vrot.slane %v2798_v49, 2 }
 0x432   :  { %v2599_v22 = vpop.f32.mrf.mxu1 }
 0x433   :  { %v2600_v35 = vadd.f32 %v2599_v22, %v4371_v18  ;;  %v2800_v52 = vmax.f32 %v2798_v49, %v2799_v31 }
 0x434   :  { %v2601_v61 = vpop.f32.mrf.mxu1 }
 0x435   :  { %v2602_v36 = vadd.f32 %v2601_v61, %v4376_v27  ;;  %v2816_v23 = vmax.f32 %v2596_v2, %v2600_v35  ;;  %v2801_v58 = vrot.slane %v2800_v52, 1 }
 0x437   :  { %v2829_v59 = vmax.f32 %v2598_v37, %v2602_v36  ;;  %v2802_v21 = vmax.f32 %v2800_v52, %v2801_v58 }
 0x439   :  { %v2869_v35 = vsel %vm2868_vm5, %v2802_v21, %v4667_v6 }
 0x441   :  { %v2605_v5 = vpop.f32.mrf.mxu1 }
 0x442   :  { %v2606_v62 = vadd.f32 %v2605_v5, %v4371_v18 }
 0x443   :  { %v2607_v9 = vpop.f32.mrf.mxu1 }
 0x444   :  { %v2608_v46 = vadd.f32 %v2607_v9, %v4376_v27  ;;  %v2817_v0 = vmax.f32 %v2816_v23, %v2606_v62  ;;  %v2811_v9 = vmax.f32 %v2809_v63, %v2810_v55 }
 0x445   :  { %v2609_v53 = vpop.f32.mrf.mxu1 }
 0x446   :  { %v2610_v14 = vadd.f32 %v2609_v53, %v4371_v18  ;;  %v2830_v43 = vmax.f32 %v2829_v59, %v2608_v46  ;;  %v2812_v38 = vrot.slane %v2811_v9, 2 }
 0x447   :  { %v2611_v29 = vpop.f32.mrf.mxu1 }
 0x448   :  { %v2612_v41 = vadd.f32 %v2611_v29, %v4376_v27  ;;  %v2818_v50 = vmax.f32 %v2817_v0, %v2610_v14  ;;  %v2813_v3 = vmax.f32 %v2811_v9, %v2812_v38 }
 0x44a   :  { %v2831_v22 = vmax.f32 %v2830_v43, %v2612_v41  ;;  %v2814_v25 = vrot.slane %v2813_v3, 1 }
 0x44c   :  { %v2815_v45 = vmax.f32 %v2813_v3, %v2814_v25 }
 0x44e   :  { %v2877_v2 = vsel %vm2868_vm5, %v2815_v45, %v4669_v60 }
 0x454   :  { %v2615_v44 = vpop.f32.mrf.mxu1 }
 0x455   :  { %v2616_v54 = vadd.f32 %v2615_v44, %v4371_v18 }
 0x456   :  { %v2617_v57 = vpop.f32.mrf.mxu1 }
 0x457   :  { %v2618_v1 = vadd.f32 %v2617_v57, %v4376_v27  ;;  %v2819_v61 = vmax.f32 %v2818_v50, %v2616_v54 }
 0x458   :  { %v2619_v28 = vpop.f32.mrf.mxu1 }
 0x459   :  { %v2620_v24 = vadd.f32 %v2619_v28, %v4371_v18  ;;  %v2832_v13 = vmax.f32 %v2831_v22, %v2618_v1 }
 0x45a   :  { %v2621_v8 = vpop.f32.mrf.mxu1 }
 0x45b   :  { %v2622_v5 = vadd.f32 %v2621_v8, %v4376_v27  ;;  %v2820_v19 = vmax.f32 %v2819_v61, %v2620_v24 }
 0x45d   :  { %v2833_v40 = vmax.f32 %v2832_v13, %v2622_v5 }
 0x467   :  { %v2625_v26 = vpop.f32.mrf.mxu1 }
 0x468   :  { %v2626_v20 = vadd.f32 %v2625_v26, %v4371_v18 }
 0x469   :  { %v2627_v11 = vpop.f32.mrf.mxu1 }
 0x46a   :  { %v2628_v16 = vadd.f32 %v2627_v11, %v4376_v27  ;;  %v2821_v53 = vmax.f32 %v2820_v19, %v2626_v20 }
 0x46b   :  { %v2629_v42 = vpop.f32.mrf.mxu1 }
 0x46c   :  { %v2630_v17 = vadd.f32 %v2629_v42, %v4371_v18  ;;  %v2834_v51 = vmax.f32 %v2833_v40, %v2628_v16 }
 0x46d   :  { %v2631_v15 = vpop.f32.mrf.mxu1 }
 0x46e   :  { %v2822_v32 = vmax.f32 %v2821_v53, %v2630_v17  ;;  %v2632_v34 = vadd.f32 %v2631_v15, %v4376_v27 }
 0x470   :  { %v2823_v47 = vrot.slane %v2822_v32, 4  ;;  %v2835_v29 = vmax.f32 %v2834_v51, %v2632_v34 }
 0x472   :  { %v2824_v48 = vmax.f32 %v2822_v32, %v2823_v47  ;;  %v2836_v4 = vrot.slane %v2835_v29, 4 }
 0x474   :  { %v2825_v44 = vrot.slane %v2824_v48, 2  ;;  %v2837_v56 = vmax.f32 %v2835_v29, %v2836_v4 }
 0x476   :  { %v2826_v39 = vmax.f32 %v2824_v48, %v2825_v44  ;;  %v2838_v12 = vrot.slane %v2837_v56, 2 }
 0x478   :  { %v2827_v18 = vrot.slane %v2826_v39, 1  ;;  %v2839_v33 = vmax.f32 %v2837_v56, %v2838_v12 }
 0x47a   :  { %v2840_v57 = vrot.slane %v2839_v33, 1  ;;  %v2828_v27 = vmax.f32 %v2826_v39, %v2827_v18 }
 0x47c   :  { %v2841_v30 = vmax.f32 %v2839_v33, %v2840_v57  ;;  %v2871_v7 = vsel %vm2870_vm6, %v2828_v27, %v2869_v35 }
 0x47d   :  { %2881 = vst [vmem:[#allocation2] sm:$0xff] %v2871_v7 }
 0x47e   :  { %v2878_v36 = vsel %vm2870_vm6, %v2841_v30, %v2877_v2 }
 0x47f   :  { %2882 = vst [vmem:[#allocation2 + $0x8] sm:$0xff] %v2878_v36 }
 0x480   :  { %3173 = shalt.err (!%p3170_p4)
}
 0x481   :  { %2892 = dma.vmem_to_hbm [thread:$0]  %s2890_s12, 256, %s4715_s7, [#allocation3]  }
 0x482   :  { %3182 = dma.done.wait [#allocation3], 256  }
 0x483   :  { %3183 = vsyncadd [#allocation3], 4294967040 }
 0x484   :  { %2896 = vsyncpa [#allocation3], 1 }

</bundles_post_ra>
